<compile_context>
chip_gen: v7x
topology: tpu7x:2x2x1
jax: 0.10.0
libtpu: 0.0.40
codegen_flags: <defaults>
</compile_context>

<pallas_src>
import functools

import jax
import jax.numpy as jnp
from jax.experimental import pallas as pl
from jax.experimental.pallas import tpu as pltpu


# ----------------------------- Pallas kernel ------------------------------ #
def _axis_factor(c01, size, k, mt):
    """(k, mt) matrix with <=2 nonzeros per column: 1-D linear-interp weights for one
    spatial axis (grid_sample, align_corners=True, padding_mode='border')."""
    g = 2.0 * c01 - 1.0                              # grid_sample normalized coord
    u = (g + 1.0) * 0.5 * (size - 1)                 # align_corners=True unnormalize
    u = jnp.clip(u, 0.0, float(size - 1))            # border padding
    i0f = jnp.floor(u)
    w1 = u - i0f                                     # (1, mt) f32
    i0 = i0f.astype(jnp.int32)
    i1 = jnp.minimum(i0 + 1, size - 1)               # clamped corner; weights still sum to 1
    rows = jax.lax.broadcasted_iota(jnp.int32, (k, mt), 0)
    return (jnp.where(rows == i0, 1.0 - w1, 0.0)
            + jnp.where(rows == i1, w1, 0.0))        # (k, mt) f32


def _wnf_kernel(D, H, W,
                f_ref, q_ref, e_ref, w1t_ref, w2t_ref, b1_ref, b2_ref, w3_ref,
                scal_ref, o_ref):
    feats = f_ref[0]                      # (C, DHW) bf16, flat index = (z*H + y)*W + x
    q = q_ref[0]                          # (3, MT)  f32, rows = (x->W, y->H, z->D)
    mt = q.shape[1]
    k = e_ref.shape[2]

    # Separable interpolation matrix: per-axis factors (f32 elementwise, v5e-friendly),
    # expanded by constant 0/1 matmuls (MXU), combined with 2 VPU multiplies/element,
    # then cast once to bf16 right before the sampling matmul.
    ax = _axis_factor(q[0:1, :], W, k, mt)            # (K, MT)
    ay = _axis_factor(q[1:2, :], H, k, mt)
    az = _axis_factor(q[2:3, :], D, k, mt)
    zf = jnp.dot(e_ref[0], az, preferred_element_type=jnp.float32)    # (DHW, MT)
    yf = jnp.dot(e_ref[1], ay, preferred_element_type=jnp.float32)
    xf = jnp.dot(e_ref[2], ax, preferred_element_type=jnp.float32)
    at = (zf * yf * xf).astype(jnp.bfloat16)                          # (DHW, MT)

    # Sampling: feats(C,DHW) @ at(DHW,MT) on the MXU; M stays on the 128-lane axis.
    sampled = jnp.dot(feats, at, preferred_element_type=jnp.float32)  # (C, MT) f32
    sampled = sampled.astype(jnp.bfloat16)

    # Channels-first MLP: no transposes, MT lane-dense throughout; bf16 MXU operands,
    # f32 accumulation / bias / ReLU.
    b1 = b1_ref[...]                      # (Ch, 1) f32  layer-1 bias
    b2 = b2_ref[...]                      # (Ch, 1) f32  layer-2 bias with BN1 folded in
    h1 = jnp.dot(w1t_ref[...], sampled, preferred_element_type=jnp.float32) + b1
    h1 = jnp.maximum(h1, 0.0).astype(jnp.bfloat16)                    # (Ch, MT)
    h2 = jnp.dot(w2t_ref[...], h1, preferred_element_type=jnp.float32) + b2
    h2 = jnp.maximum(h2, 0.0).astype(jnp.bfloat16)                    # (Ch, MT)

    # Final 512 -> 1 layer, lane-dense: (1, Ch) @ (Ch, MT) -> (1, MT).
    b3 = scal_ref[0]                      # layer-3 bias with BN2 shift folded in
    s3 = scal_ref[1]                      # last BN scale
    t3 = scal_ref[2]                      # last BN shift
    pre3 = jnp.dot(w3_ref[...], h2, preferred_element_type=jnp.float32) + b3
    out = jnp.maximum(pre3, 0.0) * s3 + t3                            # (1, MT) f32
    o_ref[...] = out[None].astype(o_ref.dtype)


# --------------------------- parameter folding ----------------------------- #
def _prepare_params(params, w_dtype=jnp.bfloat16):
    """Fold eval-mode BN of layers 1/2 into the next layer's weight/bias, pre-transpose
    weights for the channels-first MLP, and pack the small remainders."""
    (w1, b1, s1, t1, w2, b2, s2, t2, w3, b3, s3, t3) = params
    b1 = b1.reshape(-1).astype(jnp.float32)
    s1 = s1.reshape(-1).astype(jnp.float32)
    t1 = t1.reshape(-1).astype(jnp.float32)
    b2 = b2.reshape(-1).astype(jnp.float32)
    s2 = s2.reshape(-1).astype(jnp.float32)
    t2 = t2.reshape(-1).astype(jnp.float32)
    w1 = w1.astype(jnp.float32)
    w2 = w2.astype(jnp.float32)
    w3c = w3.reshape(-1).astype(jnp.float32)          # (Ch,), out dim == 1

    w2f = w2 * s1[:, None]                            # W2' = diag(s1) @ W2
    b2f = b2 + t1 @ w2                                # b2' = b2 + t1 @ W2
    w3f = w3c * s2                                    # W3' = diag(s2) @ W3 (row)
    b3f = jnp.reshape(b3, ()) + jnp.dot(t2, w3c)      # b3' = b3 + t2 @ W3

    assert b1.shape == b2f.shape == w3f.shape, "kernel assumes equal hidden widths"
    w1t = w1.T.astype(w_dtype)                                       # (Ch, C)
    w2t = w2f.T.astype(w_dtype)                                      # (Ch, Ch)
    b1col = b1.reshape(-1, 1).astype(jnp.float32)                    # (Ch, 1)
    b2col = b2f.reshape(-1, 1).astype(jnp.float32)                   # (Ch, 1)
    w3row = w3f.reshape(1, -1).astype(w_dtype)                       # (1, Ch)
    scal = jnp.stack([b3f, jnp.reshape(s3, ()), jnp.reshape(t3, ())]).astype(jnp.float32)
    return w1t, w2t, b1col, b2col, w3row, scal


def _expansion_matrices(D, H, W):
    """Constant 0/1 matrices (3, DHW, K) expanding a per-axis (K, MT) factor to the
    flat (DHW, MT) grid: E[z][r, r//(H*W)] = E[y][r, (r//W)%H] = E[x][r, r%W] = 1."""
    dhw = D * H * W
    k = max(D, H, W)
    r = jnp.arange(dhw)[:, None]
    c = jnp.arange(k)[None, :]
    ez = (r // (H * W) == c)
    ey = ((r // W) % H == c)
    ex = (r % W == c)
    return jnp.stack([ez, ey, ex], axis=0).astype(jnp.float32)       # (3, DHW, K)


# ------------------------------ JAX wrapper -------------------------------- #
def implicit_wnf_decoder(features_grid, query_points, params, *, mt=256,
                         vmem_limit_bytes=None):
    """features_grid: (N,C,D,H,W) f32; query_points: (N,M,3) f32 in [0,1] -> (N,M,1)."""
    assert mt % 128 == 0
    N, C, D, H, W = features_grid.shape
    M = query_points.shape[1]
    DHW = D * H * W

    # Native NCDHW layout kept; merging the trailing dims is free (no HBM transpose).
    # bf16 halves the dominant feats DMA / VMEM block; accumulation stays f32.
    feats = features_grid.reshape(N, C, DHW).astype(jnp.bfloat16)

    # Queries to (N, 3, M_pad) so M sits on the 128-lane axis; tiny arrays.
    m_pad = pl.cdiv(M, mt) * mt
    qT = jnp.transpose(query_points.astype(jnp.float32), (0, 2, 1))
    if m_pad != M:
        qT = jnp.pad(qT, ((0, 0), (0, 0), (0, m_pad - M)))
    m_tiles = m_pad // mt

    emat = _expansion_matrices(D, H, W)
    w1t, w2t, b1col, b2col, w3row, scal = _prepare_params(params)
    Ch = w1t.shape[0]
    K = emat.shape[2]

    grid_spec = pltpu.PrefetchScalarGridSpec(
        num_scalar_prefetch=0,
        grid=(N, m_tiles),
        in_specs=[
            pl.BlockSpec((1, C, DHW), lambda n, m: (n, 0, 0)),
            pl.BlockSpec((1, 3, mt), lambda n, m: (n, 0, m)),
            pl.BlockSpec(emat.shape, lambda n, m: (0, 0, 0)),
            pl.BlockSpec(w1t.shape, lambda n, m: (0, 0)),
            pl.BlockSpec(w2t.shape, lambda n, m: (0, 0)),
            pl.BlockSpec(b1col.shape, lambda n, m: (0, 0)),
            pl.BlockSpec(b2col.shape, lambda n, m: (0, 0)),
            pl.BlockSpec(w3row.shape, lambda n, m: (0, 0)),
            pl.BlockSpec(memory_space=pltpu.MemorySpace.SMEM),
        ],
        out_specs=pl.BlockSpec((1, 1, mt), lambda n, m: (n, 0, m)),
    )

    # Advisory cost: constant-index blocks are fetched once; feats once over the grid
    # (its block index only changes with the slow batch axis).
    flops = 2 * N * m_pad * (3 * DHW * K + C * DHW + C * Ch + Ch * Ch + Ch)
    bytes_accessed = (feats.size * 2 + qT.size * 4 + emat.size * 4
                      + (w1t.size + w2t.size + w3row.size) * 2
                      + (b1col.size + b2col.size + scal.size) * 4
                      + N * m_pad * 4)
    cost = pl.CostEstimate(flops=int(flops), transcendentals=0,
                           bytes_accessed=int(bytes_accessed))

    out = pl.pallas_call(
        functools.partial(_wnf_kernel, D, H, W),
        out_shape=jax.ShapeDtypeStruct((N, 1, m_pad), jnp.float32),
        grid_spec=grid_spec,
        compiler_params=pltpu.CompilerParams(
            dimension_semantics=("parallel", "parallel"),
            vmem_limit_bytes=vmem_limit_bytes),
        cost_estimate=cost,
    )(feats, qT, emat, w1t, w2t, b1col, b2col, w3row, scal)

    # (N, 1, M_pad) lane-dense kernel output -> module's (N, M, 1); the reshape is free.
    return out[:, 0, :M].reshape(N, M, 1)


# ------------------------- deterministic parameters ------------------------ #
def make_params(key, nn_channels=(128, 512, 512, 1), eps=1e-5):
    params = []
    for i in range(1, len(nn_channels)):
        cin, cout = nn_channels[i - 1], nn_channels[i]
        key, kw, kb, kg, kbe, km, kv = jax.random.split(key, 7)
        w = jax.random.normal(kw, (cin, cout), jnp.float32) / jnp.sqrt(float(cin))
        b = 0.1 * jax.random.normal(kb, (cout,), jnp.float32)
        gamma = 1.0 + 0.1 * jax.random.normal(kg, (cout,), jnp.float32)
        beta = 0.1 * jax.random.normal(kbe, (cout,), jnp.float32)
        rmean = 0.1 * jax.random.normal(km, (cout,), jnp.float32)
        rvar = 1.0 + 0.1 * jnp.abs(jax.random.normal(kv, (cout,), jnp.float32))
        scale = gamma / jnp.sqrt(rvar + eps)
        shift = beta - rmean * scale
        params += [w, b.reshape(1, cout), scale.reshape(1, cout), shift.reshape(1, cout)]
    return tuple(params)


# --------------------------- pure-JAX reference ---------------------------- #
def ref_forward(features_grid, query_points, params):
    N, C, D, H, W = features_grid.shape
    M = query_points.shape[1]
    feats = jnp.transpose(features_grid, (0, 2, 3, 4, 1)).reshape(N, D * H * W, C)

    g = 2.0 * query_points - 1.0

    def coord(c, size):
        return jnp.clip((c + 1.0) * 0.5 * (size - 1), 0.0, float(size - 1))

    cx = coord(g[..., 0], W)
    cy = coord(g[..., 1], H)
    cz = coord(g[..., 2], D)
    x0 = jnp.floor(cx).astype(jnp.int32)
    y0 = jnp.floor(cy).astype(jnp.int32)
    z0 = jnp.floor(cz).astype(jnp.int32)
    wx1 = cx - x0
    wy1 = cy - y0
    wz1 = cz - z0
    x1 = jnp.minimum(x0 + 1, W - 1)
    y1 = jnp.minimum(y0 + 1, H - 1)
    z1 = jnp.minimum(z0 + 1, D - 1)

    def gather(zi, yi, xi):
        idx = (zi * H + yi) * W + xi                               # (N, M)
        return jnp.take_along_axis(feats, idx[..., None], axis=1)  # (N, M, C)

    sampled = jnp.zeros((N, M, C), jnp.float32)
    for zi, wz in ((z0, 1.0 - wz1), (z1, wz1)):
        for yi, wy in ((y0, 1.0 - wy1), (y1, wy1)):
            for xi, wx in ((x0, 1.0 - wx1), (x1, wx1)):
                sampled = sampled + (wz * wy * wx)[..., None] * gather(zi, yi, xi)

    x = sampled
    for i in range(len(params) // 4):
        w, b, s, t = params[4 * i: 4 * i + 4]
        x = jnp.maximum(jnp.dot(x, w) + b, 0.0) * s + t
    return x


# ---------------------------------- main ----------------------------------- #
if __name__ == "__main__":
    key = jax.random.PRNGKey(0)
    kf, kq, kp = jax.random.split(key, 3)

    N, C, D, H, W, M = 2, 128, 8, 8, 8, 64
    features_grid = jax.random.normal(kf, (N, C, D, H, W), jnp.float32)
    query_points = jax.random.uniform(kq, (N, M, 3), jnp.float32)
    params = make_params(kp)

    out = implicit_wnf_decoder(features_grid, query_points, params)
    out = jax.block_until_ready(out)
    assert out.shape == (N, M, 1), out.shape

    ref = ref_forward(features_grid, query_points, params)
    max_err = float(jnp.max(jnp.abs(out - ref)))
    # bf16 sampling path (feats + interpolation matrix) and bf16 MLP operands with f32
    # accumulation: expected max error ~1e-2 on O(1) outputs, hence the widened tolerance.
    assert jnp.allclose(out, ref, atol=3e-2, rtol=3e-2), max_err

    print("KERNEL_OK")
</pallas_src>

<mosaic_0001>
module attributes {stable_mosaic.version = 11 : i64} {
  func.func @_wnf_kernel(%arg0: i32, %arg1: i32, %arg2: memref<1x128x512xbf16, #tpu.memory_space<vmem>>, %arg3: memref<1x3x256xf32, #tpu.memory_space<vmem>>, %arg4: memref<3x512x8xf32, #tpu.memory_space<vmem>>, %arg5: memref<512x128xbf16, #tpu.memory_space<vmem>>, %arg6: memref<512x512xbf16, #tpu.memory_space<vmem>>, %arg7: memref<512x1xf32, #tpu.memory_space<vmem>>, %arg8: memref<512x1xf32, #tpu.memory_space<vmem>>, %arg9: memref<1x512xbf16, #tpu.memory_space<vmem>>, %arg10: memref<3xf32, #tpu.memory_space<smem>>, %arg11: memref<1x1x256xf32, #tpu.memory_space<vmem>>) attributes {dimension_semantics = [#tpu.dimension_semantics<parallel>, #tpu.dimension_semantics<parallel>], iteration_bounds = array<i64: 2, 1>, scalar_prefetch = 0 : i64, scratch_operands = 0 : i64, tpu.core_type = #tpu.core_type<tc>, window_params = [{transform_indices = @transform_0, window_bounds = array<i64: 1, 128, 512>}, {transform_indices = @transform_1, window_bounds = array<i64: 1, 3, 256>}, {pipeline_mode = #tpu.pipeline_mode<synchronous>, transform_indices = @transform_2, window_bounds = array<i64: 3, 512, 8>}, {pipeline_mode = #tpu.pipeline_mode<synchronous>, transform_indices = @transform_3, window_bounds = array<i64: 512, 128>}, {pipeline_mode = #tpu.pipeline_mode<synchronous>, transform_indices = @transform_4, window_bounds = array<i64: 512, 512>}, {pipeline_mode = #tpu.pipeline_mode<synchronous>, transform_indices = @transform_5, window_bounds = array<i64: 512, 1>}, {pipeline_mode = #tpu.pipeline_mode<synchronous>, transform_indices = @transform_6, window_bounds = array<i64: 512, 1>}, {pipeline_mode = #tpu.pipeline_mode<synchronous>, transform_indices = @transform_7, window_bounds = array<i64: 1, 512>}, {transform_indices = @transform_8, window_bounds = array<i64: 3>}, {transform_indices = @transform_9, window_bounds = array<i64: 1, 1, 256>}]} {
    %c0 = arith.constant 0 : index
    %c0_0 = arith.constant 0 : index
    %c0_1 = arith.constant 0 : index
    %0 = vector.load %arg2[%c0, %c0_0, %c0_1] : memref<1x128x512xbf16, #tpu.memory_space<vmem>>, vector<1x128x512xbf16>
    %1 = vector.shape_cast %0 : vector<1x128x512xbf16> to vector<128x512xbf16>
    %c0_2 = arith.constant 0 : index
    %c0_3 = arith.constant 0 : index
    %c0_4 = arith.constant 0 : index
    %2 = vector.load %arg3[%c0_2, %c0_3, %c0_4] : memref<1x3x256xf32, #tpu.memory_space<vmem>>, vector<1x3x256xf32>
    %3 = vector.shape_cast %2 : vector<1x3x256xf32> to vector<3x256xf32>
    %4 = vector.extract_strided_slice %3 {offsets = [0, 0], sizes = [1, 256], strides = [1, 1]} : vector<3x256xf32> to vector<1x256xf32>
    %cst = arith.constant 2.000000e+00 : f32
    %5 = vector.broadcast %cst : f32 to vector<1x256xf32>
    %6 = arith.mulf %5, %4 : vector<1x256xf32>
    %cst_5 = arith.constant 1.000000e+00 : f32
    %7 = vector.broadcast %cst_5 : f32 to vector<1x256xf32>
    %8 = arith.subf %6, %7 : vector<1x256xf32>
    %cst_6 = arith.constant 1.000000e+00 : f32
    %9 = vector.broadcast %cst_6 : f32 to vector<1x256xf32>
    %10 = arith.addf %8, %9 : vector<1x256xf32>
    %cst_7 = arith.constant 5.000000e-01 : f32
    %11 = vector.broadcast %cst_7 : f32 to vector<1x256xf32>
    %12 = arith.mulf %10, %11 : vector<1x256xf32>
    %cst_8 = arith.constant 7.000000e+00 : f32
    %13 = vector.broadcast %cst_8 : f32 to vector<1x256xf32>
    %14 = arith.mulf %12, %13 : vector<1x256xf32>
    %cst_9 = arith.constant 0.000000e+00 : f32
    %cst_10 = arith.constant 7.000000e+00 : f32
    %15 = vector.broadcast %cst_9 : f32 to vector<1x256xf32>
    %16 = arith.maximumf %15, %14 : vector<1x256xf32>
    %17 = vector.broadcast %cst_10 : f32 to vector<1x256xf32>
    %18 = arith.minimumf %17, %16 : vector<1x256xf32>
    %19 = math.floor %18 : vector<1x256xf32>
    %20 = arith.subf %18, %19 : vector<1x256xf32>
    %21 = arith.fptosi %19 : vector<1x256xf32> to vector<1x256xi32>
    %c1_i32 = arith.constant 1 : i32
    %22 = vector.broadcast %c1_i32 : i32 to vector<1x256xi32>
    %23 = arith.addi %21, %22 : vector<1x256xi32>
    %c7_i32 = arith.constant 7 : i32
    %24 = vector.broadcast %c7_i32 : i32 to vector<1x256xi32>
    %25 = arith.minsi %23, %24 : vector<1x256xi32>
    %26 = tpu.iota {dimensions = array<i32: 0>} : vector<8x256xi32>
    %27 = vector.broadcast %21 : vector<1x256xi32> to vector<8x256xi32>
    %28 = arith.cmpi eq, %26, %27 : vector<8x256xi32>
    %cst_11 = arith.constant 1.000000e+00 : f32
    %29 = vector.broadcast %cst_11 : f32 to vector<1x256xf32>
    %30 = arith.subf %29, %20 : vector<1x256xf32>
    %cst_12 = arith.constant 0.000000e+00 : f32
    %31 = vector.shape_cast %30 : vector<1x256xf32> to vector<1x256xf32>
    %32 = vector.broadcast %31 : vector<1x256xf32> to vector<8x256xf32>
    %33 = vector.broadcast %cst_12 : f32 to vector<8x256xf32>
    %34 = arith.select %28, %32, %33 : vector<8x256xi1>, vector<8x256xf32>
    %35 = vector.broadcast %25 : vector<1x256xi32> to vector<8x256xi32>
    %36 = arith.cmpi eq, %26, %35 : vector<8x256xi32>
    %cst_13 = arith.constant 0.000000e+00 : f32
    %37 = vector.shape_cast %20 : vector<1x256xf32> to vector<1x256xf32>
    %38 = vector.broadcast %37 : vector<1x256xf32> to vector<8x256xf32>
    %39 = vector.broadcast %cst_13 : f32 to vector<8x256xf32>
    %40 = arith.select %36, %38, %39 : vector<8x256xi1>, vector<8x256xf32>
    %41 = arith.addf %34, %40 : vector<8x256xf32>
    %42 = vector.extract_strided_slice %3 {offsets = [1, 0], sizes = [1, 256], strides = [1, 1]} : vector<3x256xf32> to vector<1x256xf32>
    %cst_14 = arith.constant 2.000000e+00 : f32
    %43 = vector.broadcast %cst_14 : f32 to vector<1x256xf32>
    %44 = arith.mulf %43, %42 : vector<1x256xf32>
    %cst_15 = arith.constant 1.000000e+00 : f32
    %45 = vector.broadcast %cst_15 : f32 to vector<1x256xf32>
    %46 = arith.subf %44, %45 : vector<1x256xf32>
    %cst_16 = arith.constant 1.000000e+00 : f32
    %47 = vector.broadcast %cst_16 : f32 to vector<1x256xf32>
    %48 = arith.addf %46, %47 : vector<1x256xf32>
    %cst_17 = arith.constant 5.000000e-01 : f32
    %49 = vector.broadcast %cst_17 : f32 to vector<1x256xf32>
    %50 = arith.mulf %48, %49 : vector<1x256xf32>
    %cst_18 = arith.constant 7.000000e+00 : f32
    %51 = vector.broadcast %cst_18 : f32 to vector<1x256xf32>
    %52 = arith.mulf %50, %51 : vector<1x256xf32>
    %cst_19 = arith.constant 0.000000e+00 : f32
    %cst_20 = arith.constant 7.000000e+00 : f32
    %53 = vector.broadcast %cst_19 : f32 to vector<1x256xf32>
    %54 = arith.maximumf %53, %52 : vector<1x256xf32>
    %55 = vector.broadcast %cst_20 : f32 to vector<1x256xf32>
    %56 = arith.minimumf %55, %54 : vector<1x256xf32>
    %57 = math.floor %56 : vector<1x256xf32>
    %58 = arith.subf %56, %57 : vector<1x256xf32>
    %59 = arith.fptosi %57 : vector<1x256xf32> to vector<1x256xi32>
    %c1_i32_21 = arith.constant 1 : i32
    %60 = vector.broadcast %c1_i32_21 : i32 to vector<1x256xi32>
    %61 = arith.addi %59, %60 : vector<1x256xi32>
    %c7_i32_22 = arith.constant 7 : i32
    %62 = vector.broadcast %c7_i32_22 : i32 to vector<1x256xi32>
    %63 = arith.minsi %61, %62 : vector<1x256xi32>
    %64 = tpu.iota {dimensions = array<i32: 0>} : vector<8x256xi32>
    %65 = vector.broadcast %59 : vector<1x256xi32> to vector<8x256xi32>
    %66 = arith.cmpi eq, %64, %65 : vector<8x256xi32>
    %cst_23 = arith.constant 1.000000e+00 : f32
    %67 = vector.broadcast %cst_23 : f32 to vector<1x256xf32>
    %68 = arith.subf %67, %58 : vector<1x256xf32>
    %cst_24 = arith.constant 0.000000e+00 : f32
    %69 = vector.shape_cast %68 : vector<1x256xf32> to vector<1x256xf32>
    %70 = vector.broadcast %69 : vector<1x256xf32> to vector<8x256xf32>
    %71 = vector.broadcast %cst_24 : f32 to vector<8x256xf32>
    %72 = arith.select %66, %70, %71 : vector<8x256xi1>, vector<8x256xf32>
    %73 = vector.broadcast %63 : vector<1x256xi32> to vector<8x256xi32>
    %74 = arith.cmpi eq, %64, %73 : vector<8x256xi32>
    %cst_25 = arith.constant 0.000000e+00 : f32
    %75 = vector.shape_cast %58 : vector<1x256xf32> to vector<1x256xf32>
    %76 = vector.broadcast %75 : vector<1x256xf32> to vector<8x256xf32>
    %77 = vector.broadcast %cst_25 : f32 to vector<8x256xf32>
    %78 = arith.select %74, %76, %77 : vector<8x256xi1>, vector<8x256xf32>
    %79 = arith.addf %72, %78 : vector<8x256xf32>
    %80 = vector.extract_strided_slice %3 {offsets = [2, 0], sizes = [1, 256], strides = [1, 1]} : vector<3x256xf32> to vector<1x256xf32>
    %cst_26 = arith.constant 2.000000e+00 : f32
    %81 = vector.broadcast %cst_26 : f32 to vector<1x256xf32>
    %82 = arith.mulf %81, %80 : vector<1x256xf32>
    %cst_27 = arith.constant 1.000000e+00 : f32
    %83 = vector.broadcast %cst_27 : f32 to vector<1x256xf32>
    %84 = arith.subf %82, %83 : vector<1x256xf32>
    %cst_28 = arith.constant 1.000000e+00 : f32
    %85 = vector.broadcast %cst_28 : f32 to vector<1x256xf32>
    %86 = arith.addf %84, %85 : vector<1x256xf32>
    %cst_29 = arith.constant 5.000000e-01 : f32
    %87 = vector.broadcast %cst_29 : f32 to vector<1x256xf32>
    %88 = arith.mulf %86, %87 : vector<1x256xf32>
    %cst_30 = arith.constant 7.000000e+00 : f32
    %89 = vector.broadcast %cst_30 : f32 to vector<1x256xf32>
    %90 = arith.mulf %88, %89 : vector<1x256xf32>
    %cst_31 = arith.constant 0.000000e+00 : f32
    %cst_32 = arith.constant 7.000000e+00 : f32
    %91 = vector.broadcast %cst_31 : f32 to vector<1x256xf32>
    %92 = arith.maximumf %91, %90 : vector<1x256xf32>
    %93 = vector.broadcast %cst_32 : f32 to vector<1x256xf32>
    %94 = arith.minimumf %93, %92 : vector<1x256xf32>
    %95 = math.floor %94 : vector<1x256xf32>
    %96 = arith.subf %94, %95 : vector<1x256xf32>
    %97 = arith.fptosi %95 : vector<1x256xf32> to vector<1x256xi32>
    %c1_i32_33 = arith.constant 1 : i32
    %98 = vector.broadcast %c1_i32_33 : i32 to vector<1x256xi32>
    %99 = arith.addi %97, %98 : vector<1x256xi32>
    %c7_i32_34 = arith.constant 7 : i32
    %100 = vector.broadcast %c7_i32_34 : i32 to vector<1x256xi32>
    %101 = arith.minsi %99, %100 : vector<1x256xi32>
    %102 = tpu.iota {dimensions = array<i32: 0>} : vector<8x256xi32>
    %103 = vector.broadcast %97 : vector<1x256xi32> to vector<8x256xi32>
    %104 = arith.cmpi eq, %102, %103 : vector<8x256xi32>
    %cst_35 = arith.constant 1.000000e+00 : f32
    %105 = vector.broadcast %cst_35 : f32 to vector<1x256xf32>
    %106 = arith.subf %105, %96 : vector<1x256xf32>
    %cst_36 = arith.constant 0.000000e+00 : f32
    %107 = vector.shape_cast %106 : vector<1x256xf32> to vector<1x256xf32>
    %108 = vector.broadcast %107 : vector<1x256xf32> to vector<8x256xf32>
    %109 = vector.broadcast %cst_36 : f32 to vector<8x256xf32>
    %110 = arith.select %104, %108, %109 : vector<8x256xi1>, vector<8x256xf32>
    %111 = vector.broadcast %101 : vector<1x256xi32> to vector<8x256xi32>
    %112 = arith.cmpi eq, %102, %111 : vector<8x256xi32>
    %cst_37 = arith.constant 0.000000e+00 : f32
    %113 = vector.shape_cast %96 : vector<1x256xf32> to vector<1x256xf32>
    %114 = vector.broadcast %113 : vector<1x256xf32> to vector<8x256xf32>
    %115 = vector.broadcast %cst_37 : f32 to vector<8x256xf32>
    %116 = arith.select %112, %114, %115 : vector<8x256xi1>, vector<8x256xf32>
    %117 = arith.addf %110, %116 : vector<8x256xf32>
    %c0_38 = arith.constant 0 : index
    %c0_39 = arith.constant 0 : index
    %c0_40 = arith.constant 0 : index
    %118 = vector.load %arg4[%c0_38, %c0_39, %c0_40] : memref<3x512x8xf32, #tpu.memory_space<vmem>>, vector<1x512x8xf32>
    %119 = vector.shape_cast %118 : vector<1x512x8xf32> to vector<512x8xf32>
    %cst_41 = arith.constant dense<0.000000e+00> : vector<512x256xf32>
    %120 = tpu.matmul %119, %117, %cst_41 {dimension_numbers = #tpu.dot_dimension_numbers<[1], [0], [0], [1], [0, 0, 1, 1], [], []>} : vector<512x8xf32>, vector<8x256xf32>, vector<512x256xf32> -> vector<512x256xf32>
    %c1 = arith.constant 1 : index
    %c0_42 = arith.constant 0 : index
    %c0_43 = arith.constant 0 : index
    %121 = vector.load %arg4[%c1, %c0_42, %c0_43] : memref<3x512x8xf32, #tpu.memory_space<vmem>>, vector<1x512x8xf32>
    %122 = vector.shape_cast %121 : vector<1x512x8xf32> to vector<512x8xf32>
    %cst_44 = arith.constant dense<0.000000e+00> : vector<512x256xf32>
    %123 = tpu.matmul %122, %79, %cst_44 {dimension_numbers = #tpu.dot_dimension_numbers<[1], [0], [0], [1], [0, 0, 1, 1], [], []>} : vector<512x8xf32>, vector<8x256xf32>, vector<512x256xf32> -> vector<512x256xf32>
    %c2 = arith.constant 2 : index
    %c0_45 = arith.constant 0 : index
    %c0_46 = arith.constant 0 : index
    %124 = vector.load %arg4[%c2, %c0_45, %c0_46] : memref<3x512x8xf32, #tpu.memory_space<vmem>>, vector<1x512x8xf32>
    %125 = vector.shape_cast %124 : vector<1x512x8xf32> to vector<512x8xf32>
    %cst_47 = arith.constant dense<0.000000e+00> : vector<512x256xf32>
    %126 = tpu.matmul %125, %41, %cst_47 {dimension_numbers = #tpu.dot_dimension_numbers<[1], [0], [0], [1], [0, 0, 1, 1], [], []>} : vector<512x8xf32>, vector<8x256xf32>, vector<512x256xf32> -> vector<512x256xf32>
    %127 = arith.mulf %120, %123 : vector<512x256xf32>
    %128 = arith.mulf %127, %126 : vector<512x256xf32>
    %129 = arith.truncf %128 : vector<512x256xf32> to vector<512x256xbf16>
    %cst_48 = arith.constant dense<0.000000e+00> : vector<128x256xf32>
    %130 = tpu.matmul %1, %129, %cst_48 {dimension_numbers = #tpu.dot_dimension_numbers<[1], [0], [0], [1], [0, 0, 1, 1], [], []>} : vector<128x512xbf16>, vector<512x256xbf16>, vector<128x256xf32> -> vector<128x256xf32>
    %131 = arith.truncf %130 : vector<128x256xf32> to vector<128x256xbf16>
    %c0_49 = arith.constant 0 : index
    %c0_50 = arith.constant 0 : index
    %132 = vector.load %arg7[%c0_49, %c0_50] : memref<512x1xf32, #tpu.memory_space<vmem>>, vector<512x1xf32>
    %c0_51 = arith.constant 0 : index
    %c0_52 = arith.constant 0 : index
    %133 = vector.load %arg8[%c0_51, %c0_52] : memref<512x1xf32, #tpu.memory_space<vmem>>, vector<512x1xf32>
    %c0_53 = arith.constant 0 : index
    %c0_54 = arith.constant 0 : index
    %134 = vector.load %arg5[%c0_53, %c0_54] : memref<512x128xbf16, #tpu.memory_space<vmem>>, vector<512x128xbf16>
    %cst_55 = arith.constant dense<0.000000e+00> : vector<512x256xf32>
    %135 = tpu.matmul %134, %131, %cst_55 {dimension_numbers = #tpu.dot_dimension_numbers<[1], [0], [0], [1], [0, 0, 1, 1], [], []>} : vector<512x128xbf16>, vector<128x256xbf16>, vector<512x256xf32> -> vector<512x256xf32>
    %136 = vector.broadcast %132 : vector<512x1xf32> to vector<512x256xf32>
    %137 = arith.addf %135, %136 : vector<512x256xf32>
    %cst_56 = arith.constant 0.000000e+00 : f32
    %138 = vector.broadcast %cst_56 : f32 to vector<512x256xf32>
    %139 = arith.maximumf %137, %138 : vector<512x256xf32>
    %140 = arith.truncf %139 : vector<512x256xf32> to vector<512x256xbf16>
    %c0_57 = arith.constant 0 : index
    %c0_58 = arith.constant 0 : index
    %141 = vector.load %arg6[%c0_57, %c0_58] : memref<512x512xbf16, #tpu.memory_space<vmem>>, vector<512x512xbf16>
    %cst_59 = arith.constant dense<0.000000e+00> : vector<512x256xf32>
    %142 = tpu.matmul %141, %140, %cst_59 {dimension_numbers = #tpu.dot_dimension_numbers<[1], [0], [0], [1], [0, 0, 1, 1], [], []>} : vector<512x512xbf16>, vector<512x256xbf16>, vector<512x256xf32> -> vector<512x256xf32>
    %143 = vector.broadcast %133 : vector<512x1xf32> to vector<512x256xf32>
    %144 = arith.addf %142, %143 : vector<512x256xf32>
    %cst_60 = arith.constant 0.000000e+00 : f32
    %145 = vector.broadcast %cst_60 : f32 to vector<512x256xf32>
    %146 = arith.maximumf %144, %145 : vector<512x256xf32>
    %147 = arith.truncf %146 : vector<512x256xf32> to vector<512x256xbf16>
    %c0_61 = arith.constant 0 : index
    %148 = memref.load %arg10[%c0_61] : memref<3xf32, #tpu.memory_space<smem>>
    %c1_62 = arith.constant 1 : index
    %149 = memref.load %arg10[%c1_62] : memref<3xf32, #tpu.memory_space<smem>>
    %c2_63 = arith.constant 2 : index
    %150 = memref.load %arg10[%c2_63] : memref<3xf32, #tpu.memory_space<smem>>
    %c0_64 = arith.constant 0 : index
    %c0_65 = arith.constant 0 : index
    %151 = vector.load %arg9[%c0_64, %c0_65] : memref<1x512xbf16, #tpu.memory_space<vmem>>, vector<1x512xbf16>
    %cst_66 = arith.constant dense<0.000000e+00> : vector<1x256xf32>
    %152 = tpu.matmul %151, %147, %cst_66 {dimension_numbers = #tpu.dot_dimension_numbers<[1], [0], [0], [1], [0, 0, 1, 1], [], []>} : vector<1x512xbf16>, vector<512x256xbf16>, vector<1x256xf32> -> vector<1x256xf32>
    %153 = vector.broadcast %148 : f32 to vector<1x256xf32>
    %154 = arith.addf %152, %153 : vector<1x256xf32>
    %cst_67 = arith.constant 0.000000e+00 : f32
    %155 = vector.broadcast %cst_67 : f32 to vector<1x256xf32>
    %156 = arith.maximumf %154, %155 : vector<1x256xf32>
    %157 = vector.broadcast %149 : f32 to vector<1x256xf32>
    %158 = arith.mulf %156, %157 : vector<1x256xf32>
    %159 = vector.broadcast %150 : f32 to vector<1x256xf32>
    %160 = arith.addf %158, %159 : vector<1x256xf32>
    %161 = vector.shape_cast %160 : vector<1x256xf32> to vector<1x1x256xf32>
    %c0_68 = arith.constant 0 : index
    %c0_69 = arith.constant 0 : index
    %c0_70 = arith.constant 0 : index
    %162 = vector.load %arg11[%c0_68, %c0_69, %c0_70] : memref<1x1x256xf32, #tpu.memory_space<vmem>>, vector<1x1x256xf32>
    tpu.vector_store %arg11[%c0_68, %c0_69, %c0_70], %161 {strides = array<i32>} : memref<1x1x256xf32, #tpu.memory_space<vmem>>, vector<1x1x256xf32>,
    return
  }
  func.func @transform_0(%arg0: i32, %arg1: i32) -> (i32, i32, i32) {
    %c0_i32 = arith.constant 0 : i32
    %c0_i32_0 = arith.constant 0 : i32
    %c0_i32_1 = arith.constant 0 : i32
    return %arg0, %c0_i32, %c0_i32_0 : i32, i32, i32
  }
  func.func @transform_1(%arg0: i32, %arg1: i32) -> (i32, i32, i32) {
    %c0_i32 = arith.constant 0 : i32
    %c0_i32_0 = arith.constant 0 : i32
    return %arg0, %c0_i32, %arg1 : i32, i32, i32
  }
  func.func @transform_2(%arg0: i32, %arg1: i32) -> (i32, i32, i32) {
    %c0_i32 = arith.constant 0 : i32
    %c0_i32_0 = arith.constant 0 : i32
    %c0_i32_1 = arith.constant 0 : i32
    %c0_i32_2 = arith.constant 0 : i32
    return %c0_i32, %c0_i32_0, %c0_i32_1 : i32, i32, i32
  }
  func.func @transform_3(%arg0: i32, %arg1: i32) -> (i32, i32) {
    %c0_i32 = arith.constant 0 : i32
    %c0_i32_0 = arith.constant 0 : i32
    %c0_i32_1 = arith.constant 0 : i32
    return %c0_i32, %c0_i32_0 : i32, i32
  }
  func.func @transform_4(%arg0: i32, %arg1: i32) -> (i32, i32) {
    %c0_i32 = arith.constant 0 : i32
    %c0_i32_0 = arith.constant 0 : i32
    %c0_i32_1 = arith.constant 0 : i32
    return %c0_i32, %c0_i32_0 : i32, i32
  }
  func.func @transform_5(%arg0: i32, %arg1: i32) -> (i32, i32) {
    %c0_i32 = arith.constant 0 : i32
    %c0_i32_0 = arith.constant 0 : i32
    %c0_i32_1 = arith.constant 0 : i32
    return %c0_i32, %c0_i32_0 : i32, i32
  }
  func.func @transform_6(%arg0: i32, %arg1: i32) -> (i32, i32) {
    %c0_i32 = arith.constant 0 : i32
    %c0_i32_0 = arith.constant 0 : i32
    %c0_i32_1 = arith.constant 0 : i32
    return %c0_i32, %c0_i32_0 : i32, i32
  }
  func.func @transform_7(%arg0: i32, %arg1: i32) -> (i32, i32) {
    %c0_i32 = arith.constant 0 : i32
    %c0_i32_0 = arith.constant 0 : i32
    %c0_i32_1 = arith.constant 0 : i32
    return %c0_i32, %c0_i32_0 : i32, i32
  }
  func.func @transform_8(%arg0: i32, %arg1: i32) -> i32 {
    %c0_i32 = arith.constant 0 : i32
    %c0_i32_0 = arith.constant 0 : i32
    return %c0_i32 : i32
  }
  func.func @transform_9(%arg0: i32, %arg1: i32) -> (i32, i32, i32) {
    %c0_i32 = arith.constant 0 : i32
    %c0_i32_0 = arith.constant 0 : i32
    return %arg0, %c0_i32, %arg1 : i32, i32, i32
  }
}

</mosaic_0001>

<bundles_post_ra>
// kernel: tpu_custom_call.1
= control target key start
LH: loop header
LB: loop body
LE: loop exit
PB: predicated region body
PF: predicated region fallthrough
CT: control target
= control target key end

     0   :  { %14 = vsyncpa [#allocation4], 0  ;;  %s11349_s0 = inlined_call_operand.vmem [shape: bf16[2,128,512], index: 0, kind: input, shape index: {}]   ;;  %s11350_s1 = inlined_call_operand.vmem [shape: f32[2,3,256], index: 1, kind: input, shape index: {}]   ;;  %s11351_s2 = inlined_call_operand.vmem [shape: f32[3,512,8], index: 2, kind: input, shape index: {}]   ;;  %s11352_s3 = inlined_call_operand.vmem [shape: bf16[512,128], index: 3, kind: input, shape index: {}]   ;;  %s11353_s4 = inlined_call_operand.vmem [shape: bf16[512,512], index: 4, kind: input, shape index: {}]   ;;  %s11354_s5 = inlined_call_operand.vmem [shape: f32[512,1], index: 5, kind: input, shape index: {}]   ;;  %s11355_s6 = inlined_call_operand.vmem [shape: f32[512,1], index: 6, kind: input, shape index: {}]   ;;  %s11356_s7 = inlined_call_operand.vmem [shape: bf16[1,512], index: 7, kind: input, shape index: {}]   ;;  %s11357_s8 = inlined_call_operand.vmem [shape: f32[3], index: 8, kind: input, shape index: {}]   ;;  %s11358_s9 = inlined_call_operand.hbm [shape: f32[2,1,256], index: 9, kind: output, shape index: {}]  }
   0x1   :  { %15 = vsyncpa [#allocation3], 0 }
   0x2   :  { %17 = vsyncpa [#allocation3 + $0x1], 0  ;;  %s8352_s30 = smov 0   ;;  %s8354_s10 = smov 0  }
   0x3   :  { %s8356_s11 = smov 0   ;;  %s8358_s12 = smov 0  }
   0x4   :  { %s8360_s13 = smov 0   ;;  %s8362_s14 = smov 0  }
   0x5 LB: > { %s7021_s15 = sadd.s32 4294967295, %s8295_s14   ;;  %s7022_s16 = sadd.s32 4294967294, %s8295_s14   ;;  %s8295_s14 = sphi %s8362_s14, %s23_s14   ;;  %s8291_s13 = sphi %s8360_s13, %s11584_s13   ;;  %s8287_s12 = sphi %s8358_s12, %s11583_s12   ;;  %s8283_s11 = sphi %s8356_s11, %s11582_s11   ;;  %s8279_s10 = sphi %s8354_s10, %s11581_s10   ;;  %s8275_s30 = sphi %s8352_s30, %s11580_s30  }
   0x6   : > { %s35_s17 = sadd.s32 1, %s8291_s13  ;;  %s245_s18 = sadd.s32 1, %s8283_s11 }
   0x7   : > { %p37_p0 = scmp.ge.s32.totalorder %s35_s17, 2  ;;  %p255_p1 = scmp.ne.s32.totalorder %s8283_s11, %s8279_s10 }
   0x8   : > { %p256_p2 = scmp.eq.s32.totalorder %s7021_s15, 1  ;;  %p261_p3 = scmp.ne.s32.totalorder %s8279_s10, %s8275_s30 }
   0x9   : > { %s11586_s17 = smov (%p37_p0, %s35_s17), 0  ;;  %p262_p5 = scmp.eq.s32.totalorder %s7022_s16, 1 }
   0xa   : > { %p8392_p4 = por %p256_p2, %p255_p1  ;;  %s240_s20 = ssub.s32 %s8291_s13, %s11586_s17 }
   0xb   : > { %p7023_p6 = scmp.ge.s32.totalorder %s8295_s14, 1  ;;  %p243_p7 = scmp.eq.s32.totalorder %s240_s20, 0 }
   0xc   : > { %p8399_p8 = por %p262_p5, %p261_p3  ;;  %p269_p9 = scmp.lt.s32.totalorder %s8295_s14, 3 }
   0xd   : > { %s8405_s22 = scalar_select %p243_p7, %s8283_s11, %s245_s18  }
   0xe   : > { %p8407_p10 = pnand %p7023_p6, %p269_p9  ;;  %p8411_p11 = scmp.eq.s32.totalorder %s7021_s15, 0 }
   0xf   : > { %s300_s27 = sshll.u32 %s11357_s8, 4  ;;  %s301_s27 = int_to_ptr.vmem [resolvable:$true] %s300_s27 }
  0x10   : > { %p7861_p12 = pneg %p8407_p10  ;;  %s8198_s28 = scalar_lea.vmem %s301_s27, 16 }
  0x11   : > { %p8199_p0 = scmp.ne.s32.totalorder %s301_s27, %s8198_s28  ;;  %p8206_p5 = scmp.lt.s32.totalorder %s301_s27, %s301_s27 }
  0x12   : > { %p7862_p13 = pnand %p8411_p11, %p7861_p12  ;;  %p8207_p6 = scmp.lt.s32.totalorder %s8198_s28, %s8198_s28 }
  0x14   : > { %p8200_p1 = pneg %p7862_p13  ;;  %p8208_p7 = por %p8207_p6, %p8206_p5 }
  0x16   : > { %p8201_p2 = pnand %p8200_p1, %p8199_p0 }
  0x18   : > { %p8202_p3 = pneg %p8201_p2 }
  0x1a   : > { %p8209_p9 = pnand %p8208_p7, %p8202_p3 }
  0x1c   : > { %8212 = shalt.err (!%p8209_p9)
}
  0x1d   : > { %s8297_s29 = smov [#allocation2]   ;;  %334 = sbr.rel (%p8407_p10) target bundleno = 2303 (0x8ff), region = 56 }
  0x1e   : > { %7864 = dma.vmem_to_smem (!%p7862_p13), %s301_s27, 16, %s8297_s29, [#allocation4]  }
  0x24   : > { %8266 = dma.done.wait (%p8411_p11), [#allocation4], 16  }
  0x25   : > { %8268 = vsyncadd (%p8411_p11), [#allocation4], 4294967280 }
  0x26   : > { %340 = sfence }
  0x27   : > { %p380_p12 = scmp.lt.s32.totalorder %s8287_s12, 1  ;;  %v8298_v0 = vmov 0.0   ;;  %v11359_v7 = vlaneseq  ;;  %v707_v42 = vld [vmem:[%s11351_s2 + $0xc8] sm:$0xff]  ;;  %vm746_vm5 = vcmask 64512   ;;  %v682_v43 = vld [vmem:[%s11351_s2] sm:$0xff]  ;;  %v708_v44 = vld [vmem:[%s11351_s2 + $0xd0] sm:$0xff] }
  0x28   : > { %1153 = vmatprep.mubr.f32.mxu1 %v8298_v0  ;;  %1003 = vmatprep.mubr.f32.mxu0 %v8298_v0  ;;  %v683_v45 = vld [vmem:[%s11351_s2 + $0x8] sm:$0xff]  ;;  %v709_v46 = vld [vmem:[%s11351_s2 + $0xd8] sm:$0xff]  ;;  %v684_v49 = vld [vmem:[%s11351_s2 + $0x10] sm:$0xff]  ;;  %s6757_s24 = sld [smem:[#allocation2]]  ;;  %s7546_s26 = sld [smem:[#allocation2 + $0x1]] }
  0x29   : > { %s381_s15 = scalar_select %p380_p12, %s8287_s12, 1  ;;  %v8441_v10 = vshrl.u32 %v11359_v7, 7  ;;  %v710_v58 = vld [vmem:[%s11351_s2 + $0xe0] sm:$0xff]  ;;  %v685_v62 = vld [vmem:[%s11351_s2 + $0x18] sm:$0xff] }
  0x2a   : > { %s7547_s28 = sld [smem:[#allocation2 + $0x2]]  ;;  %s377_s29 = sand.u32 1, %s8279_s10  }
  0x2b   : > { %s7555_s16 = sshll.u32 %s381_s15, 3  ;;  %s7554_s25 = sshll.u32 %s381_s15, 8  ;;  %11365 = vst [vmem:[#allocation8_spill] sm:$0xff] %v8441_v10  ;;  %v610_v14 = vsub.s32 6, %v8441_v10  ;;  %v606_v15 = vsub.s32 2, %v8441_v10  ;;  %v528_v47 = vsub.s32 1, %v8441_v10 }
  0x2c   : > { %s393_s23 = scalar_lea.vmem %s11350_s1, %s7555_s16  ;;  %s8438_s27 = scalar_lea.vmem %s11349_s0, %s7554_s25  ;;  %v532_v48 = vsub.s32 5, %v8441_v10 }
  0x2d   : > { %v429_v1 = vld [vmem:[%s393_s23] sm:$0x77]  ;;  %s7028_s15 = sshll.u32 %s377_s29, 1  ;;  %s7556_s16 = sshll.u32 %s8287_s12, 5 }
  0x2e   : > { %v430_v2 = vmul.f32 2.0, %v429_v1  ;;  %s379_s18 = scalar_lea.vmem [#allocation5], %s7028_s15  ;;  %s6905_s12 = scalar_lea.sflag [#allocation3], %s377_s29 }
  0x2f   : > { %s6921_s20 = sshll.u32 %s379_s18, 4  ;;  %s11304_s20 = int_to_ptr.vmem [resolvable:$true] %s6921_s20 }
  0x30   : > { %v7033_v3 = vadd.f32 -1.0, %v430_v2 }
  0x32   : > { %v432_v4 = vadd.f32 1.0, %v7033_v3 }
  0x34   : > { %v433_v5 = vmul.f32 0.5, %v432_v4 }
  0x36   : > { %v434_v6 = vmul.f32 7.0, %v433_v5 }
  0x38   : > { %v435_v8 = vmax.f32 %v434_v6, 0.0 }
  0x3a   : > { %v436_v9 = vmin.f32 %v435_v8, 7.0  ;;  %v711_v8 = vld [vmem:[%s11351_s2 + $0xe8] sm:$0xff] }
  0x3c   : > { %v437_v11 = vfloor.f32 %v436_v9 }
  0x3e   : > { %v8443_v12 = vsub.f32 %v436_v9, %v437_v11  ;;  %v7853_v13 = vtrunc.f32 %v437_v11 }
  0x40   : > { %v8447_v16 = vcvt.f32.s32 %v7853_v13  ;;  %v8450_v17 = vsub.f32 1.0, %v8443_v12  ;;  %v667_v21 = vrot.slane %v8443_v12, %v610_v14  ;;  %v663_v24 = vrot.slane %v8443_v12, %v606_v15  ;;  %v686_v13 = vld [vmem:[%s11351_s2 + $0x20] sm:$0xff] }
  0x41   : > { %v589_v53 = vrot.slane %v8443_v12, %v532_v48  ;;  %v585_v57 = vrot.slane %v8443_v12, %v528_v47 }
  0x42   : > { %v440_v18 = vadd.s32 1, %v8447_v16  ;;  %v611_v19 = vrot.slane %v8447_v16, %v610_v14  ;;  %v629_v20 = vrot.slane %v8450_v17, %v610_v14  ;;  %v607_v22 = vrot.slane %v8447_v16, %v606_v15 }
  0x43   : > { %v625_v23 = vrot.slane %v8450_v17, %v606_v15  ;;  %v677_v32 = vrot.slane %v667_v21, %v606_v15  ;;  %v673_v33 = vrot.slane %v663_v24, %v606_v15  ;;  %v533_v50 = vrot.slane %v8447_v16, %v532_v48  ;;  %v713_v24 = vld [vmem:[%s11351_s2 + $0xf8] sm:$0xff] }
  0x44   : > { %vm441_vm0 = vcmp.lt.s32.totalorder %v440_v18, 7  ;;  %v619_v25 = vrot.slane %v611_v19, %v606_v15  ;;  %v639_v27 = vrot.slane %v629_v20, %v606_v15  ;;  %v615_v28 = vrot.slane %v607_v22, %v606_v15  ;;  %v687_v19 = vld [vmem:[%s11351_s2 + $0x28] sm:$0xff] }
  0x45   : > { %v8459_v26 = vsel %vm441_vm0, %v440_v18, 7  ;;  %v635_v29 = vrot.slane %v625_v23, %v606_v15  ;;  %v551_v51 = vrot.slane %v8450_v17, %v532_v48  ;;  %v529_v54 = vrot.slane %v8447_v16, %v528_v47  ;;  %v712_v18 = vld [vmem:[%s11351_s2 + $0xf0] sm:$0xff] }
  0x46   : > { %vm621_vm1 = vcmp.eq.s32.totalorder %v8441_v10, %v619_v25  ;;  %v649_v30 = vrot.slane %v8459_v26, %v610_v14  ;;  %v645_v31 = vrot.slane %v8459_v26, %v606_v15  ;;  %vm620_vm2 = vcmp.eq.s32.totalorder %v8441_v10, %v615_v28 }
  0x47   : > { %v641_v36 = vsel %vm621_vm1, %v639_v27, 0.0  ;;  %v640_v37 = vsel %vm620_vm2, %v635_v29, 0.0  ;;  %v571_v52 = vrot.slane %v8459_v26, %v532_v48  ;;  %v547_v55 = vrot.slane %v8450_v17, %v528_v47  ;;  %v688_v29 = vld [vmem:[%s11351_s2 + $0x30] sm:$0xff]  ;;  %v691_v48 = vld [vmem:[%s11351_s2 + $0x48] sm:$0xff] }
  0x48   : > { %v657_v34 = vrot.slane %v649_v30, %v606_v15  ;;  %v653_v35 = vrot.slane %v645_v31, %v606_v15  ;;  %v567_v56 = vrot.slane %v8459_v26, %v528_v47  ;;  %v541_v59 = vrot.slane %v533_v50, %v528_v47  ;;  %v692_v50 = vld [vmem:[%s11351_s2 + $0x50] sm:$0xff] }
  0x49   : > { %v561_v60 = vrot.slane %v551_v51, %v528_v47  ;;  %v579_v61 = vrot.slane %v571_v52, %v528_v47  ;;  %v599_v63 = vrot.slane %v589_v53, %v528_v47  ;;  %v537_v1 = vrot.slane %v529_v54, %v528_v47  ;;  %v718_v51 = vld [vmem:[%s11351_s2 + $0x120] sm:$0xff]  ;;  %v693_v52 = vld [vmem:[%s11351_s2 + $0x58] sm:$0xff]  ;;  %v719_v53 = vld [vmem:[%s11351_s2 + $0x128] sm:$0xff] }
  0x4a   : > { %vm659_vm3 = vcmp.eq.s32.totalorder %v8441_v10, %v657_v34  ;;  %vm658_vm4 = vcmp.eq.s32.totalorder %v8441_v10, %v653_v35  ;;  %v557_v2 = vrot.slane %v547_v55, %v528_v47  ;;  %vm543_vm6 = vcmp.eq.s32.totalorder %v8441_v10, %v541_v59  ;;  %v694_v54 = vld [vmem:[%s11351_s2 + $0x60] sm:$0xff]  ;;  %v720_v55 = vld [vmem:[%s11351_s2 + $0x130] sm:$0xff] }
  0x4b   : > { %v679_v38 = vsel %vm659_vm3, %v677_v32, 0.0  ;;  %v678_v39 = vsel %vm658_vm4, %v673_v33, 0.0  ;;  %vm581_vm7 = vcmp.eq.s32.totalorder %v8441_v10, %v579_v61  ;;  %v575_v3 = vrot.slane %v567_v56, %v528_v47  ;;  %v695_v56 = vld [vmem:[%s11351_s2 + $0x68] sm:$0xff]  ;;  %v722_v59 = vld [vmem:[%s11351_s2 + $0x140] sm:$0xff] }
  0x4c   : > { %v681_v40 = vadd.f32 %v679_v38, %v641_v36  ;;  %v680_v41 = vadd.f32 %v678_v39, %v640_v37  ;;  %v595_v4 = vrot.slane %v585_v57, %v528_v47  ;;  %v563_v5 = vsel %vm543_vm6, %v561_v60, 0.0  ;;  %v714_v38 = vld [vmem:[%s11351_s2 + $0x100] sm:$0xff]  ;;  %v716_v47 = vld [vmem:[%s11351_s2 + $0x110] sm:$0xff]  ;;  %v721_v57 = vld [vmem:[%s11351_s2 + $0x138] sm:$0xff] }
  0x4d   : > { %v601_v6 = vsel %vm581_vm7, %v599_v63, 0.0  ;;  %vm542_vm8 = vcmp.eq.s32.totalorder %v8441_v10, %v537_v1  ;;  %vm580_vm9 = vcmp.eq.s32.totalorder %v8441_v10, %v575_v3  ;;  %v451_v20 = vsub.s32 4, %v8441_v10  ;;  %v697_v60 = vld [vmem:[%s11351_s2 + $0x78] sm:$0xff]  ;;  %v723_v61 = vld [vmem:[%s11351_s2 + $0x148] sm:$0xff]  ;;  %v724_v63 = vld [vmem:[%s11351_s2 + $0x150] sm:$0xff] }
  0x4e   : > { %7557 = vmatprep.subr.mxu1 %v681_v40  ;;  %939 = vmatprep.subr.mxu0 %v681_v40  ;;  %v603_v9 = vadd.f32 %v601_v6, %v563_v5  ;;  %v562_v11 = vsel %vm542_vm8, %v557_v2, 0.0  ;;  %v600_v14 = vsel %vm580_vm9, %v595_v4, 0.0  ;;  %v447_v21 = vsub.s32 0, %v8441_v10  ;;  %v699_v1 = vld [vmem:[%s11351_s2 + $0x88] sm:$0xff]  ;;  %v725_v2 = vld [vmem:[%s11351_s2 + $0x158] sm:$0xff]  ;;  %v700_v3 = vld [vmem:[%s11351_s2 + $0x90] sm:$0xff] }
  0x4f   : > { %7558 = vmatpush1.msra.mxu1 %v680_v41  ;;  %940 = vmatpush1.msra.mxu0 %v680_v41  ;;  %v602_v15 = vadd.f32 %v600_v14, %v562_v11  ;;  %v452_v22 = vrot.slane %v8447_v16, %v451_v20  ;;  %v492_v23 = vrot.slane %v8459_v26, %v451_v20  ;;  %v726_v4 = vld [vmem:[%s11351_s2 + $0x160] sm:$0xff]  ;;  %v701_v5 = vld [vmem:[%s11351_s2 + $0x98] sm:$0xff]  ;;  %v727_v6 = vld [vmem:[%s11351_s2 + $0x168] sm:$0xff] }
  0x50   : > { %7059 = vmatmul.mubr.msk.f32.vlgmr.msra.gmra.mrb[0].mxu1 %vm746_vm5, %v707_v42  ;;  %7034 = vmatmul.mubr.msk.f32.vlgmr.msra.gmra.mrb[0].mxu0 %vm746_vm5, %v682_v43  ;;  %v472_v25 = vrot.slane %v8450_v17, %v451_v20  ;;  %v511_v27 = vrot.slane %v8443_v12, %v451_v20  ;;  %v448_v28 = vrot.slane %v8447_v16, %v447_v21  ;;  %v703_v11 = vld [vmem:[%s11351_s2 + $0xa8] sm:$0xff]  ;;  %v704_v14 = vld [vmem:[%s11351_s2 + $0xb0] sm:$0xff]  ;;  %v706_v20 = vld [vmem:[%s11351_s2 + $0xc0] sm:$0xff] }
  0x51   : > { %1159 = vmatprep.mubr.f32.mxu1 %v8298_v0  ;;  %1009 = vmatprep.mubr.f32.mxu0 %v8298_v0  ;;  %v460_v30 = vrot.slane %v452_v22, %v447_v21  ;;  %v500_v31 = vrot.slane %v492_v23, %v447_v21  ;;  %v468_v32 = vrot.slane %v8450_v17, %v447_v21  ;;  %v7226_v22 = vld [vmem:[%s11351_s2 + $0x400] sm:$0xff]  ;;  %v733_v23 = vld [vmem:[%s11351_s2 + $0x198] sm:$0xff] }
  0x52   : > { %1645 = vmatprep.subr.mxu1 %v603_v9  ;;  %v482_v33 = vrot.slane %v472_v25, %v447_v21  ;;  %v521_v34 = vrot.slane %v511_v27, %v447_v21  ;;  %v456_v35 = vrot.slane %v448_v28, %v447_v21  ;;  %v488_v36 = vrot.slane %v8459_v26, %v447_v21  ;;  %v728_v9 = vld [vmem:[%s11351_s2 + $0x170] sm:$0xff]  ;;  %v734_v25 = vld [vmem:[%s11351_s2 + $0x1a0] sm:$0xff]  ;;  %v735_v28 = vld [vmem:[%s11351_s2 + $0x1a8] sm:$0xff] }
  0x53   : > { %1646 = vmatpush1.msra.mxu1 %v602_v15  ;;  %vm462_vm10 = vcmp.eq.s32.totalorder %v8441_v10, %v460_v30  ;;  %vm502_vm11 = vcmp.eq.s32.totalorder %v8441_v10, %v500_v31  ;;  %v478_v16 = vrot.slane %v468_v32, %v447_v21  ;;  %v507_v37 = vrot.slane %v8443_v12, %v447_v21  ;;  %v689_v12 = vld [vmem:[%s11351_s2 + $0x38] sm:$0xff]  ;;  %v730_v15 = vld [vmem:[%s11351_s2 + $0x180] sm:$0xff]  ;;  %v7228_v27 = vld [vmem:[%s11351_s2 + $0x410] sm:$0xff] }
  0x54   : > { %7060 = vmatmul.mubr.msk.f32.gmra.mrb[2].mxu1 %vm746_vm5, %v708_v44  ;;  %7035 = vmatmul.mubr.msk.f32.gmra.mrb[2].mxu0 %vm746_vm5, %v683_v45  ;;  %v484_v17 = vsel %vm462_vm10, %v482_v33, 0.0  ;;  %v523_v39 = vsel %vm502_vm11, %v521_v34, 0.0  ;;  %vm461_vm12 = vcmp.eq.s32.totalorder %v8441_v10, %v456_v35  ;;  %v496_v26 = vrot.slane %v488_v36, %v447_v21  ;;  %v715_v44 = vld [vmem:[%s11351_s2 + $0x108] sm:$0xff]  ;;  %v736_v30 = vld [vmem:[%s11351_s2 + $0x1b0] sm:$0xff]  ;;  %v7230_v31 = vld [vmem:[%s11351_s2 + $0x420] sm:$0xff] }
  0x55   : > { %1165 = vmatprep.mubr.f32.mxu1 %v8298_v0  ;;  %1015 = vmatprep.mubr.f32.mxu0 %v8298_v0  ;;  %v525_v40 = vadd.f32 %v523_v39, %v484_v17  ;;  %v483_v41 = vsel %vm461_vm12, %v478_v16, 0.0  ;;  %v517_v42 = vrot.slane %v507_v37, %v447_v21  ;;  %v732_v21 = vld [vmem:[%s11351_s2 + $0x190] sm:$0xff]  ;;  %v737_v32 = vld [vmem:[%s11351_s2 + $0x1b8] sm:$0xff]  ;;  %v7231_v33 = vld [vmem:[%s11351_s2 + $0x428] sm:$0xff] }
  0x56   : > { %vm501_vm13 = vcmp.eq.s32.totalorder %v8441_v10, %v496_v26  ;;  %v738_v34 = vld [vmem:[%s11351_s2 + $0x1c0] sm:$0xff]  ;;  %v7232_v35 = vld [vmem:[%s11351_s2 + $0x430] sm:$0xff]  ;;  %v739_v36 = vld [vmem:[%s11351_s2 + $0x1c8] sm:$0xff] }
  0x57   : > { %2351 = vmatprep.subr.mxu0 %v525_v40  ;;  %v522_v43 = vsel %vm501_vm13, %v517_v42, 0.0  ;;  %v7233_v16 = vld [vmem:[%s11351_s2 + $0x438] sm:$0xff]  ;;  %v740_v37 = vld [vmem:[%s11351_s2 + $0x1d0] sm:$0xff]  ;;  %v7235_v39 = vld [vmem:[%s11351_s2 + $0x448] sm:$0xff] }
  0x58   : > { %7061 = vmatmul.mubr.msk.f32.gmra.mrb[4].mxu1 %vm746_vm5, %v709_v46  ;;  %7036 = vmatmul.mubr.msk.f32.gmra.mrb[4].mxu0 %vm746_vm5, %v684_v49  ;;  %v524_v45 = vadd.f32 %v522_v43, %v483_v41  ;;  %v690_v46 = vld [vmem:[%s11351_s2 + $0x40] sm:$0xff]  ;;  %v717_v49 = vld [vmem:[%s11351_s2 + $0x118] sm:$0xff]  ;;  %v743_v40 = vld [vmem:[%s11351_s2 + $0x1e8] sm:$0xff] }
  0x59   : > { %1171 = vmatprep.mubr.f32.mxu1 %v8298_v0  ;;  %1021 = vmatprep.mubr.f32.mxu0 %v8298_v0  ;;  %v741_v17 = vld [vmem:[%s11351_s2 + $0x1d8] sm:$0xff]  ;;  %v742_v26 = vld [vmem:[%s11351_s2 + $0x1e0] sm:$0xff]  ;;  %v744_v42 = vld [vmem:[%s11351_s2 + $0x1f0] sm:$0xff] }
  0x5a   : > { %2352 = vmatpush1.msra.mxu0 %v524_v45  ;;  %v7237_v41 = vld [vmem:[%s11351_s2 + $0x458] sm:$0xff]  ;;  %v7238_v43 = vld [vmem:[%s11351_s2 + $0x460] sm:$0xff]  ;;  %v7239_v45 = vld [vmem:[%s11351_s2 + $0x468] sm:$0xff] }
  0x5b   : > { %v7127_v10 = vld [vmem:[%s11351_s2 + $0x2e8] sm:$0xff] }
  0x5c   : > { %7062 = vmatmul.mubr.msk.f32.gmra.mrb[6].mxu1 %vm746_vm5, %v710_v58  ;;  %7037 = vmatmul.mubr.msk.f32.gmra.mrb[6].mxu0 %vm746_vm5, %v685_v62  ;;  %v696_v58 = vld [vmem:[%s11351_s2 + $0x70] sm:$0xff]  ;;  %v698_v62 = vld [vmem:[%s11351_s2 + $0x80] sm:$0xff] }
  0x5d   : > { %1177 = vmatprep.mubr.f32.mxu1 %v8298_v0  ;;  %1027 = vmatprep.mubr.f32.mxu0 %v8298_v0 }
  0x60   : > { %7063 = vmatmul.mubr.msk.f32.gmra.mrb[8].mxu1 %vm746_vm5, %v711_v8  ;;  %7038 = vmatmul.mubr.msk.f32.gmra.mrb[8].mxu0 %vm746_vm5, %v686_v13  ;;  %v702_v8 = vld [vmem:[%s11351_s2 + $0xa0] sm:$0xff]  ;;  %v729_v13 = vld [vmem:[%s11351_s2 + $0x178] sm:$0xff] }
  0x61   : > { %1183 = vmatprep.mubr.f32.mxu1 %v8298_v0  ;;  %1033 = vmatprep.mubr.f32.mxu0 %v8298_v0 }
  0x64   : > { %7064 = vmatmul.mubr.msk.f32.gmra.mrb[10].mxu1 %vm746_vm5, %v712_v18  ;;  %7039 = vmatmul.mubr.msk.f32.gmra.mrb[10].mxu0 %vm746_vm5, %v687_v19  ;;  %v705_v18 = vld [vmem:[%s11351_s2 + $0xb8] sm:$0xff]  ;;  %v731_v19 = vld [vmem:[%s11351_s2 + $0x188] sm:$0xff] }
  0x65   : > { %1189 = vmatprep.mubr.f32.mxu1 %v8298_v0  ;;  %1039 = vmatprep.mubr.f32.mxu0 %v8298_v0 }
  0x68   : > { %7065 = vmatmul.mubr.msk.f32.gmra.mrb[12].mxu1 %vm746_vm5, %v713_v24  ;;  %7040 = vmatmul.mubr.msk.f32.gmra.mrb[12].mxu0 %vm746_vm5, %v688_v29  ;;  %v7227_v24 = vld [vmem:[%s11351_s2 + $0x408] sm:$0xff]  ;;  %v7229_v29 = vld [vmem:[%s11351_s2 + $0x418] sm:$0xff] }
  0x69   : > { %1195 = vmatprep.mubr.f32.mxu1 %v8298_v0  ;;  %1045 = vmatprep.mubr.f32.mxu0 %v8298_v0 }
  0x6c   : > { %7066 = vmatmul.mubr.msk.f32.gmra.mrb[14].mxu1 %vm746_vm5, %v714_v38  ;;  %7041 = vmatmul.mubr.msk.f32.gmra.mrb[14].mxu0 %vm746_vm5, %v689_v12  ;;  %v7234_v38 = vld [vmem:[%s11351_s2 + $0x440] sm:$0xff]  ;;  %v7236_v12 = vld [vmem:[%s11351_s2 + $0x450] sm:$0xff] }
  0x6d   : > { %1201 = vmatprep.mubr.f32.mxu1 %v8298_v0  ;;  %1051 = vmatprep.mubr.f32.mxu0 %v8298_v0 }
  0x70   : > { %7067 = vmatmul.mubr.msk.f32.gmra.mrb[16].mxu1 %vm746_vm5, %v715_v44  ;;  %7042 = vmatmul.mubr.msk.f32.gmra.mrb[16].mxu0 %vm746_vm5, %v690_v46  ;;  %v745_v44 = vld [vmem:[%s11351_s2 + $0x1f8] sm:$0xff]  ;;  %v7098_v46 = vld [vmem:[%s11351_s2 + $0x200] sm:$0xff] }
  0x71   : > { %1207 = vmatprep.mubr.f32.mxu1 %v8298_v0  ;;  %1057 = vmatprep.mubr.f32.mxu0 %v8298_v0 }
  0x74   : > { %7068 = vmatmul.mubr.msk.f32.gmra.mrb[18].mxu1 %vm746_vm5, %v716_v47  ;;  %7043 = vmatmul.mubr.msk.f32.gmra.mrb[18].mxu0 %vm746_vm5, %v691_v48  ;;  %v7240_v47 = vld [vmem:[%s11351_s2 + $0x470] sm:$0xff]  ;;  %v7099_v48 = vld [vmem:[%s11351_s2 + $0x208] sm:$0xff] }
  0x75   : > { %1213 = vmatprep.mubr.f32.mxu1 %v8298_v0  ;;  %1063 = vmatprep.mubr.f32.mxu0 %v8298_v0 }
  0x78   : > { %7069 = vmatmul.mubr.msk.f32.gmra.mrb[20].mxu1 %vm746_vm5, %v717_v49  ;;  %7044 = vmatmul.mubr.msk.f32.gmra.mrb[20].mxu0 %vm746_vm5, %v692_v50  ;;  %v7241_v49 = vld [vmem:[%s11351_s2 + $0x478] sm:$0xff]  ;;  %v7100_v50 = vld [vmem:[%s11351_s2 + $0x210] sm:$0xff] }
  0x79   : > { %1219 = vmatprep.mubr.f32.mxu1 %v8298_v0  ;;  %1069 = vmatprep.mubr.f32.mxu0 %v8298_v0 }
  0x7c   : > { %7070 = vmatmul.mubr.msk.f32.gmra.mrb[22].mxu1 %vm746_vm5, %v718_v51  ;;  %7045 = vmatmul.mubr.msk.f32.gmra.mrb[22].mxu0 %vm746_vm5, %v693_v52  ;;  %v7242_v51 = vld [vmem:[%s11351_s2 + $0x480] sm:$0xff]  ;;  %v7101_v52 = vld [vmem:[%s11351_s2 + $0x218] sm:$0xff] }
  0x7d   : > { %1225 = vmatprep.mubr.f32.mxu1 %v8298_v0  ;;  %1075 = vmatprep.mubr.f32.mxu0 %v8298_v0 }
  0x80   : > { %7071 = vmatmul.mubr.msk.f32.gmra.mrb[24].mxu1 %vm746_vm5, %v719_v53  ;;  %7046 = vmatmul.mubr.msk.f32.gmra.mrb[24].mxu0 %vm746_vm5, %v694_v54  ;;  %v7243_v53 = vld [vmem:[%s11351_s2 + $0x488] sm:$0xff]  ;;  %v7102_v54 = vld [vmem:[%s11351_s2 + $0x220] sm:$0xff] }
  0x81   : > { %1231 = vmatprep.mubr.f32.mxu1 %v8298_v0  ;;  %1081 = vmatprep.mubr.f32.mxu0 %v8298_v0 }
  0x84   : > { %7072 = vmatmul.mubr.msk.f32.gmra.mrb[26].mxu1 %vm746_vm5, %v720_v55  ;;  %7047 = vmatmul.mubr.msk.f32.gmra.mrb[26].mxu0 %vm746_vm5, %v695_v56  ;;  %v7244_v55 = vld [vmem:[%s11351_s2 + $0x490] sm:$0xff]  ;;  %v7103_v56 = vld [vmem:[%s11351_s2 + $0x228] sm:$0xff] }
  0x85   : > { %1237 = vmatprep.mubr.f32.mxu1 %v8298_v0  ;;  %1087 = vmatprep.mubr.f32.mxu0 %v8298_v0 }
  0x88   : > { %7073 = vmatmul.mubr.msk.f32.gmra.mrb[28].mxu1 %vm746_vm5, %v721_v57  ;;  %7048 = vmatmul.mubr.msk.f32.gmra.mrb[28].mxu0 %vm746_vm5, %v696_v58  ;;  %v7245_v57 = vld [vmem:[%s11351_s2 + $0x498] sm:$0xff]  ;;  %v7104_v58 = vld [vmem:[%s11351_s2 + $0x230] sm:$0xff] }
  0x89   : > { %1243 = vmatprep.mubr.f32.mxu1 %v8298_v0  ;;  %1093 = vmatprep.mubr.f32.mxu0 %v8298_v0 }
  0x8c   : > { %7074 = vmatmul.mubr.msk.f32.gmra.mrb[30].mxu1 %vm746_vm5, %v722_v59  ;;  %7049 = vmatmul.mubr.msk.f32.gmra.mrb[30].mxu0 %vm746_vm5, %v697_v60  ;;  %v7246_v59 = vld [vmem:[%s11351_s2 + $0x4a0] sm:$0xff]  ;;  %v7105_v60 = vld [vmem:[%s11351_s2 + $0x238] sm:$0xff] }
  0x8d   : > { %1249 = vmatprep.mubr.f32.mxu1 %v8298_v0  ;;  %1099 = vmatprep.mubr.f32.mxu0 %v8298_v0 }
  0x90   : > { %7075 = vmatmul.mubr.msk.f32.gmra.mrb[32].mxu1 %vm746_vm5, %v723_v61  ;;  %7050 = vmatmul.mubr.msk.f32.gmra.mrb[32].mxu0 %vm746_vm5, %v698_v62  ;;  %v7247_v61 = vld [vmem:[%s11351_s2 + $0x4a8] sm:$0xff]  ;;  %v7106_v62 = vld [vmem:[%s11351_s2 + $0x240] sm:$0xff] }
  0x91   : > { %1255 = vmatprep.mubr.f32.mxu1 %v8298_v0  ;;  %1105 = vmatprep.mubr.f32.mxu0 %v8298_v0 }
  0x94   : > { %7076 = vmatmul.mubr.msk.f32.gmra.mrb[34].mxu1 %vm746_vm5, %v724_v63  ;;  %7051 = vmatmul.mubr.msk.f32.gmra.mrb[34].mxu0 %vm746_vm5, %v699_v1  ;;  %v7248_v63 = vld [vmem:[%s11351_s2 + $0x4b0] sm:$0xff]  ;;  %v7107_v1 = vld [vmem:[%s11351_s2 + $0x248] sm:$0xff] }
  0x95   : > { %1261 = vmatprep.mubr.f32.mxu1 %v8298_v0  ;;  %1111 = vmatprep.mubr.f32.mxu0 %v8298_v0 }
  0x98   : > { %7077 = vmatmul.mubr.msk.f32.gmra.mrb[36].mxu1 %vm746_vm5, %v725_v2  ;;  %7052 = vmatmul.mubr.msk.f32.gmra.mrb[36].mxu0 %vm746_vm5, %v700_v3  ;;  %v7249_v2 = vld [vmem:[%s11351_s2 + $0x4b8] sm:$0xff]  ;;  %v7108_v3 = vld [vmem:[%s11351_s2 + $0x250] sm:$0xff] }
  0x99   : > { %1267 = vmatprep.mubr.f32.mxu1 %v8298_v0  ;;  %1117 = vmatprep.mubr.f32.mxu0 %v8298_v0 }
  0x9c   : > { %7078 = vmatmul.mubr.msk.f32.gmra.mrb[38].mxu1 %vm746_vm5, %v726_v4  ;;  %7053 = vmatmul.mubr.msk.f32.gmra.mrb[38].mxu0 %vm746_vm5, %v701_v5  ;;  %v7250_v4 = vld [vmem:[%s11351_s2 + $0x4c0] sm:$0xff]  ;;  %v7109_v5 = vld [vmem:[%s11351_s2 + $0x258] sm:$0xff] }
  0x9d   : > { %1273 = vmatprep.mubr.f32.mxu1 %v8298_v0  ;;  %1123 = vmatprep.mubr.f32.mxu0 %v8298_v0 }
  0xa0   : > { %7079 = vmatmul.mubr.msk.f32.gmra.mrb[40].mxu1 %vm746_vm5, %v727_v6  ;;  %7054 = vmatmul.mubr.msk.f32.gmra.mrb[40].mxu0 %vm746_vm5, %v702_v8  ;;  %v7251_v6 = vld [vmem:[%s11351_s2 + $0x4c8] sm:$0xff]  ;;  %v7110_v8 = vld [vmem:[%s11351_s2 + $0x260] sm:$0xff] }
  0xa1   : > { %1279 = vmatprep.mubr.f32.mxu1 %v8298_v0  ;;  %1129 = vmatprep.mubr.f32.mxu0 %v8298_v0 }
  0xa4   : > { %7080 = vmatmul.mubr.msk.f32.gmra.mrb[42].mxu1 %vm746_vm5, %v728_v9  ;;  %7055 = vmatmul.mubr.msk.f32.gmra.mrb[42].mxu0 %vm746_vm5, %v703_v11  ;;  %v7252_v9 = vld [vmem:[%s11351_s2 + $0x4d0] sm:$0xff]  ;;  %v7111_v11 = vld [vmem:[%s11351_s2 + $0x268] sm:$0xff] }
  0xa5   : > { %1285 = vmatprep.mubr.f32.mxu1 %v8298_v0  ;;  %1135 = vmatprep.mubr.f32.mxu0 %v8298_v0 }
  0xa8   : > { %7081 = vmatmul.mubr.msk.f32.gmra.mrb[44].mxu1 %vm746_vm5, %v729_v13  ;;  %7056 = vmatmul.mubr.msk.f32.gmra.mrb[44].mxu0 %vm746_vm5, %v704_v14  ;;  %v7253_v13 = vld [vmem:[%s11351_s2 + $0x4d8] sm:$0xff]  ;;  %v7112_v14 = vld [vmem:[%s11351_s2 + $0x270] sm:$0xff] }
  0xa9   : > { %1291 = vmatprep.mubr.f32.mxu1 %v8298_v0  ;;  %1141 = vmatprep.mubr.f32.mxu0 %v8298_v0 }
  0xac   : > { %7082 = vmatmul.mubr.msk.f32.gmra.mrb[46].mxu1 %vm746_vm5, %v730_v15  ;;  %7057 = vmatmul.mubr.msk.f32.gmra.mrb[46].mxu0 %vm746_vm5, %v705_v18  ;;  %v7254_v15 = vld [vmem:[%s11351_s2 + $0x4e0] sm:$0xff] }
  0xad   : > { %1297 = vmatprep.mubr.f32.mxu1 %v8298_v0  ;;  %1147 = vmatprep.mubr.f32.mxu0 %v8298_v0 }
  0xb0   : > { %7083 = vmatmul.mubr.msk.f32.gmra.mrb[48].mxu1 %vm746_vm5, %v731_v19  ;;  %7058 = vmatmul.mubr.msk.f32.gmra.mrb[48].mxu0 %vm746_vm5, %v706_v20 }
  0xb1   : > { %1303 = vmatprep.mubr.f32.mxu1 %v8298_v0  ;;  %2415 = vmatprep.mubr.f32.mxu0 %v8298_v0 }
  0xb4   : > { %7084 = vmatmul.mubr.msk.f32.gmra.mrb[50].mxu1 %vm746_vm5, %v732_v21  ;;  %7290 = vmatmul.mubr.msk.f32.vlgmr.msra.gmra.mrb[50].mxu0 %vm746_vm5, %v7226_v22  ;;  %v7113_v22 = vld [vmem:[%s11351_s2 + $0x278] sm:$0xff] }
  0xb5   : > { %1309 = vmatprep.mubr.f32.mxu1 %v8298_v0  ;;  %2421 = vmatprep.mubr.f32.mxu0 %v8298_v0 }
  0xb8   : > { %7085 = vmatmul.mubr.msk.f32.gmra.mrb[52].mxu1 %vm746_vm5, %v733_v23  ;;  %7291 = vmatmul.mubr.msk.f32.gmra.mrb[52].mxu0 %vm746_vm5, %v7227_v24  ;;  %v7255_v23 = vld [vmem:[%s11351_s2 + $0x4e8] sm:$0xff] }
  0xb9   : > { %1315 = vmatprep.mubr.f32.mxu1 %v8298_v0  ;;  %2427 = vmatprep.mubr.f32.mxu0 %v8298_v0 }
  0xbc   : > { %7086 = vmatmul.mubr.msk.f32.gmra.mrb[54].mxu1 %vm746_vm5, %v734_v25  ;;  %7292 = vmatmul.mubr.msk.f32.gmra.mrb[54].mxu0 %vm746_vm5, %v7228_v27 }
  0xbd   : > { %1321 = vmatprep.mubr.f32.mxu1 %v8298_v0  ;;  %2433 = vmatprep.mubr.f32.mxu0 %v8298_v0 }
  0xc0   : > { %7087 = vmatmul.mubr.msk.f32.gmra.mrb[56].mxu1 %vm746_vm5, %v735_v28  ;;  %7293 = vmatmul.mubr.msk.f32.gmra.mrb[56].mxu0 %vm746_vm5, %v7229_v29  ;;  %v7114_v29 = vld [vmem:[%s11351_s2 + $0x280] sm:$0xff] }
  0xc1   : > { %1327 = vmatprep.mubr.f32.mxu1 %v8298_v0  ;;  %2439 = vmatprep.mubr.f32.mxu0 %v8298_v0 }
  0xc4   : > { %7088 = vmatmul.mubr.msk.f32.gmra.mrb[58].mxu1 %vm746_vm5, %v736_v30  ;;  %7294 = vmatmul.mubr.msk.f32.gmra.mrb[58].mxu0 %vm746_vm5, %v7230_v31  ;;  %v7256_v30 = vld [vmem:[%s11351_s2 + $0x4f0] sm:$0xff] }
  0xc5   : > { %1333 = vmatprep.mubr.f32.mxu1 %v8298_v0  ;;  %2445 = vmatprep.mubr.f32.mxu0 %v8298_v0 }
  0xc8   : > { %7089 = vmatmul.mubr.msk.f32.gmra.mrb[60].mxu1 %vm746_vm5, %v737_v32  ;;  %7295 = vmatmul.mubr.msk.f32.gmra.mrb[60].mxu0 %vm746_vm5, %v7231_v33 }
  0xc9   : > { %1339 = vmatprep.mubr.f32.mxu1 %v8298_v0  ;;  %2451 = vmatprep.mubr.f32.mxu0 %v8298_v0 }
  0xcc   : > { %7090 = vmatmul.mubr.msk.f32.gmra.mrb[62].mxu1 %vm746_vm5, %v738_v34  ;;  %7296 = vmatmul.mubr.msk.f32.gmra.mrb[62].mxu0 %vm746_vm5, %v7232_v35  ;;  %v7115_v35 = vld [vmem:[%s11351_s2 + $0x288] sm:$0xff] }
  0xcd   : > { %1345 = vmatprep.mubr.f32.mxu1 %v8298_v0  ;;  %2457 = vmatprep.mubr.f32.mxu0 %v8298_v0 }
  0xd0   : > { %7091 = vmatmul.mubr.msk.f32.gmra.mrb[64].mxu1 %vm746_vm5, %v739_v36  ;;  %7297 = vmatmul.mubr.msk.f32.gmra.mrb[64].mxu0 %vm746_vm5, %v7233_v16  ;;  %v7257_v36 = vld [vmem:[%s11351_s2 + $0x4f8] sm:$0xff] }
  0xd1   : > { %1351 = vmatprep.mubr.f32.mxu1 %v8298_v0  ;;  %2463 = vmatprep.mubr.f32.mxu0 %v8298_v0 }
  0xd4   : > { %7092 = vmatmul.mubr.msk.f32.gmra.mrb[66].mxu1 %vm746_vm5, %v740_v37  ;;  %7298 = vmatmul.mubr.msk.f32.gmra.mrb[66].mxu0 %vm746_vm5, %v7234_v38 }
  0xd5   : > { %1357 = vmatprep.mubr.f32.mxu1 %v8298_v0  ;;  %2469 = vmatprep.mubr.f32.mxu0 %v8298_v0 }
  0xd8   : > { %7093 = vmatmul.mubr.msk.f32.gmra.mrb[68].mxu1 %vm746_vm5, %v741_v17  ;;  %7299 = vmatmul.mubr.msk.f32.gmra.mrb[68].mxu0 %vm746_vm5, %v7235_v39  ;;  %v7116_v39 = vld [vmem:[%s11351_s2 + $0x290] sm:$0xff] }
  0xd9   : > { %1363 = vmatprep.mubr.f32.mxu1 %v8298_v0  ;;  %2475 = vmatprep.mubr.f32.mxu0 %v8298_v0 }
  0xdc   : > { %7094 = vmatmul.mubr.msk.f32.gmra.mrb[70].mxu1 %vm746_vm5, %v742_v26  ;;  %7300 = vmatmul.mubr.msk.f32.gmra.mrb[70].mxu0 %vm746_vm5, %v7236_v12  ;;  %v7258_v26 = vld [vmem:[%s11351_s2 + $0x500] sm:$0xff] }
  0xdd   : > { %1369 = vmatprep.mubr.f32.mxu1 %v8298_v0  ;;  %2481 = vmatprep.mubr.f32.mxu0 %v8298_v0 }
  0xe0   : > { %7095 = vmatmul.mubr.msk.f32.gmra.mrb[72].mxu1 %vm746_vm5, %v743_v40  ;;  %7301 = vmatmul.mubr.msk.f32.gmra.mrb[72].mxu0 %vm746_vm5, %v7237_v41 }
  0xe1   : > { %1375 = vmatprep.mubr.f32.mxu1 %v8298_v0  ;;  %2487 = vmatprep.mubr.f32.mxu0 %v8298_v0 }
  0xe4   : > { %7096 = vmatmul.mubr.msk.f32.gmra.mrb[74].mxu1 %vm746_vm5, %v744_v42  ;;  %7302 = vmatmul.mubr.msk.f32.gmra.mrb[74].mxu0 %vm746_vm5, %v7238_v43  ;;  %v7117_v43 = vld [vmem:[%s11351_s2 + $0x298] sm:$0xff] }
  0xe5   : > { %1381 = vmatprep.mubr.f32.mxu1 %v8298_v0  ;;  %2493 = vmatprep.mubr.f32.mxu0 %v8298_v0 }
  0xe8   : > { %7097 = vmatmul.mubr.msk.f32.gmra.mrb[76].mxu1 %vm746_vm5, %v745_v44  ;;  %7303 = vmatmul.mubr.msk.f32.gmra.mrb[76].mxu0 %vm746_vm5, %v7239_v45  ;;  %v7259_v44 = vld [vmem:[%s11351_s2 + $0x508] sm:$0xff] }
  0xe9   : > { %1709 = vmatprep.mubr.f32.mxu1 %v8298_v0  ;;  %2499 = vmatprep.mubr.f32.mxu0 %v8298_v0 }
  0xec   : > { %7162 = vmatmul.mubr.msk.f32.vlgmr.msra.gmra.mrb[78].mxu1 %vm746_vm5, %v7098_v46  ;;  %7304 = vmatmul.mubr.msk.f32.gmra.mrb[78].mxu0 %vm746_vm5, %v7240_v47 }
  0xed   : > { %1715 = vmatprep.mubr.f32.mxu1 %v8298_v0  ;;  %2505 = vmatprep.mubr.f32.mxu0 %v8298_v0 }
  0xf0   : > { %7163 = vmatmul.mubr.msk.f32.gmra.mrb[80].mxu1 %vm746_vm5, %v7099_v48  ;;  %7305 = vmatmul.mubr.msk.f32.gmra.mrb[80].mxu0 %vm746_vm5, %v7241_v49  ;;  %v7118_v49 = vld [vmem:[%s11351_s2 + $0x2a0] sm:$0xff] }
  0xf1   : > { %1721 = vmatprep.mubr.f32.mxu1 %v8298_v0  ;;  %2511 = vmatprep.mubr.f32.mxu0 %v8298_v0 }
  0xf4   : > { %7164 = vmatmul.mubr.msk.f32.gmra.mrb[82].mxu1 %vm746_vm5, %v7100_v50  ;;  %7306 = vmatmul.mubr.msk.f32.gmra.mrb[82].mxu0 %vm746_vm5, %v7242_v51  ;;  %v7260_v50 = vld [vmem:[%s11351_s2 + $0x510] sm:$0xff] }
  0xf5   : > { %1727 = vmatprep.mubr.f32.mxu1 %v8298_v0  ;;  %2517 = vmatprep.mubr.f32.mxu0 %v8298_v0 }
  0xf8   : > { %7165 = vmatmul.mubr.msk.f32.gmra.mrb[84].mxu1 %vm746_vm5, %v7101_v52  ;;  %7307 = vmatmul.mubr.msk.f32.gmra.mrb[84].mxu0 %vm746_vm5, %v7243_v53 }
  0xf9   : > { %1733 = vmatprep.mubr.f32.mxu1 %v8298_v0  ;;  %2523 = vmatprep.mubr.f32.mxu0 %v8298_v0 }
  0xfc   : > { %7166 = vmatmul.mubr.msk.f32.gmra.mrb[86].mxu1 %vm746_vm5, %v7102_v54  ;;  %7308 = vmatmul.mubr.msk.f32.gmra.mrb[86].mxu0 %vm746_vm5, %v7244_v55  ;;  %v7119_v55 = vld [vmem:[%s11351_s2 + $0x2a8] sm:$0xff] }
  0xfd   : > { %1739 = vmatprep.mubr.f32.mxu1 %v8298_v0  ;;  %2529 = vmatprep.mubr.f32.mxu0 %v8298_v0 }
 0x100   : > { %7167 = vmatmul.mubr.msk.f32.gmra.mrb[88].mxu1 %vm746_vm5, %v7103_v56  ;;  %7309 = vmatmul.mubr.msk.f32.gmra.mrb[88].mxu0 %vm746_vm5, %v7245_v57  ;;  %v7261_v56 = vld [vmem:[%s11351_s2 + $0x518] sm:$0xff] }
 0x101   : > { %1745 = vmatprep.mubr.f32.mxu1 %v8298_v0  ;;  %2535 = vmatprep.mubr.f32.mxu0 %v8298_v0 }
 0x104   : > { %7168 = vmatmul.mubr.msk.f32.gmra.mrb[90].mxu1 %vm746_vm5, %v7104_v58  ;;  %7310 = vmatmul.mubr.msk.f32.gmra.mrb[90].mxu0 %vm746_vm5, %v7246_v59 }
 0x105   : > { %1751 = vmatprep.mubr.f32.mxu1 %v8298_v0  ;;  %2541 = vmatprep.mubr.f32.mxu0 %v8298_v0 }
 0x108   : > { %7169 = vmatmul.mubr.msk.f32.gmra.mrb[92].mxu1 %vm746_vm5, %v7105_v60  ;;  %7311 = vmatmul.mubr.msk.f32.gmra.mrb[92].mxu0 %vm746_vm5, %v7247_v61  ;;  %v7120_v61 = vld [vmem:[%s11351_s2 + $0x2b0] sm:$0xff] }
 0x109   : > { %1757 = vmatprep.mubr.f32.mxu1 %v8298_v0  ;;  %2547 = vmatprep.mubr.f32.mxu0 %v8298_v0 }
 0x10c   : > { %7170 = vmatmul.mubr.msk.f32.gmra.mrb[94].mxu1 %vm746_vm5, %v7106_v62  ;;  %7312 = vmatmul.mubr.msk.f32.gmra.mrb[94].mxu0 %vm746_vm5, %v7248_v63  ;;  %v7262_v62 = vld [vmem:[%s11351_s2 + $0x520] sm:$0xff] }
 0x10d   : > { %1763 = vmatprep.mubr.f32.mxu1 %v8298_v0  ;;  %2553 = vmatprep.mubr.f32.mxu0 %v8298_v0 }
 0x110   : > { %7171 = vmatmul.mubr.msk.f32.gmra.mrb[96].mxu1 %vm746_vm5, %v7107_v1  ;;  %7313 = vmatmul.mubr.msk.f32.gmra.mrb[96].mxu0 %vm746_vm5, %v7249_v2 }
 0x111   : > { %1769 = vmatprep.mubr.f32.mxu1 %v8298_v0  ;;  %2559 = vmatprep.mubr.f32.mxu0 %v8298_v0 }
 0x114   : > { %7172 = vmatmul.mubr.msk.f32.gmra.mrb[98].mxu1 %vm746_vm5, %v7108_v3  ;;  %7314 = vmatmul.mubr.msk.f32.gmra.mrb[98].mxu0 %vm746_vm5, %v7250_v4  ;;  %v7121_v4 = vld [vmem:[%s11351_s2 + $0x2b8] sm:$0xff] }
 0x115   : > { %1775 = vmatprep.mubr.f32.mxu1 %v8298_v0  ;;  %2565 = vmatprep.mubr.f32.mxu0 %v8298_v0 }
 0x118   : > { %7173 = vmatmul.mubr.msk.f32.gmra.mrb[100].mxu1 %vm746_vm5, %v7109_v5  ;;  %7315 = vmatmul.mubr.msk.f32.gmra.mrb[100].mxu0 %vm746_vm5, %v7251_v6  ;;  %v7263_v5 = vld [vmem:[%s11351_s2 + $0x528] sm:$0xff] }
 0x119   : > { %1781 = vmatprep.mubr.f32.mxu1 %v8298_v0  ;;  %2571 = vmatprep.mubr.f32.mxu0 %v8298_v0 }
 0x11c   : > { %7174 = vmatmul.mubr.msk.f32.gmra.mrb[102].mxu1 %vm746_vm5, %v7110_v8  ;;  %7316 = vmatmul.mubr.msk.f32.gmra.mrb[102].mxu0 %vm746_vm5, %v7252_v9 }
 0x11d   : > { %1787 = vmatprep.mubr.f32.mxu1 %v8298_v0  ;;  %2577 = vmatprep.mubr.f32.mxu0 %v8298_v0 }
 0x120   : > { %7175 = vmatmul.mubr.msk.f32.gmra.mrb[104].mxu1 %vm746_vm5, %v7111_v11  ;;  %7317 = vmatmul.mubr.msk.f32.gmra.mrb[104].mxu0 %vm746_vm5, %v7253_v13  ;;  %v7122_v13 = vld [vmem:[%s11351_s2 + $0x2c0] sm:$0xff] }
 0x121   : > { %1793 = vmatprep.mubr.f32.mxu1 %v8298_v0  ;;  %2583 = vmatprep.mubr.f32.mxu0 %v8298_v0 }
 0x123   : > { %v9031_v18 = vpop.f32.mrb[0].mxu1  ;;  %v9033_v19 = vpop.f32.mrb[0].mxu0 }
 0x124   : > { %11366 = vst [vmem:[#allocation9_spill] sm:$0xff] %v9031_v18  ;;  %v9035_v20 = vpop.f32.mrb[1].mxu1  ;;  %7176 = vmatmul.mubr.msk.f32.gmra.mrb[106].mxu1 %vm746_vm5, %v7112_v14  ;;  %v9038_v21 = vpop.f32.mrb[1].mxu0  ;;  %7318 = vmatmul.mubr.msk.f32.gmra.mrb[106].mxu0 %vm746_vm5, %v7254_v15  ;;  %v7264_v14 = vld [vmem:[%s11351_s2 + $0x530] sm:$0xff]  ;;  %v7141_v18 = vld [vmem:[%s11351_s2 + $0x358] sm:$0xff] }
 0x125   : > { %11367 = vst [vmem:[#allocation10_spill] sm:$0xff] %v9035_v20  ;;  %1799 = vmatprep.mubr.f32.mxu1 %v8298_v0  ;;  %2589 = vmatprep.mubr.f32.mxu0 %v8298_v0 }
 0x127   : > { %v9049_v24 = vpop.f32.mrb[2].mxu1  ;;  %v9051_v25 = vpop.f32.mrb[2].mxu0 }
 0x128   : > { %11368 = vst [vmem:[#allocation11_spill] sm:$0xff] %v9049_v24  ;;  %v9053_v27 = vpop.f32.mrb[3].mxu1  ;;  %7177 = vmatmul.mubr.msk.f32.gmra.mrb[108].mxu1 %vm746_vm5, %v7113_v22  ;;  %v9056_v28 = vpop.f32.mrb[3].mxu0  ;;  %7319 = vmatmul.mubr.msk.f32.gmra.mrb[108].mxu0 %vm746_vm5, %v7255_v23  ;;  %v7140_v24 = vld [vmem:[%s11351_s2 + $0x350] sm:$0xff] }
 0x129   : > { %11369 = vst [vmem:[#allocation12_spill] sm:$0xff] %v9053_v27  ;;  %1805 = vmatprep.mubr.f32.mxu1 %v8298_v0  ;;  %2595 = vmatprep.mubr.f32.mxu0 %v8298_v0 }
 0x12b   : > { %v9067_v31 = vpop.f32.mrb[4].mxu1  ;;  %v9069_v32 = vpop.f32.mrb[4].mxu0 }
 0x12c   : > { %11370 = vst [vmem:[#allocation13_spill] sm:$0xff] %v9067_v31  ;;  %v9071_v33 = vpop.f32.mrb[5].mxu1  ;;  %7178 = vmatmul.mubr.msk.f32.gmra.mrb[110].mxu1 %vm746_vm5, %v7114_v29  ;;  %v9074_v34 = vpop.f32.mrb[5].mxu0  ;;  %7320 = vmatmul.mubr.msk.f32.gmra.mrb[110].mxu0 %vm746_vm5, %v7256_v30  ;;  %v7123_v30 = vld [vmem:[%s11351_s2 + $0x2c8] sm:$0xff] }
 0x12d   : > { %11371 = vst [vmem:[#allocation14_spill] sm:$0xff] %v9071_v33  ;;  %1811 = vmatprep.mubr.f32.mxu1 %v8298_v0  ;;  %2601 = vmatprep.mubr.f32.mxu0 %v8298_v0  ;;  %v7139_v31 = vld [vmem:[%s11351_s2 + $0x348] sm:$0xff] }
 0x12f   : > { %v9085_v16 = vpop.f32.mrb[6].mxu1  ;;  %v9087_v37 = vpop.f32.mrb[6].mxu0 }
 0x130   : > { %11372 = vst [vmem:[#allocation15_spill] sm:$0xff] %v9085_v16  ;;  %v9089_v38 = vpop.f32.mrb[7].mxu1  ;;  %7179 = vmatmul.mubr.msk.f32.gmra.mrb[112].mxu1 %vm746_vm5, %v7115_v35  ;;  %v9092_v17 = vpop.f32.mrb[7].mxu0  ;;  %7321 = vmatmul.mubr.msk.f32.gmra.mrb[112].mxu0 %vm746_vm5, %v7257_v36  ;;  %v7265_v35 = vld [vmem:[%s11351_s2 + $0x538] sm:$0xff]  ;;  %v7138_v16 = vld [vmem:[%s11351_s2 + $0x340] sm:$0xff] }
 0x131   : > { %11373 = vst [vmem:[#allocation16_spill] sm:$0xff] %v9089_v38  ;;  %1817 = vmatprep.mubr.f32.mxu1 %v8298_v0  ;;  %2607 = vmatprep.mubr.f32.mxu0 %v8298_v0 }
 0x133   : > { %v9103_v12 = vpop.f32.mrb[8].mxu1  ;;  %v9105_v40 = vpop.f32.mrb[8].mxu0 }
 0x134   : > { %11374 = vst [vmem:[#allocation17_spill] sm:$0xff] %v9103_v12  ;;  %v9107_v41 = vpop.f32.mrb[9].mxu1  ;;  %7180 = vmatmul.mubr.msk.f32.gmra.mrb[114].mxu1 %vm746_vm5, %v7116_v39  ;;  %v9110_v42 = vpop.f32.mrb[9].mxu0  ;;  %7322 = vmatmul.mubr.msk.f32.gmra.mrb[114].mxu0 %vm746_vm5, %v7258_v26  ;;  %v7137_v12 = vld [vmem:[%s11351_s2 + $0x338] sm:$0xff] }
 0x135   : > { %11375 = vst [vmem:[#allocation18_spill] sm:$0xff] %v9107_v41  ;;  %1823 = vmatprep.mubr.f32.mxu1 %v8298_v0  ;;  %2613 = vmatprep.mubr.f32.mxu0 %v8298_v0 }
 0x137   : > { %v9121_v45 = vpop.f32.mrb[10].mxu1  ;;  %v9123_v46 = vpop.f32.mrb[10].mxu0 }
 0x138   : > { %11376 = vst [vmem:[#allocation19_spill] sm:$0xff] %v9121_v45  ;;  %v9125_v47 = vpop.f32.mrb[11].mxu1  ;;  %7181 = vmatmul.mubr.msk.f32.gmra.mrb[116].mxu1 %vm746_vm5, %v7117_v43  ;;  %v9128_v48 = vpop.f32.mrb[11].mxu0  ;;  %7323 = vmatmul.mubr.msk.f32.gmra.mrb[116].mxu0 %vm746_vm5, %v7259_v44  ;;  %v7124_v44 = vld [vmem:[%s11351_s2 + $0x2d0] sm:$0xff] }
 0x139   : > { %11377 = vst [vmem:[#allocation20_spill] sm:$0xff] %v9125_v47  ;;  %1829 = vmatprep.mubr.f32.mxu1 %v8298_v0  ;;  %2619 = vmatprep.mubr.f32.mxu0 %v8298_v0  ;;  %v7136_v45 = vld [vmem:[%s11351_s2 + $0x330] sm:$0xff] }
 0x13b   : > { %v9139_v51 = vpop.f32.mrb[12].mxu1  ;;  %v9141_v52 = vpop.f32.mrb[12].mxu0 }
 0x13c   : > { %11378 = vst [vmem:[#allocation21_spill] sm:$0xff] %v9139_v51  ;;  %v9143_v53 = vpop.f32.mrb[13].mxu1  ;;  %7182 = vmatmul.mubr.msk.f32.gmra.mrb[118].mxu1 %vm746_vm5, %v7118_v49  ;;  %v9146_v54 = vpop.f32.mrb[13].mxu0  ;;  %7324 = vmatmul.mubr.msk.f32.gmra.mrb[118].mxu0 %vm746_vm5, %v7260_v50  ;;  %v7266_v49 = vld [vmem:[%s11351_s2 + $0x540] sm:$0xff]  ;;  %v7135_v51 = vld [vmem:[%s11351_s2 + $0x328] sm:$0xff] }
 0x13d   : > { %11379 = vst [vmem:[#allocation22_spill] sm:$0xff] %v9143_v53  ;;  %1835 = vmatprep.mubr.f32.mxu1 %v8298_v0  ;;  %2625 = vmatprep.mubr.f32.mxu0 %v8298_v0 }
 0x13f   : > { %v9157_v57 = vpop.f32.mrb[14].mxu1  ;;  %v9159_v58 = vpop.f32.mrb[14].mxu0 }
 0x140   : > { %11380 = vst [vmem:[#allocation23_spill] sm:$0xff] %v9157_v57  ;;  %v9161_v59 = vpop.f32.mrb[15].mxu1  ;;  %7183 = vmatmul.mubr.msk.f32.gmra.mrb[120].mxu1 %vm746_vm5, %v7119_v55  ;;  %v9164_v60 = vpop.f32.mrb[15].mxu0  ;;  %7325 = vmatmul.mubr.msk.f32.gmra.mrb[120].mxu0 %vm746_vm5, %v7261_v56  ;;  %v7134_v57 = vld [vmem:[%s11351_s2 + $0x320] sm:$0xff] }
 0x141   : > { %11381 = vst [vmem:[#allocation24_spill] sm:$0xff] %v9161_v59  ;;  %1841 = vmatprep.mubr.f32.mxu1 %v8298_v0  ;;  %2631 = vmatprep.mubr.f32.mxu0 %v8298_v0 }
 0x143   : > { %v9175_v63 = vpop.f32.mrb[16].mxu1  ;;  %v9177_v1 = vpop.f32.mrb[16].mxu0 }
 0x144   : > { %11382 = vst [vmem:[#allocation25_spill] sm:$0xff] %v9175_v63  ;;  %v9179_v2 = vpop.f32.mrb[17].mxu1  ;;  %7184 = vmatmul.mubr.msk.f32.gmra.mrb[122].mxu1 %vm746_vm5, %v7120_v61  ;;  %v9182_v3 = vpop.f32.mrb[17].mxu0  ;;  %7326 = vmatmul.mubr.msk.f32.gmra.mrb[122].mxu0 %vm746_vm5, %v7262_v62  ;;  %v7125_v62 = vld [vmem:[%s11351_s2 + $0x2d8] sm:$0xff] }
 0x145   : > { %11383 = vst [vmem:[#allocation26_spill] sm:$0xff] %v9179_v2  ;;  %1847 = vmatprep.mubr.f32.mxu1 %v8298_v0  ;;  %2637 = vmatprep.mubr.f32.mxu0 %v8298_v0  ;;  %v7133_v63 = vld [vmem:[%s11351_s2 + $0x318] sm:$0xff] }
 0x147   : > { %v9193_v6 = vpop.f32.mrb[18].mxu1  ;;  %v9195_v8 = vpop.f32.mrb[18].mxu0 }
 0x148   : > { %11384 = vst [vmem:[#allocation27_spill] sm:$0xff] %v9193_v6  ;;  %v9197_v9 = vpop.f32.mrb[19].mxu1  ;;  %7185 = vmatmul.mubr.msk.f32.gmra.mrb[124].mxu1 %vm746_vm5, %v7121_v4  ;;  %v9200_v11 = vpop.f32.mrb[19].mxu0  ;;  %7327 = vmatmul.mubr.msk.f32.gmra.mrb[124].mxu0 %vm746_vm5, %v7263_v5  ;;  %v7267_v4 = vld [vmem:[%s11351_s2 + $0x548] sm:$0xff]  ;;  %v7132_v6 = vld [vmem:[%s11351_s2 + $0x310] sm:$0xff] }
 0x149   : > { %11385 = vst [vmem:[#allocation28_spill] sm:$0xff] %v9197_v9  ;;  %1853 = vmatprep.mubr.f32.mxu1 %v8298_v0  ;;  %2643 = vmatprep.mubr.f32.mxu0 %v8298_v0 }
 0x14b   : > { %v9211_v15 = vpop.f32.mrb[20].mxu1  ;;  %v9213_v22 = vpop.f32.mrb[20].mxu0 }
 0x14c   : > { %11386 = vst [vmem:[#allocation29_spill] sm:$0xff] %v9211_v15  ;;  %v9215_v23 = vpop.f32.mrb[21].mxu1  ;;  %7186 = vmatmul.mubr.msk.f32.gmra.mrb[126].mxu1 %vm746_vm5, %v7122_v13  ;;  %v9218_v29 = vpop.f32.mrb[21].mxu0  ;;  %7328 = vmatmul.mubr.msk.f32.gmra.mrb[126].mxu0 %vm746_vm5, %v7264_v14  ;;  %v7131_v15 = vld [vmem:[%s11351_s2 + $0x308] sm:$0xff] }
 0x14d   : > { %11387 = vst [vmem:[#allocation30_spill] sm:$0xff] %v9215_v23  ;;  %1859 = vmatprep.mubr.f32.mxu1 %v8298_v0  ;;  %2649 = vmatprep.mubr.f32.mxu0 %v8298_v0 }
 0x14f   : > { %v9229_v36 = vpop.f32.mrb[22].mxu1  ;;  %v9231_v39 = vpop.f32.mrb[22].mxu0 }
 0x150   : > { %11388 = vst [vmem:[#allocation31_spill] sm:$0xff] %v9229_v36  ;;  %v9233_v26 = vpop.f32.mrb[23].mxu1  ;;  %7187 = vmatmul.mubr.msk.f32.gmra.mrb[128].mxu1 %vm746_vm5, %v7123_v30  ;;  %v9236_v43 = vpop.f32.mrb[23].mxu0  ;;  %7329 = vmatmul.mubr.msk.f32.gmra.mrb[128].mxu0 %vm746_vm5, %v7265_v35  ;;  %v7126_v35 = vld [vmem:[%s11351_s2 + $0x2e0] sm:$0xff] }
 0x151   : > { %11389 = vst [vmem:[#allocation32_spill] sm:$0xff] %v9233_v26  ;;  %1865 = vmatprep.mubr.f32.mxu1 %v8298_v0  ;;  %2655 = vmatprep.mubr.f32.mxu0 %v8298_v0  ;;  %v7130_v36 = vld [vmem:[%s11351_s2 + $0x300] sm:$0xff] }
 0x153   : > { %v9247_v50 = vpop.f32.mrb[24].mxu1  ;;  %v9249_v55 = vpop.f32.mrb[24].mxu0 }
 0x154   : > { %11390 = vst [vmem:[#allocation33_spill] sm:$0xff] %v9247_v50  ;;  %v9251_v56 = vpop.f32.mrb[25].mxu1  ;;  %7188 = vmatmul.mubr.msk.f32.gmra.mrb[130].mxu1 %vm746_vm5, %v7124_v44  ;;  %v9254_v61 = vpop.f32.mrb[25].mxu0  ;;  %7330 = vmatmul.mubr.msk.f32.gmra.mrb[130].mxu0 %vm746_vm5, %v7266_v49  ;;  %v7268_v44 = vld [vmem:[%s11351_s2 + $0x550] sm:$0xff]  ;;  %v7129_v50 = vld [vmem:[%s11351_s2 + $0x2f8] sm:$0xff] }
 0x155   : > { %11391 = vst [vmem:[#allocation34_spill] sm:$0xff] %v9251_v56  ;;  %1871 = vmatprep.mubr.f32.mxu1 %v8298_v0  ;;  %2661 = vmatprep.mubr.f32.mxu0 %v8298_v0 }
 0x157   : > { %v9265_v5 = vpop.f32.mrb[26].mxu1  ;;  %v9267_v13 = vpop.f32.mrb[26].mxu0 }
 0x158   : > { %11392 = vst [vmem:[#allocation35_spill] sm:$0xff] %v9265_v5  ;;  %11393 = vst [vmem:[#allocation36_spill] sm:$0xff] %v9267_v13  ;;  %v9269_v14 = vpop.f32.mrb[27].mxu1  ;;  %7189 = vmatmul.mubr.msk.f32.gmra.mrb[132].mxu1 %vm746_vm5, %v7125_v62  ;;  %v9272_v30 = vpop.f32.mrb[27].mxu0  ;;  %7331 = vmatmul.mubr.msk.f32.gmra.mrb[132].mxu0 %vm746_vm5, %v7267_v4  ;;  %v7128_v5 = vld [vmem:[%s11351_s2 + $0x2f0] sm:$0xff] }
 0x159   : > { %11394 = vst [vmem:[#allocation37_spill] sm:$0xff] %v9269_v14  ;;  %11395 = vst [vmem:[#allocation38_spill] sm:$0xff] %v9272_v30  ;;  %1877 = vmatprep.mubr.f32.mxu1 %v8298_v0  ;;  %2667 = vmatprep.mubr.f32.mxu0 %v8298_v0 }
 0x15b   : > { %v9283_v49 = vpop.f32.mrb[28].mxu1  ;;  %v9285_v7 = vpop.f32.mrb[28].mxu0 }
 0x15c   : > { %11396 = vst [vmem:[#allocation39_spill] sm:$0xff] %v9283_v49  ;;  %11397 = vst [vmem:[#allocation40_spill] sm:$0xff] %v9285_v7  ;;  %v9287_v62 = vpop.f32.mrb[29].mxu1  ;;  %7190 = vmatmul.mubr.msk.f32.gmra.mrb[134].mxu1 %vm746_vm5, %v7126_v35  ;;  %v9290_v4 = vpop.f32.mrb[29].mxu0  ;;  %7332 = vmatmul.mubr.msk.f32.gmra.mrb[134].mxu0 %vm746_vm5, %v7268_v44  ;;  %v7269_v49 = vld [vmem:[%s11351_s2 + $0x558] sm:$0xff] }
 0x15d   : > { %11398 = vst [vmem:[#allocation41_spill] sm:$0xff] %v9287_v62  ;;  %11399 = vst [vmem:[#allocation42_spill] sm:$0xff] %v9290_v4  ;;  %1883 = vmatprep.mubr.f32.mxu1 %v8298_v0  ;;  %2673 = vmatprep.mubr.f32.mxu0 %v8298_v0 }
 0x15f   : > { %v9301_v14 = vpop.f32.mrb[30].mxu1  ;;  %v9303_v62 = vpop.f32.mrb[30].mxu0 }
 0x160   : > { %11400 = vst [vmem:[#allocation43_spill] sm:$0xff] %v9301_v14  ;;  %11401 = vst [vmem:[#allocation44_spill] sm:$0xff] %v9303_v62  ;;  %v9305_v35 = vpop.f32.mrb[31].mxu1  ;;  %7191 = vmatmul.mubr.msk.f32.gmra.mrb[136].mxu1 %vm746_vm5, %v7127_v10  ;;  %v9308_v44 = vpop.f32.mrb[31].mxu0  ;;  %7333 = vmatmul.mubr.msk.f32.gmra.mrb[136].mxu0 %vm746_vm5, %v7269_v49  ;;  %v7270_v14 = vld [vmem:[%s11351_s2 + $0x560] sm:$0xff] }
 0x161   : > { %11402 = vst [vmem:[#allocation45_spill] sm:$0xff] %v9305_v35  ;;  %11403 = vst [vmem:[#allocation46_spill] sm:$0xff] %v9308_v44  ;;  %1889 = vmatprep.mubr.f32.mxu1 %v8298_v0  ;;  %2679 = vmatprep.mubr.f32.mxu0 %v8298_v0 }
 0x163   : > { %v9319_v56 = vpop.f32.mrb[32].mxu1  ;;  %v9321_v35 = vpop.f32.mrb[32].mxu0 }
 0x164   : > { %11404 = vst [vmem:[#allocation47_spill] sm:$0xff] %v9319_v56  ;;  %11405 = vst [vmem:[#allocation48_spill] sm:$0xff] %v9321_v35  ;;  %v9323_v10 = vpop.f32.mrb[33].mxu1  ;;  %7192 = vmatmul.mubr.msk.f32.gmra.mrb[138].mxu1 %vm746_vm5, %v7128_v5  ;;  %v9326_v49 = vpop.f32.mrb[33].mxu0  ;;  %7334 = vmatmul.mubr.msk.f32.gmra.mrb[138].mxu0 %vm746_vm5, %v7270_v14  ;;  %v7271_v56 = vld [vmem:[%s11351_s2 + $0x568] sm:$0xff] }
 0x165   : > { %11406 = vst [vmem:[#allocation49_spill] sm:$0xff] %v9323_v10  ;;  %11407 = vst [vmem:[#allocation50_spill] sm:$0xff] %v9326_v49  ;;  %1895 = vmatprep.mubr.f32.mxu1 %v8298_v0  ;;  %2685 = vmatprep.mubr.f32.mxu0 %v8298_v0 }
 0x167   : > { %v9337_v26 = vpop.f32.mrb[34].mxu1  ;;  %v9339_v10 = vpop.f32.mrb[34].mxu0 }
 0x168   : > { %11408 = vst [vmem:[#allocation51_spill] sm:$0xff] %v9337_v26  ;;  %11409 = vst [vmem:[#allocation52_spill] sm:$0xff] %v9339_v10  ;;  %v9341_v5 = vpop.f32.mrb[35].mxu1  ;;  %7193 = vmatmul.mubr.msk.f32.gmra.mrb[140].mxu1 %vm746_vm5, %v7129_v50  ;;  %v9344_v14 = vpop.f32.mrb[35].mxu0  ;;  %7335 = vmatmul.mubr.msk.f32.gmra.mrb[140].mxu0 %vm746_vm5, %v7271_v56  ;;  %v7272_v26 = vld [vmem:[%s11351_s2 + $0x570] sm:$0xff] }
 0x169   : > { %11410 = vst [vmem:[#allocation53_spill] sm:$0xff] %v9341_v5  ;;  %11411 = vst [vmem:[#allocation54_spill] sm:$0xff] %v9344_v14  ;;  %1901 = vmatprep.mubr.f32.mxu1 %v8298_v0  ;;  %2691 = vmatprep.mubr.f32.mxu0 %v8298_v0 }
 0x16b   : > { %v9355_v23 = vpop.f32.mrb[36].mxu1  ;;  %v9357_v5 = vpop.f32.mrb[36].mxu0 }
 0x16c   : > { %11412 = vst [vmem:[#allocation55_spill] sm:$0xff] %v9355_v23  ;;  %11413 = vst [vmem:[#allocation56_spill] sm:$0xff] %v9357_v5  ;;  %v9359_v50 = vpop.f32.mrb[37].mxu1  ;;  %7194 = vmatmul.mubr.msk.f32.gmra.mrb[142].mxu1 %vm746_vm5, %v7130_v36  ;;  %v9362_v56 = vpop.f32.mrb[37].mxu0  ;;  %7336 = vmatmul.mubr.msk.f32.gmra.mrb[142].mxu0 %vm746_vm5, %v7272_v26  ;;  %v7273_v23 = vld [vmem:[%s11351_s2 + $0x578] sm:$0xff]  ;;  %v7148_v5 = vld [vmem:[%s11351_s2 + $0x390] sm:$0xff] }
 0x16d   : > { %11414 = vst [vmem:[#allocation57_spill] sm:$0xff] %v9359_v50  ;;  %11415 = vst [vmem:[#allocation58_spill] sm:$0xff] %v9362_v56  ;;  %1907 = vmatprep.mubr.f32.mxu1 %v8298_v0  ;;  %2697 = vmatprep.mubr.f32.mxu0 %v8298_v0 }
 0x16f   : > { %v9373_v9 = vpop.f32.mrb[38].mxu1  ;;  %v9375_v50 = vpop.f32.mrb[38].mxu0 }
 0x170   : > { %11416 = vst [vmem:[#allocation59_spill] sm:$0xff] %v9373_v9  ;;  %11417 = vst [vmem:[#allocation60_spill] sm:$0xff] %v9375_v50  ;;  %v9377_v36 = vpop.f32.mrb[39].mxu1  ;;  %7195 = vmatmul.mubr.msk.f32.gmra.mrb[144].mxu1 %vm746_vm5, %v7131_v15  ;;  %v9380_v26 = vpop.f32.mrb[39].mxu0  ;;  %7337 = vmatmul.mubr.msk.f32.gmra.mrb[144].mxu0 %vm746_vm5, %v7273_v23  ;;  %v7274_v9 = vld [vmem:[%s11351_s2 + $0x580] sm:$0xff]  ;;  %v7147_v50 = vld [vmem:[%s11351_s2 + $0x388] sm:$0xff] }
 0x171   : > { %11418 = vst [vmem:[#allocation61_spill] sm:$0xff] %v9377_v36  ;;  %11419 = vst [vmem:[#allocation62_spill] sm:$0xff] %v9380_v26  ;;  %1913 = vmatprep.mubr.f32.mxu1 %v8298_v0  ;;  %2703 = vmatprep.mubr.f32.mxu0 %v8298_v0 }
 0x173   : > { %v9391_v2 = vpop.f32.mrb[40].mxu1  ;;  %v9393_v36 = vpop.f32.mrb[40].mxu0 }
 0x174   : > { %11420 = vst [vmem:[#allocation63_spill] sm:$0xff] %v9391_v2  ;;  %11421 = vst [vmem:[#allocation64_spill] sm:$0xff] %v9393_v36  ;;  %v9395_v15 = vpop.f32.mrb[41].mxu1  ;;  %7196 = vmatmul.mubr.msk.f32.gmra.mrb[146].mxu1 %vm746_vm5, %v7132_v6  ;;  %v9398_v23 = vpop.f32.mrb[41].mxu0  ;;  %7338 = vmatmul.mubr.msk.f32.gmra.mrb[146].mxu0 %vm746_vm5, %v7274_v9  ;;  %v7275_v2 = vld [vmem:[%s11351_s2 + $0x588] sm:$0xff]  ;;  %v7146_v36 = vld [vmem:[%s11351_s2 + $0x380] sm:$0xff] }
 0x175   : > { %11422 = vst [vmem:[#allocation65_spill] sm:$0xff] %v9395_v15  ;;  %11423 = vst [vmem:[#allocation66_spill] sm:$0xff] %v9398_v23  ;;  %1919 = vmatprep.mubr.f32.mxu1 %v8298_v0  ;;  %2709 = vmatprep.mubr.f32.mxu0 %v8298_v0 }
 0x177   : > { %v9409_v59 = vpop.f32.mrb[42].mxu1  ;;  %v9411_v15 = vpop.f32.mrb[42].mxu0 }
 0x178   : > { %11424 = vst [vmem:[#allocation67_spill] sm:$0xff] %v9409_v59  ;;  %11425 = vst [vmem:[#allocation68_spill] sm:$0xff] %v9411_v15  ;;  %v9413_v6 = vpop.f32.mrb[43].mxu1  ;;  %7197 = vmatmul.mubr.msk.f32.gmra.mrb[148].mxu1 %vm746_vm5, %v7133_v63  ;;  %v9416_v9 = vpop.f32.mrb[43].mxu0  ;;  %7339 = vmatmul.mubr.msk.f32.gmra.mrb[148].mxu0 %vm746_vm5, %v7275_v2  ;;  %v7276_v59 = vld [vmem:[%s11351_s2 + $0x590] sm:$0xff]  ;;  %v7145_v15 = vld [vmem:[%s11351_s2 + $0x378] sm:$0xff] }
 0x179   : > { %11426 = vst [vmem:[#allocation69_spill] sm:$0xff] %v9413_v6  ;;  %11427 = vst [vmem:[#allocation70_spill] sm:$0xff] %v9416_v9  ;;  %1925 = vmatprep.mubr.f32.mxu1 %v8298_v0  ;;  %2715 = vmatprep.mubr.f32.mxu0 %v8298_v0 }
 0x17b   : > { %v9427_v53 = vpop.f32.mrb[44].mxu1  ;;  %v9429_v6 = vpop.f32.mrb[44].mxu0 }
 0x17c   : > { %11428 = vst [vmem:[#allocation71_spill] sm:$0xff] %v9427_v53  ;;  %11429 = vst [vmem:[#allocation72_spill] sm:$0xff] %v9429_v6  ;;  %v9431_v63 = vpop.f32.mrb[45].mxu1  ;;  %7198 = vmatmul.mubr.msk.f32.gmra.mrb[150].mxu1 %vm746_vm5, %v7134_v57  ;;  %v9434_v2 = vpop.f32.mrb[45].mxu0  ;;  %7340 = vmatmul.mubr.msk.f32.gmra.mrb[150].mxu0 %vm746_vm5, %v7276_v59  ;;  %v7277_v53 = vld [vmem:[%s11351_s2 + $0x598] sm:$0xff]  ;;  %v7144_v6 = vld [vmem:[%s11351_s2 + $0x370] sm:$0xff] }
 0x17d   : > { %11430 = vst [vmem:[#allocation73_spill] sm:$0xff] %v9431_v63  ;;  %11431 = vst [vmem:[#allocation74_spill] sm:$0xff] %v9434_v2  ;;  %1931 = vmatprep.mubr.f32.mxu1 %v8298_v0  ;;  %2721 = vmatprep.mubr.f32.mxu0 %v8298_v0 }
 0x17f   : > { %v9445_v47 = vpop.f32.mrb[46].mxu1  ;;  %v9447_v63 = vpop.f32.mrb[46].mxu0 }
 0x180   : > { %11432 = vst [vmem:[#allocation75_spill] sm:$0xff] %v9445_v47  ;;  %11433 = vst [vmem:[#allocation76_spill] sm:$0xff] %v9447_v63  ;;  %v9449_v57 = vpop.f32.mrb[47].mxu1  ;;  %7199 = vmatmul.mubr.msk.f32.gmra.mrb[152].mxu1 %vm746_vm5, %v7135_v51  ;;  %v9452_v59 = vpop.f32.mrb[47].mxu0  ;;  %7341 = vmatmul.mubr.msk.f32.gmra.mrb[152].mxu0 %vm746_vm5, %v7277_v53  ;;  %v7278_v47 = vld [vmem:[%s11351_s2 + $0x5a0] sm:$0xff]  ;;  %v7143_v63 = vld [vmem:[%s11351_s2 + $0x368] sm:$0xff] }
 0x181   : > { %11434 = vst [vmem:[#allocation77_spill] sm:$0xff] %v9449_v57  ;;  %11435 = vst [vmem:[#allocation78_spill] sm:$0xff] %v9452_v59  ;;  %1937 = vmatprep.mubr.f32.mxu1 %v8298_v0  ;;  %2727 = vmatprep.mubr.f32.mxu0 %v8298_v0 }
 0x183   : > { %v9463_v41 = vpop.f32.mrb[48].mxu1  ;;  %v9465_v57 = vpop.f32.mrb[48].mxu0 }
 0x184   : > { %11436 = vst [vmem:[#allocation79_spill] sm:$0xff] %v9463_v41  ;;  %11437 = vst [vmem:[#allocation80_spill] sm:$0xff] %v9465_v57  ;;  %v9467_v51 = vpop.f32.mrb[49].mxu1  ;;  %7200 = vmatmul.mubr.msk.f32.gmra.mrb[154].mxu1 %vm746_vm5, %v7136_v45  ;;  %v9470_v53 = vpop.f32.mrb[49].mxu0  ;;  %7342 = vmatmul.mubr.msk.f32.gmra.mrb[154].mxu0 %vm746_vm5, %v7278_v47  ;;  %v7279_v41 = vld [vmem:[%s11351_s2 + $0x5a8] sm:$0xff]  ;;  %v7142_v57 = vld [vmem:[%s11351_s2 + $0x360] sm:$0xff] }
 0x185   : > { %11438 = vst [vmem:[#allocation81_spill] sm:$0xff] %v9467_v51  ;;  %11439 = vst [vmem:[#allocation82_spill] sm:$0xff] %v9470_v53  ;;  %1943 = vmatprep.mubr.f32.mxu1 %v8298_v0  ;;  %2733 = vmatprep.mubr.f32.mxu0 %v8298_v0 }
 0x187   : > { %v9481_v38 = vpop.f32.mrb[50].mxu1  ;;  %v9483_v51 = vpop.f32.mrb[50].mxu0 }
 0x188   : > { %11440 = vst [vmem:[#allocation83_spill] sm:$0xff] %v9481_v38  ;;  %v9485_v45 = vpop.f32.mrb[51].mxu1  ;;  %7201 = vmatmul.mubr.msk.f32.gmra.mrb[156].mxu1 %vm746_vm5, %v7137_v12  ;;  %v9488_v47 = vpop.f32.mrb[51].mxu0  ;;  %7343 = vmatmul.mubr.msk.f32.gmra.mrb[156].mxu0 %vm746_vm5, %v7279_v41  ;;  %v7280_v38 = vld [vmem:[%s11351_s2 + $0x5b0] sm:$0xff] }
 0x189   : > { %11441 = vst [vmem:[#allocation84_spill] sm:$0xff] %v9485_v45  ;;  %1949 = vmatprep.mubr.f32.mxu1 %v8298_v0  ;;  %2739 = vmatprep.mubr.f32.mxu0 %v8298_v0 }
 0x18b   : > { %v9499_v33 = vpop.f32.mrb[52].mxu1  ;;  %v9501_v45 = vpop.f32.mrb[52].mxu0 }
 0x18c   : > { %11442 = vst [vmem:[#allocation85_spill] sm:$0xff] %v9499_v33  ;;  %v9503_v12 = vpop.f32.mrb[53].mxu1  ;;  %7202 = vmatmul.mubr.msk.f32.gmra.mrb[158].mxu1 %vm746_vm5, %v7138_v16  ;;  %v9506_v41 = vpop.f32.mrb[53].mxu0  ;;  %7344 = vmatmul.mubr.msk.f32.gmra.mrb[158].mxu0 %vm746_vm5, %v7280_v38  ;;  %v7281_v33 = vld [vmem:[%s11351_s2 + $0x5b8] sm:$0xff] }
 0x18d   : > { %11443 = vst [vmem:[#allocation86_spill] sm:$0xff] %v9503_v12  ;;  %1955 = vmatprep.mubr.f32.mxu1 %v8298_v0  ;;  %2745 = vmatprep.mubr.f32.mxu0 %v8298_v0 }
 0x18f   : > { %v9517_v27 = vpop.f32.mrb[54].mxu1  ;;  %v9519_v12 = vpop.f32.mrb[54].mxu0 }
 0x190   : > { %11444 = vst [vmem:[#allocation87_spill] sm:$0xff] %v9517_v27  ;;  %v9521_v16 = vpop.f32.mrb[55].mxu1  ;;  %7203 = vmatmul.mubr.msk.f32.gmra.mrb[160].mxu1 %vm746_vm5, %v7139_v31  ;;  %v9524_v38 = vpop.f32.mrb[55].mxu0  ;;  %7345 = vmatmul.mubr.msk.f32.gmra.mrb[160].mxu0 %vm746_vm5, %v7281_v33  ;;  %v7282_v27 = vld [vmem:[%s11351_s2 + $0x5c0] sm:$0xff] }
 0x191   : > { %11445 = vst [vmem:[#allocation88_spill] sm:$0xff] %v9521_v16  ;;  %1961 = vmatprep.mubr.f32.mxu1 %v8298_v0  ;;  %2751 = vmatprep.mubr.f32.mxu0 %v8298_v0 }
 0x193   : > { %v9535_v20 = vpop.f32.mrb[56].mxu1  ;;  %v9537_v16 = vpop.f32.mrb[56].mxu0 }
 0x194   : > { %11446 = vst [vmem:[#allocation89_spill] sm:$0xff] %v9535_v20  ;;  %v9539_v31 = vpop.f32.mrb[57].mxu1  ;;  %7204 = vmatmul.mubr.msk.f32.gmra.mrb[162].mxu1 %vm746_vm5, %v7140_v24  ;;  %v9542_v33 = vpop.f32.mrb[57].mxu0  ;;  %7346 = vmatmul.mubr.msk.f32.gmra.mrb[162].mxu0 %vm746_vm5, %v7282_v27  ;;  %v7283_v20 = vld [vmem:[%s11351_s2 + $0x5c8] sm:$0xff] }
 0x195   : > { %11447 = vst [vmem:[#allocation90_spill] sm:$0xff] %v9539_v31  ;;  %1967 = vmatprep.mubr.f32.mxu1 %v8298_v0  ;;  %2757 = vmatprep.mubr.f32.mxu0 %v8298_v0 }
 0x197   : > { %v9553_v53 = vpop.f32.mrb[58].mxu1  ;;  %v9555_v31 = vpop.f32.mrb[58].mxu0 }
 0x198   : > { %11448 = vst [vmem:[#allocation91_spill] sm:$0xff] %v9553_v53  ;;  %v9557_v24 = vpop.f32.mrb[59].mxu1  ;;  %7205 = vmatmul.mubr.msk.f32.gmra.mrb[164].mxu1 %vm746_vm5, %v7141_v18  ;;  %v9560_v27 = vpop.f32.mrb[59].mxu0  ;;  %7347 = vmatmul.mubr.msk.f32.gmra.mrb[164].mxu0 %vm746_vm5, %v7283_v20  ;;  %v7284_v53 = vld [vmem:[%s11351_s2 + $0x5d0] sm:$0xff] }
 0x199   : > { %11449 = vst [vmem:[#allocation92_spill] sm:$0xff] %v9557_v24  ;;  %1973 = vmatprep.mubr.f32.mxu1 %v8298_v0  ;;  %2763 = vmatprep.mubr.f32.mxu0 %v8298_v0 }
 0x19b   : > { %v9571_v59 = vpop.f32.mrb[60].mxu1  ;;  %v9573_v24 = vpop.f32.mrb[60].mxu0 }
 0x19c   : > { %11450 = vst [vmem:[#allocation93_spill] sm:$0xff] %v9571_v59  ;;  %v9575_v18 = vpop.f32.mrb[61].mxu1  ;;  %7206 = vmatmul.mubr.msk.f32.gmra.mrb[166].mxu1 %vm746_vm5, %v7142_v57  ;;  %v9578_v20 = vpop.f32.mrb[61].mxu0  ;;  %7348 = vmatmul.mubr.msk.f32.gmra.mrb[166].mxu0 %vm746_vm5, %v7284_v53  ;;  %v7285_v59 = vld [vmem:[%s11351_s2 + $0x5d8] sm:$0xff] }
 0x19d   : > { %11451 = vst [vmem:[#allocation94_spill] sm:$0xff] %v9575_v18  ;;  %1979 = vmatprep.mubr.f32.mxu1 %v8298_v0  ;;  %2769 = vmatprep.mubr.f32.mxu0 %v8298_v0 }
 0x19f   : > { %v9589_v2 = vpop.f32.mrb[62].mxu1  ;;  %v9591_v18 = vpop.f32.mrb[62].mxu0 }
 0x1a0   : > { %11452 = vst [vmem:[#allocation95_spill] sm:$0xff] %v9589_v2  ;;  %v9593_v57 = vpop.f32.mrb[63].mxu1  ;;  %7207 = vmatmul.mubr.msk.f32.gmra.mrb[168].mxu1 %vm746_vm5, %v7143_v63  ;;  %v9596_v53 = vpop.f32.mrb[63].mxu0  ;;  %7349 = vmatmul.mubr.msk.f32.gmra.mrb[168].mxu0 %vm746_vm5, %v7285_v59  ;;  %v7286_v2 = vld [vmem:[%s11351_s2 + $0x5e0] sm:$0xff] }
 0x1a1   : > { %11453 = vst [vmem:[#allocation96_spill] sm:$0xff] %v9593_v57  ;;  %1985 = vmatprep.mubr.f32.mxu1 %v8298_v0  ;;  %2775 = vmatprep.mubr.f32.mxu0 %v8298_v0 }
 0x1a3   : > { %v9607_v9 = vpop.f32.mrb[64].mxu1  ;;  %v9609_v57 = vpop.f32.mrb[64].mxu0 }
 0x1a4   : > { %11454 = vst [vmem:[#allocation97_spill] sm:$0xff] %v9607_v9  ;;  %v9611_v63 = vpop.f32.mrb[65].mxu1  ;;  %7208 = vmatmul.mubr.msk.f32.gmra.mrb[170].mxu1 %vm746_vm5, %v7144_v6  ;;  %v9614_v59 = vpop.f32.mrb[65].mxu0  ;;  %7350 = vmatmul.mubr.msk.f32.gmra.mrb[170].mxu0 %vm746_vm5, %v7286_v2  ;;  %v7287_v9 = vld [vmem:[%s11351_s2 + $0x5e8] sm:$0xff] }
 0x1a5   : > { %11455 = vst [vmem:[#allocation98_spill] sm:$0xff] %v9611_v63  ;;  %1991 = vmatprep.mubr.f32.mxu1 %v8298_v0  ;;  %2781 = vmatprep.mubr.f32.mxu0 %v8298_v0 }
 0x1a7   : > { %v9625_v23 = vpop.f32.mrb[66].mxu1  ;;  %v9627_v63 = vpop.f32.mrb[66].mxu0 }
 0x1a8   : > { %11456 = vst [vmem:[#allocation99_spill] sm:$0xff] %v9625_v23  ;;  %v9629_v6 = vpop.f32.mrb[67].mxu1  ;;  %7209 = vmatmul.mubr.msk.f32.gmra.mrb[172].mxu1 %vm746_vm5, %v7145_v15  ;;  %v9632_v2 = vpop.f32.mrb[67].mxu0  ;;  %7351 = vmatmul.mubr.msk.f32.gmra.mrb[172].mxu0 %vm746_vm5, %v7287_v9  ;;  %v7288_v23 = vld [vmem:[%s11351_s2 + $0x5f0] sm:$0xff] }
 0x1a9   : > { %11457 = vst [vmem:[#allocation100_spill] sm:$0xff] %v9629_v6  ;;  %1997 = vmatprep.mubr.f32.mxu1 %v8298_v0  ;;  %2787 = vmatprep.mubr.f32.mxu0 %v8298_v0 }
 0x1ab   : > { %v9643_v26 = vpop.f32.mrb[68].mxu1  ;;  %v9645_v6 = vpop.f32.mrb[68].mxu0 }
 0x1ac   : > { %11458 = vst [vmem:[#allocation101_spill] sm:$0xff] %v9643_v26  ;;  %v9647_v15 = vpop.f32.mrb[69].mxu1  ;;  %7210 = vmatmul.mubr.msk.f32.gmra.mrb[174].mxu1 %vm746_vm5, %v7146_v36  ;;  %v9650_v9 = vpop.f32.mrb[69].mxu0  ;;  %7352 = vmatmul.mubr.msk.f32.gmra.mrb[174].mxu0 %vm746_vm5, %v7288_v23  ;;  %v7289_v26 = vld [vmem:[%s11351_s2 + $0x5f8] sm:$0xff] }
 0x1ad   : > { %11459 = vst [vmem:[#allocation102_spill] sm:$0xff] %v9647_v15  ;;  %2003 = vmatprep.mubr.f32.mxu1 %v8298_v0  ;;  %2793 = vmatprep.mubr.f32.mxu0 %v8298_v0 }
 0x1af   : > { %v9661_v56 = vpop.f32.mrb[70].mxu1  ;;  %v9663_v15 = vpop.f32.mrb[70].mxu0 }
 0x1b0   : > { %11460 = vst [vmem:[#allocation103_spill] sm:$0xff] %v9661_v56  ;;  %v9665_v36 = vpop.f32.mrb[71].mxu1  ;;  %7211 = vmatmul.mubr.msk.f32.gmra.mrb[176].mxu1 %vm746_vm5, %v7147_v50  ;;  %v9668_v23 = vpop.f32.mrb[71].mxu0  ;;  %7353 = vmatmul.mubr.msk.f32.gmra.mrb[176].mxu0 %vm746_vm5, %v7289_v26  ;;  %v7149_v50 = vld [vmem:[%s11351_s2 + $0x398] sm:$0xff] }
 0x1b1   : > { %11461 = vst [vmem:[#allocation104_spill] sm:$0xff] %v9665_v36  ;;  %2009 = vmatprep.mubr.f32.mxu1 %v8298_v0 }
 0x1b3   : > { %v9675_v14 = vpop.f32.mrb[72].mxu1  ;;  %v9677_v10 = vpop.f32.mrb[72].mxu0 }
 0x1b4   : > { %11462 = vst [vmem:[#allocation105_spill] sm:$0xff] %v9675_v14  ;;  %v9679_v56 = vpop.f32.mrb[73].mxu1  ;;  %7212 = vmatmul.mubr.msk.f32.gmra.mrb[178].mxu1 %vm746_vm5, %v7148_v5  ;;  %v9682_v36 = vpop.f32.mrb[73].mxu0  ;;  %v7150_v5 = vld [vmem:[%s11351_s2 + $0x3a0] sm:$0xff] }
 0x1b5   : > { %11463 = vst [vmem:[#allocation106_spill] sm:$0xff] %v9679_v56  ;;  %2015 = vmatprep.mubr.f32.mxu1 %v8298_v0 }
 0x1b7   : > { %v9688_v26 = vpop.f32.mrb[74].mxu1  ;;  %v9690_v49 = vpop.f32.mrb[74].mxu0 }
 0x1b8   : > { %11464 = vst [vmem:[#allocation107_spill] sm:$0xff] %v9688_v26  ;;  %v9692_v35 = vpop.f32.mrb[75].mxu1  ;;  %7213 = vmatmul.mubr.msk.f32.gmra.mrb[180].mxu1 %vm746_vm5, %v7149_v50  ;;  %v9695_v14 = vpop.f32.mrb[75].mxu0  ;;  %v7151_v50 = vld [vmem:[%s11351_s2 + $0x3a8] sm:$0xff] }
 0x1b9   : > { %11465 = vst [vmem:[#allocation108_spill] sm:$0xff] %v9692_v35  ;;  %2021 = vmatprep.mubr.f32.mxu1 %v8298_v0 }
 0x1bb   : > { %v9701_v56 = vpop.f32.mrb[76].mxu1  ;;  %v9703_v44 = vpop.f32.mrb[76].mxu0 }
 0x1bc   : > { %11466 = vst [vmem:[#allocation109_spill] sm:$0xff] %v9701_v56  ;;  %11467 = vst [vmem:[#allocation110_spill] sm:$0xff] %v9703_v44  ;;  %v9705_v62 = vpop.f32.mrb[77].mxu1  ;;  %7214 = vmatmul.mubr.msk.f32.gmra.mrb[182].mxu1 %vm746_vm5, %v7150_v5  ;;  %v9708_v26 = vpop.f32.mrb[77].mxu0 }
 0x1bd   : > { %11468 = vst [vmem:[#allocation111_spill] sm:$0xff] %v9705_v62  ;;  %11469 = vst [vmem:[#allocation112_spill] sm:$0xff] %v9708_v26  ;;  %2027 = vmatprep.mubr.f32.mxu1 %v8298_v0  ;;  %v7152_v62 = vld [vmem:[%s11351_s2 + $0x3b0] sm:$0xff] }
 0x1bf   : > { %v1711_v35 = vpop.f32.mrb[78].mxu1  ;;  %v9714_v4 = vpop.f32.mrb[78].mxu0 }
 0x1c0   : > { %11470 = vst [vmem:[#allocation113_spill] sm:$0xff] %v9714_v4  ;;  %v2800_v7 = vmul.f32 %v1711_v35, %v9033_v19  ;;  %v1713_v56 = vpop.f32.mrb[79].mxu1  ;;  %7215 = vmatmul.mubr.msk.f32.gmra.mrb[184].mxu1 %vm746_vm5, %v7151_v50  ;;  %v9718_v44 = vpop.f32.mrb[79].mxu0 }
 0x1c1   : > { %v2801_v5 = vmul.f32 %v1713_v56, %v9038_v21  ;;  %2033 = vmatprep.mubr.f32.mxu1 %v8298_v0 }
 0x1c2   : > { %v2928_v26 = vmul.f32 %v2800_v7, %v9483_v51  ;;  %v7153_v7 = vld [vmem:[%s11351_s2 + $0x3b8] sm:$0xff] }
 0x1c3   : > { %v1717_v30 = vpop.f32.mrb[80].mxu1  ;;  %v2929_v4 = vmul.f32 %v2801_v5, %v9488_v47  ;;  %v9727_v13 = vpop.f32.mrb[80].mxu0 }
 0x1c4   : > { %11471 = vst [vmem:[#allocation114_spill] sm:$0xff] %v9727_v13  ;;  %v1719_v19 = vpop.f32.mrb[81].mxu1  ;;  %7216 = vmatmul.mubr.msk.f32.gmra.mrb[186].mxu1 %vm746_vm5, %v7152_v62  ;;  %v2802_v35 = vmul.f32 %v1717_v30, %v9051_v25  ;;  %v9731_v50 = vpop.f32.mrb[81].mxu0 }
 0x1c5   : > { %v2803_v21 = vmul.f32 %v1719_v19, %v9056_v28  ;;  %2039 = vmatprep.mubr.f32.mxu1 %v8298_v0 }
 0x1c6   : > { %v2930_v56 = vmul.f32 %v2802_v35, %v9501_v45  ;;  %v7154_v45 = vld [vmem:[%s11351_s2 + $0x3c0] sm:$0xff] }
 0x1c7   : > { %v2931_v51 = vmul.f32 %v2803_v21, %v9506_v41  ;;  %v1723_v47 = vpop.f32.mrb[82].mxu1  ;;  %v9740_v5 = vpop.f32.mrb[82].mxu0 }
 0x1c8   : > { %v3056_v62 = vpack.c.bf16 %v2930_v56, %v2928_v26  ;;  %v1725_v13 = vpop.f32.mrb[83].mxu1  ;;  %7217 = vmatmul.mubr.msk.f32.gmra.mrb[188].mxu1 %vm746_vm5, %v7153_v7  ;;  %v2804_v25 = vmul.f32 %v1723_v47, %v9069_v32  ;;  %v9744_v28 = vpop.f32.mrb[83].mxu0 }
 0x1c9   : > { %v3057_v30 = vpack.c.bf16 %v2931_v51, %v2929_v4  ;;  %v2805_v19 = vmul.f32 %v1725_v13, %v9074_v34  ;;  %2045 = vmatprep.mubr.f32.mxu1 %v8298_v0 }
 0x1ca   : > { %v2932_v41 = vmul.f32 %v2804_v25, %v9519_v12  ;;  %v7155_v12 = vld [vmem:[%s11351_s2 + $0x3c8] sm:$0xff] }
 0x1cb   : > { %v2933_v26 = vmul.f32 %v2805_v19, %v9524_v38  ;;  %v1729_v35 = vpop.f32.mrb[84].mxu1  ;;  %3280 = vmatprep.subr.bf16.mxu1 %v3057_v30  ;;  %v9753_v21 = vpop.f32.mrb[84].mxu0 }
 0x1cc   : > { %v1731_v32 = vpop.f32.mrb[85].mxu1  ;;  %7218 = vmatmul.mubr.msk.f32.gmra.mrb[190].mxu1 %vm746_vm5, %v7154_v45  ;;  %v2806_v4 = vmul.f32 %v1729_v35, %v9087_v37  ;;  %v9757_v34 = vpop.f32.mrb[85].mxu0 }
 0x1cd   : > { %3281 = vmatpush1.bf16.msra.mxu1 %v3056_v62  ;;  %v2807_v13 = vmul.f32 %v1731_v32, %v9092_v17  ;;  %2051 = vmatprep.mubr.f32.mxu1 %v8298_v0 }
 0x1ce   : > { %v2934_v38 = vmul.f32 %v2806_v4, %v9537_v16  ;;  %v7156_v16 = vld [vmem:[%s11351_s2 + $0x3d0] sm:$0xff] }
 0x1cf   : > { %v2935_v7 = vmul.f32 %v2807_v13, %v9542_v33  ;;  %v1735_v56 = vpop.f32.mrb[86].mxu1  ;;  %v9766_v51 = vpop.f32.mrb[86].mxu0 }
 0x1d0   : > { %v3058_v47 = vpack.c.bf16 %v2934_v38, %v2932_v41  ;;  %v1737_v37 = vpop.f32.mrb[87].mxu1  ;;  %7219 = vmatmul.mubr.msk.f32.gmra.mrb[192].mxu1 %vm746_vm5, %v7155_v12  ;;  %v2808_v62 = vmul.f32 %v1735_v56, %v9105_v40  ;;  %v9770_v17 = vpop.f32.mrb[87].mxu0 }
 0x1d1   : > { %v3059_v25 = vpack.c.bf16 %v2935_v7, %v2933_v26  ;;  %v2809_v30 = vmul.f32 %v1737_v37, %v9110_v42  ;;  %2057 = vmatprep.mubr.f32.mxu1 %v8298_v0 }
 0x1d2   : > { %v2936_v33 = vmul.f32 %v2808_v62, %v9555_v31  ;;  %v7157_v31 = vld [vmem:[%s11351_s2 + $0x3d8] sm:$0xff] }
 0x1d3   : > { %v2937_v19 = vmul.f32 %v2809_v30, %v9560_v27  ;;  %v1741_v45 = vpop.f32.mrb[88].mxu1  ;;  %3282 = vmatprep.subr.bf16.mxu1 %v3059_v25  ;;  %v9779_v41 = vpop.f32.mrb[88].mxu0 }
 0x1d4   : > { %v1743_v40 = vpop.f32.mrb[89].mxu1  ;;  %7220 = vmatmul.mubr.msk.f32.gmra.mrb[194].mxu1 %vm746_vm5, %v7156_v16  ;;  %v2810_v26 = vmul.f32 %v1741_v45, %v9123_v46  ;;  %v9783_v42 = vpop.f32.mrb[89].mxu0 }
 0x1d5   : > { %3283 = vmatpush1.bf16.msra.mxu1 %v3058_v47  ;;  %v2811_v35 = vmul.f32 %v1743_v40, %v9128_v48  ;;  %2063 = vmatprep.mubr.f32.mxu1 %v8298_v0 }
 0x1d6   : > { %v2938_v27 = vmul.f32 %v2810_v26, %v9573_v24  ;;  %v7158_v24 = vld [vmem:[%s11351_s2 + $0x3e0] sm:$0xff] }
 0x1d7   : > { %v2939_v32 = vmul.f32 %v2811_v35, %v9578_v20  ;;  %v1747_v4 = vpop.f32.mrb[90].mxu1  ;;  %v9792_v13 = vpop.f32.mrb[90].mxu0 }
 0x1d8   : > { %v3060_v12 = vpack.c.bf16 %v2938_v27, %v2936_v33  ;;  %v1749_v46 = vpop.f32.mrb[91].mxu1  ;;  %7221 = vmatmul.mubr.msk.f32.gmra.mrb[196].mxu1 %vm746_vm5, %v7157_v31  ;;  %v2812_v38 = vmul.f32 %v1747_v4, %v9141_v52  ;;  %v9796_v48 = vpop.f32.mrb[91].mxu0 }
 0x1d9   : > { %v3061_v7 = vpack.c.bf16 %v2939_v32, %v2937_v19  ;;  %v2813_v56 = vmul.f32 %v1749_v46, %v9146_v54  ;;  %2069 = vmatprep.mubr.f32.mxu1 %v8298_v0 }
 0x1da   : > { %v2940_v20 = vmul.f32 %v2812_v38, %v9591_v18  ;;  %v7159_v18 = vld [vmem:[%s11351_s2 + $0x3e8] sm:$0xff] }
 0x1db   : > { %v2941_v47 = vmul.f32 %v2813_v56, %v9596_v53  ;;  %v1753_v37 = vpop.f32.mrb[92].mxu1  ;;  %3284 = vmatprep.subr.bf16.mxu1 %v3061_v7  ;;  %v9805_v62 = vpop.f32.mrb[92].mxu0 }
 0x1dc   : > { %v1755_v52 = vpop.f32.mrb[93].mxu1  ;;  %7222 = vmatmul.mubr.msk.f32.gmra.mrb[198].mxu1 %vm746_vm5, %v7158_v24  ;;  %v2814_v25 = vmul.f32 %v1753_v37, %v9159_v58  ;;  %v9809_v54 = vpop.f32.mrb[93].mxu0 }
 0x1dd   : > { %3285 = vmatpush1.bf16.msra.mxu1 %v3060_v12  ;;  %v2815_v30 = vmul.f32 %v1755_v52, %v9164_v60  ;;  %2075 = vmatprep.mubr.f32.mxu1 %v8298_v0 }
 0x1de   : > { %v2942_v53 = vmul.f32 %v2814_v25, %v9609_v57  ;;  %v7160_v57 = vld [vmem:[%s11351_s2 + $0x3f0] sm:$0xff] }
 0x1df   : > { %v2943_v16 = vmul.f32 %v2815_v30, %v9614_v59  ;;  %v1759_v33 = vpop.f32.mrb[94].mxu1  ;;  %v9818_v19 = vpop.f32.mrb[94].mxu0 }
 0x1e0   : > { %v3062_v45 = vpack.c.bf16 %v2942_v53, %v2940_v20  ;;  %v1761_v58 = vpop.f32.mrb[95].mxu1  ;;  %7223 = vmatmul.mubr.msk.f32.gmra.mrb[200].mxu1 %vm746_vm5, %v7159_v18  ;;  %v2816_v40 = vmul.f32 %v1759_v33, %v9177_v1  ;;  %v9822_v60 = vpop.f32.mrb[95].mxu0 }
 0x1e1   : > { %v3063_v26 = vpack.c.bf16 %v2943_v16, %v2941_v47  ;;  %v2817_v35 = vmul.f32 %v1761_v58, %v9182_v3  ;;  %2081 = vmatprep.mubr.f32.mxu1 %v8298_v0 }
 0x1e2   : > { %v2944_v59 = vmul.f32 %v2816_v40, %v9627_v63  ;;  %v7161_v63 = vld [vmem:[%s11351_s2 + $0x3f8] sm:$0xff] }
 0x1e3   : > { %v2945_v31 = vmul.f32 %v2817_v35, %v9632_v2  ;;  %v1765_v27 = vpop.f32.mrb[96].mxu1  ;;  %3286 = vmatprep.subr.bf16.mxu1 %v3063_v26  ;;  %v9831_v32 = vpop.f32.mrb[96].mxu0  ;;  %v7928_v2 = vld [vmem:[%s8438_s27 + $0x4] ss:$16 sps:$4 sm:$0xff]  }
 0x1e4   : > { %v1767_v1 = vpop.f32.mrb[97].mxu1  ;;  %7224 = vmatmul.mubr.msk.f32.gmra.mrb[202].mxu1 %vm746_vm5, %v7160_v57  ;;  %v2818_v3 = vmul.f32 %v1765_v27, %v9195_v8  ;;  %v9835_v4 = vpop.f32.mrb[97].mxu0  ;;  %v11472_v57 = vld [vmem:[#allocation36_spill] sm:$0xff] }
 0x1e5   : > { %3287 = vmatpush1.bf16.msra.mxu1 %v3062_v45  ;;  %v2819_v12 = vmul.f32 %v1767_v1, %v9200_v11  ;;  %2087 = vmatprep.mubr.f32.mxu1 %v8298_v0  ;;  %v11474_v1 = vld [vmem:[#allocation110_spill] sm:$0xff] }
 0x1e6   : > { %v2946_v46 = vmul.f32 %v2818_v3, %v9645_v6 }
 0x1e7   : > { %v2947_v38 = vmul.f32 %v2819_v12, %v9650_v9  ;;  %v1771_v7 = vpop.f32.mrb[98].mxu1  ;;  %v9845_v56 = vpop.f32.mrb[98].mxu0  ;;  %v11475_v12 = vld [vmem:[#allocation112_spill] sm:$0xff] }
 0x1e8   : > { %v3064_v8 = vpack.c.bf16 %v2946_v46, %v2944_v59  ;;  %v1773_v24 = vpop.f32.mrb[99].mxu1  ;;  %7225 = vmatmul.mubr.msk.f32.gmra.mrb[204].mxu1 %vm746_vm5, %v7161_v63  ;;  %v2820_v11 = vmul.f32 %v1771_v7, %v9213_v22  ;;  %v9849_v20 = vpop.f32.mrb[99].mxu0  ;;  %v11476_v46 = vld [vmem:[#allocation40_spill] sm:$0xff] }
 0x1e9   : > { %v3065_v0 = vpack.c.bf16 %v2947_v38, %v2945_v31  ;;  %v2821_v47 = vmul.f32 %v1773_v24, %v9218_v29  ;;  %3312 = vmatprep.mubr.bf16.mxu1 %v7928_v2  ;;  %v11477_v24 = vld [vmem:[#allocation42_spill] sm:$0xff] }
 0x1ea   : > { %v2948_v37 = vmul.f32 %v2820_v11, %v9663_v15 }
 0x1eb   : > { %v2949_v6 = vmul.f32 %v2821_v47, %v9668_v23  ;;  %v1777_v9 = vpop.f32.mrb[100].mxu1  ;;  %3288 = vmatprep.subr.bf16.mxu1 %v3065_v0  ;;  %v9854_v52 = vpop.f32.mrb[100].mxu0  ;;  %v11478_v0 = vld [vmem:[#allocation113_spill] sm:$0xff] }
 0x1ec   : > { %v1779_v25 = vpop.f32.mrb[101].mxu1  ;;  %v2822_v30 = vmul.f32 %v1777_v9, %v9231_v39  ;;  %3289 = vmatpush1.bf16.msra.mxu1 %v3064_v8  ;;  %v9857_v18 = vpop.f32.mrb[101].mxu0 }
 0x1ed   : > { %v2823_v22 = vmul.f32 %v1779_v25, %v9236_v43 }
 0x1ee   : > { %v2950_v53 = vmul.f32 %v2822_v30, %v9677_v10  ;;  %v11479_v30 = vld [vmem:[#allocation44_spill] sm:$0xff] }
 0x1ef   : > { %v2951_v29 = vmul.f32 %v2823_v22, %v9682_v36  ;;  %v1783_v16 = vpop.f32.mrb[102].mxu1  ;;  %v9862_v15 = vpop.f32.mrb[102].mxu0 }
 0x1f0   : > { %v3066_v23 = vpack.c.bf16 %v2950_v53, %v2948_v37  ;;  %v1785_v33 = vpop.f32.mrb[103].mxu1  ;;  %v2824_v45 = vmul.f32 %v1783_v16, %v9249_v55  ;;  %v9865_v58 = vpop.f32.mrb[103].mxu0  ;;  %v11473_v55 = vld [vmem:[#allocation38_spill] sm:$0xff] }
 0x1f1   : > { %v3067_v40 = vpack.c.bf16 %v2951_v29, %v2949_v6  ;;  %v2825_v39 = vmul.f32 %v1785_v33, %v9254_v61  ;;  %v11480_v29 = vld [vmem:[#allocation46_spill] sm:$0xff] }
 0x1f2   : > { %v2952_v26 = vmul.f32 %v2824_v45, %v9690_v49 }
 0x1f3   : > { %v2953_v43 = vmul.f32 %v2825_v39, %v9695_v14  ;;  %v1789_v35 = vpop.f32.mrb[104].mxu1  ;;  %3290 = vmatprep.subr.bf16.mxu1 %v3067_v40  ;;  %v9870_v10 = vpop.f32.mrb[104].mxu0 }
 0x1f4   : > { %v1791_v36 = vpop.f32.mrb[105].mxu1  ;;  %v2826_v59 = vmul.f32 %v1789_v35, %v11472_v57  ;;  %3291 = vmatpush1.bf16.msra.mxu1 %v3066_v23  ;;  %v9873_v31 = vpop.f32.mrb[105].mxu0  ;;  %v11481_v23 = vld [vmem:[#allocation114_spill] sm:$0xff] }
 0x1f5   : > { %v2827_v27 = vmul.f32 %v1791_v36, %v11473_v55 }
 0x1f6   : > { %v2954_v3 = vmul.f32 %v2826_v59, %v11474_v1  ;;  %v11483_v59 = vld [vmem:[#allocation50_spill] sm:$0xff] }
 0x1f7   : > { %v2955_v61 = vmul.f32 %v2827_v27, %v11475_v12  ;;  %v1795_v63 = vpop.f32.mrb[106].mxu1  ;;  %v9878_v49 = vpop.f32.mrb[106].mxu0 }
 0x1f8   : > { %v3068_v14 = vpack.c.bf16 %v2954_v3, %v2952_v26  ;;  %v1797_v2 = vpop.f32.mrb[107].mxu1  ;;  %v2828_v38 = vmul.f32 %v1795_v63, %v11476_v46  ;;  %v9881_v7 = vpop.f32.mrb[107].mxu0 }
 0x1f9   : > { %v3069_v8 = vpack.c.bf16 %v2955_v61, %v2953_v43  ;;  %v2829_v11 = vmul.f32 %v1797_v2, %v11477_v24  ;;  %v11482_v43 = vld [vmem:[#allocation48_spill] sm:$0xff]  ;;  %v11485_v2 = vld [vmem:[#allocation54_spill] sm:$0xff] }
 0x1fa   : > { %v2956_v47 = vmul.f32 %v2828_v38, %v11478_v0  ;;  %v11484_v61 = vld [vmem:[#allocation52_spill] sm:$0xff] }
 0x1fb   : > { %v2957_v37 = vmul.f32 %v2829_v11, %v9718_v44  ;;  %v1801_v6 = vpop.f32.mrb[108].mxu1  ;;  %3292 = vmatprep.subr.bf16.mxu1 %v3069_v8  ;;  %v9886_v9 = vpop.f32.mrb[108].mxu0  ;;  %v11486_v0 = vld [vmem:[#allocation56_spill] sm:$0xff] }
 0x1fc   : > { %v1803_v25 = vpop.f32.mrb[109].mxu1  ;;  %v2830_v22 = vmul.f32 %v1801_v6, %v11479_v30  ;;  %3293 = vmatpush1.bf16.msra.mxu1 %v3068_v14  ;;  %v9889_v53 = vpop.f32.mrb[109].mxu0 }
 0x1fd   : > { %v2831_v16 = vmul.f32 %v1803_v25, %v11480_v29  ;;  %v11487_v25 = vld [vmem:[#allocation58_spill] sm:$0xff] }
 0x1fe   : > { %v2958_v33 = vmul.f32 %v2830_v22, %v11481_v23 }
 0x1ff   : > { %v2959_v45 = vmul.f32 %v2831_v16, %v9731_v50  ;;  %v1807_v40 = vpop.f32.mrb[110].mxu1  ;;  %v9894_v39 = vpop.f32.mrb[110].mxu0 }
 0x200   : > { %v3070_v44 = vpack.c.bf16 %v2958_v33, %v2956_v47  ;;  %v1809_v26 = vpop.f32.mrb[111].mxu1  ;;  %v2832_v35 = vmul.f32 %v1807_v40, %v11482_v43  ;;  %v9897_v36 = vpop.f32.mrb[111].mxu0  ;;  %v11489_v40 = vld [vmem:[#allocation62_spill] sm:$0xff] }
 0x201   : > { %v3071_v57 = vpack.c.bf16 %v2959_v45, %v2957_v37  ;;  %v2833_v55 = vmul.f32 %v1809_v26, %v11483_v59 }
 0x202   : > { %v2960_v27 = vmul.f32 %v2832_v35, %v9740_v5 }
 0x203   : > { %v2961_v1 = vmul.f32 %v2833_v55, %v9744_v28  ;;  %v1813_v3 = vpop.f32.mrb[112].mxu1  ;;  %3294 = vmatprep.subr.bf16.mxu1 %v3071_v57  ;;  %v9902_v12 = vpop.f32.mrb[112].mxu0  ;;  %v11490_v57 = vld [vmem:[#allocation64_spill] sm:$0xff] }
 0x204   : > { %v1815_v50 = vpop.f32.mrb[113].mxu1  ;;  %v2834_v63 = vmul.f32 %v1813_v3, %v11484_v61  ;;  %3295 = vmatpush1.bf16.msra.mxu1 %v3070_v44  ;;  %v9905_v14 = vpop.f32.mrb[113].mxu0  ;;  %v11491_v3 = vld [vmem:[#allocation66_spill] sm:$0xff] }
 0x205   : > { %v2835_v46 = vmul.f32 %v1815_v50, %v11485_v2 }
 0x206   : > { %v2962_v38 = vmul.f32 %v2834_v63, %v9753_v21 }
 0x207   : > { %v2963_v8 = vmul.f32 %v2835_v46, %v9757_v34  ;;  %v1819_v24 = vpop.f32.mrb[114].mxu1  ;;  %v9910_v5 = vpop.f32.mrb[114].mxu0  ;;  %v11488_v34 = vld [vmem:[#allocation60_spill] sm:$0xff] }
 0x208   : > { %v3072_v28 = vpack.c.bf16 %v2962_v38, %v2960_v27  ;;  %v1821_v11 = vpop.f32.mrb[115].mxu1  ;;  %v2836_v47 = vmul.f32 %v1819_v24, %v11486_v0  ;;  %v9913_v37 = vpop.f32.mrb[115].mxu0  ;;  %v11493_v24 = vld [vmem:[#allocation70_spill] sm:$0xff] }
 0x209   : > { %v3073_v6 = vpack.c.bf16 %v2963_v8, %v2961_v1  ;;  %v2837_v30 = vmul.f32 %v1821_v11, %v11487_v25 }
 0x20a   : > { %v2964_v22 = vmul.f32 %v2836_v47, %v9766_v51 }
 0x20b   : > { %v2965_v29 = vmul.f32 %v2837_v30, %v9770_v17  ;;  %v1825_v16 = vpop.f32.mrb[116].mxu1  ;;  %3296 = vmatprep.subr.bf16.mxu1 %v3073_v6  ;;  %v9918_v21 = vpop.f32.mrb[116].mxu0  ;;  %v11494_v6 = vld [vmem:[#allocation72_spill] sm:$0xff] }
 0x20c   : > { %v2838_v23 = vmul.f32 %v1825_v16, %v11488_v34  ;;  %v1827_v33 = vpop.f32.mrb[117].mxu1  ;;  %3297 = vmatpush1.bf16.msra.mxu1 %v3072_v28  ;;  %v9921_v45 = vpop.f32.mrb[117].mxu0  ;;  %v11495_v16 = vld [vmem:[#allocation74_spill] sm:$0xff] }
 0x20d   : > { %v2839_v44 = vmul.f32 %v1827_v33, %v11489_v40 }
 0x20e   : > { %v2966_v26 = vmul.f32 %v2838_v23, %v9779_v41 }
 0x20f   : > { %v2967_v43 = vmul.f32 %v2839_v44, %v9783_v42  ;;  %v1831_v35 = vpop.f32.mrb[118].mxu1  ;;  %v9926_v51 = vpop.f32.mrb[118].mxu0  ;;  %v11492_v42 = vld [vmem:[#allocation68_spill] sm:$0xff] }
 0x210   : > { %v3074_v17 = vpack.c.bf16 %v2966_v26, %v2964_v22  ;;  %v2840_v59 = vmul.f32 %v1831_v35, %v11490_v57  ;;  %v1833_v55 = vpop.f32.mrb[119].mxu1  ;;  %v9929_v27 = vpop.f32.mrb[119].mxu0  ;;  %v11497_v35 = vld [vmem:[#allocation78_spill] sm:$0xff] }
 0x211   : > { %v3075_v1 = vpack.c.bf16 %v2967_v43, %v2965_v29  ;;  %v2841_v50 = vmul.f32 %v1833_v55, %v11491_v3 }
 0x212   : > { %v2968_v61 = vmul.f32 %v2840_v59, %v9792_v13 }
 0x213   : > { %v2969_v63 = vmul.f32 %v2841_v50, %v9796_v48  ;;  %v1837_v2 = vpop.f32.mrb[120].mxu1  ;;  %3298 = vmatprep.subr.bf16.mxu1 %v3075_v1  ;;  %v9934_v41 = vpop.f32.mrb[120].mxu0  ;;  %v11498_v1 = vld [vmem:[#allocation80_spill] sm:$0xff] }
 0x214   : > { %v2842_v46 = vmul.f32 %v1837_v2, %v11492_v42  ;;  %v1839_v38 = vpop.f32.mrb[121].mxu1  ;;  %3299 = vmatpush1.bf16.msra.mxu1 %v3074_v17  ;;  %v9937_v8 = vpop.f32.mrb[121].mxu0  ;;  %v11499_v2 = vld [vmem:[#allocation82_spill] sm:$0xff] }
 0x215   : > { %v2843_v28 = vmul.f32 %v1839_v38, %v11493_v24 }
 0x216   : > { %v2970_v11 = vmul.f32 %v2842_v46, %v9805_v62 }
 0x217   : > { %v2971_v0 = vmul.f32 %v2843_v28, %v9809_v54  ;;  %v1843_v47 = vpop.f32.mrb[122].mxu1  ;;  %v9942_v13 = vpop.f32.mrb[122].mxu0  ;;  %v11496_v54 = vld [vmem:[#allocation76_spill] sm:$0xff] }
 0x218   : > { %v3076_v48 = vpack.c.bf16 %v2970_v11, %v2968_v61  ;;  %v2844_v25 = vmul.f32 %v1843_v47, %v11494_v6  ;;  %v1845_v30 = vpop.f32.mrb[123].mxu1  ;;  %v9945_v22 = vpop.f32.mrb[123].mxu0  ;;  %v11501_v47 = vld [vmem:[#allocation10_spill] sm:$0xff] }
 0x219   : > { %v3077_v29 = vpack.c.bf16 %v2971_v0, %v2969_v63  ;;  %v2845_v34 = vmul.f32 %v1845_v30, %v11495_v16 }
 0x21a   : > { %v2972_v23 = vmul.f32 %v2844_v25, %v9818_v19 }
 0x21b   : > { %v2973_v33 = vmul.f32 %v2845_v34, %v9822_v60  ;;  %v1849_v40 = vpop.f32.mrb[124].mxu1  ;;  %3300 = vmatprep.subr.bf16.mxu1 %v3077_v29  ;;  %v9950_v62 = vpop.f32.mrb[124].mxu0  ;;  %v11502_v29 = vld [vmem:[#allocation11_spill] sm:$0xff] }
 0x21c   : > { %v2846_v44 = vmul.f32 %v1849_v40, %v11496_v54  ;;  %v1851_v26 = vpop.f32.mrb[125].mxu1  ;;  %3301 = vmatpush1.bf16.msra.mxu1 %v3076_v48  ;;  %v9953_v43 = vpop.f32.mrb[125].mxu0  ;;  %v11503_v40 = vld [vmem:[#allocation12_spill] sm:$0xff] }
 0x21d   : > { %v2847_v17 = vmul.f32 %v1851_v26, %v11497_v35 }
 0x21e   : > { %v2974_v57 = vmul.f32 %v2846_v44, %v9831_v32 }
 0x21f   : > { %v2975_v59 = vmul.f32 %v2847_v17, %v9835_v4  ;;  %v1855_v55 = vpop.f32.mrb[126].mxu1  ;;  %v9958_v19 = vpop.f32.mrb[126].mxu0  ;;  %v11500_v4 = vld [vmem:[#allocation9_spill] sm:$0xff] }
 0x220   : > { %v3078_v60 = vpack.c.bf16 %v2974_v57, %v2972_v23  ;;  %v2848_v3 = vmul.f32 %v1855_v55, %v11498_v1  ;;  %v1857_v50 = vpop.f32.mrb[127].mxu1  ;;  %v9961_v61 = vpop.f32.mrb[127].mxu0  ;;  %v11505_v55 = vld [vmem:[#allocation14_spill] sm:$0xff] }
 0x221   : > { %v3079_v63 = vpack.c.bf16 %v2975_v59, %v2973_v33  ;;  %v2849_v42 = vmul.f32 %v1857_v50, %v11499_v2 }
 0x222   : > { %v2976_v46 = vmul.f32 %v2848_v3, %v9845_v56 }
 0x223   : > { %v2977_v38 = vmul.f32 %v2849_v42, %v9849_v20  ;;  %v1861_v24 = vpop.f32.mrb[128].mxu1  ;;  %3302 = vmatprep.subr.bf16.mxu1 %v3079_v63  ;;  %v9966_v32 = vpop.f32.mrb[128].mxu0  ;;  %v11506_v63 = vld [vmem:[#allocation15_spill] sm:$0xff] }
 0x224   : > { %v2850_v28 = vmul.f32 %v1861_v24, %v11500_v4  ;;  %v1863_v11 = vpop.f32.mrb[129].mxu1  ;;  %3303 = vmatpush1.bf16.msra.mxu1 %v3078_v60  ;;  %v9969_v0 = vpop.f32.mrb[129].mxu0  ;;  %v11507_v24 = vld [vmem:[#allocation16_spill] sm:$0xff] }
 0x225   : > { %v2851_v48 = vmul.f32 %v1863_v11, %v11501_v47 }
 0x226   : > { %v2978_v6 = vmul.f32 %v2850_v28, %v9854_v52 }
 0x227   : > { %v2979_v25 = vmul.f32 %v2851_v48, %v9857_v18  ;;  %v1867_v30 = vpop.f32.mrb[130].mxu1  ;;  %v9974_v56 = vpop.f32.mrb[130].mxu0  ;;  %v11504_v18 = vld [vmem:[#allocation13_spill] sm:$0xff] }
 0x228   : > { %v3080_v20 = vpack.c.bf16 %v2978_v6, %v2976_v46  ;;  %v2852_v16 = vmul.f32 %v1867_v30, %v11502_v29  ;;  %v1869_v34 = vpop.f32.mrb[131].mxu1  ;;  %v9977_v23 = vpop.f32.mrb[131].mxu0  ;;  %v11509_v30 = vld [vmem:[#allocation18_spill] sm:$0xff] }
 0x229   : > { %v3081_v33 = vpack.c.bf16 %v2979_v25, %v2977_v38  ;;  %v2853_v54 = vmul.f32 %v1869_v34, %v11503_v40 }
 0x22a   : > { %v2980_v44 = vmul.f32 %v2852_v16, %v9862_v15 }
 0x22b   : > { %v2981_v26 = vmul.f32 %v2853_v54, %v9865_v58  ;;  %v1873_v35 = vpop.f32.mrb[132].mxu1  ;;  %3304 = vmatprep.subr.bf16.mxu1 %v3081_v33  ;;  %v9982_v52 = vpop.f32.mrb[132].mxu0  ;;  %v11510_v33 = vld [vmem:[#allocation19_spill] sm:$0xff] }
 0x22c   : > { %v2854_v17 = vmul.f32 %v1873_v35, %v11504_v18  ;;  %v1875_v57 = vpop.f32.mrb[133].mxu1  ;;  %3305 = vmatpush1.bf16.msra.mxu1 %v3080_v20  ;;  %v9985_v59 = vpop.f32.mrb[133].mxu0  ;;  %v11511_v35 = vld [vmem:[#allocation20_spill] sm:$0xff] }
 0x22d   : > { %v2855_v60 = vmul.f32 %v1875_v57, %v11505_v55 }
 0x22e   : > { %v2982_v1 = vmul.f32 %v2854_v17, %v9870_v10 }
 0x22f   : > { %v2983_v3 = vmul.f32 %v2855_v60, %v9873_v31  ;;  %v1879_v50 = vpop.f32.mrb[134].mxu1  ;;  %v9990_v15 = vpop.f32.mrb[134].mxu0  ;;  %v11508_v31 = vld [vmem:[#allocation17_spill] sm:$0xff] }
 0x230   : > { %v3082_v58 = vpack.c.bf16 %v2982_v1, %v2980_v44  ;;  %v2856_v2 = vmul.f32 %v1879_v50, %v11506_v63  ;;  %v1881_v42 = vpop.f32.mrb[135].mxu1  ;;  %v9993_v46 = vpop.f32.mrb[135].mxu0  ;;  %v11513_v50 = vld [vmem:[#allocation22_spill] sm:$0xff] }
 0x231   : > { %v3083_v38 = vpack.c.bf16 %v2983_v3, %v2981_v26  ;;  %v2857_v4 = vmul.f32 %v1881_v42, %v11507_v24 }
 0x232   : > { %v2984_v28 = vmul.f32 %v2856_v2, %v9878_v49 }
 0x233   : > { %v2985_v11 = vmul.f32 %v2857_v4, %v9881_v7  ;;  %v1885_v47 = vpop.f32.mrb[136].mxu1  ;;  %3306 = vmatprep.subr.bf16.mxu1 %v3083_v38  ;;  %v9998_v10 = vpop.f32.mrb[136].mxu0  ;;  %v11514_v38 = vld [vmem:[#allocation23_spill] sm:$0xff] }
 0x234   : > { %v2858_v48 = vmul.f32 %v1885_v47, %v11508_v31  ;;  %v1887_v6 = vpop.f32.mrb[137].mxu1  ;;  %3307 = vmatpush1.bf16.msra.mxu1 %v3082_v58  ;;  %v10001_v25 = vpop.f32.mrb[137].mxu0  ;;  %v11515_v47 = vld [vmem:[#allocation24_spill] sm:$0xff] }
 0x235   : > { %v2859_v20 = vmul.f32 %v1887_v6, %v11509_v30 }
 0x236   : > { %v2986_v29 = vmul.f32 %v2858_v48, %v9886_v9 }
 0x237   : > { %v2987_v16 = vmul.f32 %v2859_v20, %v9889_v53  ;;  %v1891_v34 = vpop.f32.mrb[138].mxu1  ;;  %v10006_v49 = vpop.f32.mrb[138].mxu0  ;;  %v11512_v53 = vld [vmem:[#allocation21_spill] sm:$0xff] }
 0x238   : > { %v3084_v7 = vpack.c.bf16 %v2986_v29, %v2984_v28  ;;  %v2860_v40 = vmul.f32 %v1891_v34, %v11510_v33  ;;  %v1893_v54 = vpop.f32.mrb[139].mxu1  ;;  %v10009_v44 = vpop.f32.mrb[139].mxu0  ;;  %v11516_v20 = vld [vmem:[#allocation25_spill] sm:$0xff]  ;;  %v11517_v33 = vld [vmem:[#allocation26_spill] sm:$0xff] }
 0x239   : > { %v3085_v26 = vpack.c.bf16 %v2987_v16, %v2985_v11  ;;  %v2861_v18 = vmul.f32 %v1893_v54, %v11511_v35 }
 0x23a   : > { %v2988_v17 = vmul.f32 %v2860_v40, %v9894_v39 }
 0x23b   : > { %v2989_v57 = vmul.f32 %v2861_v18, %v9897_v36  ;;  %v1897_v55 = vpop.f32.mrb[140].mxu1  ;;  %3308 = vmatprep.subr.bf16.mxu1 %v3085_v26  ;;  %v10014_v9 = vpop.f32.mrb[140].mxu0  ;;  %v11518_v18 = vld [vmem:[#allocation27_spill] sm:$0xff] }
 0x23c   : > { %v2862_v60 = vmul.f32 %v1897_v55, %v11512_v53  ;;  %v1899_v1 = vpop.f32.mrb[141].mxu1  ;;  %3309 = vmatpush1.bf16.msra.mxu1 %v3084_v7  ;;  %v10017_v3 = vpop.f32.mrb[141].mxu0  ;;  %v7929_v7 = vld [vmem:[%s8438_s27 + $0x24] ss:$16 sps:$4 sm:$0xff]  }
 0x23d   : > { %v2863_v58 = vmul.f32 %v1899_v1, %v11513_v50 }
 0x23e   : > { %v2990_v63 = vmul.f32 %v2862_v60, %v9902_v12  ;;  %v11519_v60 = vld [vmem:[#allocation28_spill] sm:$0xff] }
 0x23f   : > { %v2991_v2 = vmul.f32 %v2863_v58, %v9905_v14  ;;  %v1903_v39 = vpop.f32.mrb[142].mxu1  ;;  %v10022_v42 = vpop.f32.mrb[142].mxu0  ;;  %v7926_v14 = vld [vmem:[%s8438_s27] ss:$16 sps:$4 sm:$0xff]  }
 0x240   : > { %v3086_v36 = vpack.c.bf16 %v2990_v63, %v2988_v17  ;;  %v2864_v24 = vmul.f32 %v1903_v39, %v11514_v38  ;;  %v1905_v4 = vpop.f32.mrb[143].mxu1  ;;  %v10025_v28 = vpop.f32.mrb[143].mxu0  ;;  %v7931_v63 = vld [vmem:[%s8438_s27 + $0x20] ss:$16 sps:$4 sm:$0xff]  }
 0x241   : > { %v3087_v11 = vpack.c.bf16 %v2991_v2, %v2989_v57  ;;  %v2865_v31 = vmul.f32 %v1905_v4, %v11515_v47  ;;  %v11520_v2 = vld [vmem:[#allocation29_spill] sm:$0xff]  ;;  %v11521_v4 = vld [vmem:[#allocation30_spill] sm:$0xff] }
 0x242   : > { %v2992_v48 = vmul.f32 %v2864_v24, %v9910_v5  ;;  %v7932_v24 = vld [vmem:[%s8438_s27 + $0x44] ss:$16 sps:$4 sm:$0xff]  }
 0x243   : > { %v2993_v6 = vmul.f32 %v2865_v31, %v9913_v37  ;;  %v1909_v12 = vpop.f32.mrb[144].mxu1  ;;  %3310 = vmatprep.subr.bf16.mxu1 %v3087_v11  ;;  %v10031_v30 = vpop.f32.mrb[144].mxu0 }
 0x244   : > { %v2866_v29 = vmul.f32 %v1909_v12, %v11516_v20  ;;  %v1911_v16 = vpop.f32.mrb[145].mxu1  ;;  %3311 = vmatpush1.bf16.msra.mxu1 %v3086_v36  ;;  %v10034_v34 = vpop.f32.mrb[145].mxu0 }
 0x245   : > { %v2867_v40 = vmul.f32 %v1911_v16, %v11517_v33  ;;  %v11523_v16 = vld [vmem:[#allocation32_spill] sm:$0xff] }
 0x246   : > { %v2994_v54 = vmul.f32 %v2866_v29, %v9918_v21 }
 0x247   : > { %v2995_v5 = vmul.f32 %v2867_v40, %v9921_v45  ;;  %v1915_v37 = vpop.f32.mrb[146].mxu1  ;;  %3313 = vmatmul.mubr.bf16.vlgmr.msra.gmra.mrb[208].mxu1 %v7926_v14  ;;  %v10040_v26 = vpop.f32.mrb[146].mxu0 }
 0x248   : > { %v3088_v35 = vpack.c.bf16 %v2994_v54, %v2992_v48  ;;  %v2868_v17 = vmul.f32 %v1915_v37, %v11518_v18  ;;  %v1917_v57 = vpop.f32.mrb[147].mxu1  ;;  %v10043_v55 = vpop.f32.mrb[147].mxu0  ;;  %3322 = vmatprep.mubr.bf16.mxu1 %v7929_v7  ;;  %v7934_v54 = vld [vmem:[%s8438_s27 + $0x40] ss:$16 sps:$4 sm:$0xff]  }
 0x249   : > { %v3089_v53 = vpack.c.bf16 %v2995_v5, %v2993_v6  ;;  %v2869_v1 = vmul.f32 %v1917_v57, %v11519_v60  ;;  %v11522_v6 = vld [vmem:[#allocation31_spill] sm:$0xff]  ;;  %v11524_v5 = vld [vmem:[#allocation33_spill] sm:$0xff]  ;;  %v11525_v57 = vld [vmem:[#allocation34_spill] sm:$0xff] }
 0x24a   : > { %v2996_v21 = vmul.f32 %v2868_v17, %v9926_v51  ;;  %v7935_v17 = vld [vmem:[%s8438_s27 + $0x64] ss:$16 sps:$4 sm:$0xff]  }
 0x24b   : > { %v2997_v45 = vmul.f32 %v2869_v1, %v9929_v27  ;;  %v1921_v50 = vpop.f32.mrb[148].mxu1  ;;  %3393 = vmatprep.subr.bf16.mxu1 %v3089_v53  ;;  %v10048_v58 = vpop.f32.mrb[148].mxu0 }
 0x24c   : > { %v2870_v39 = vmul.f32 %v1921_v50, %v11520_v2  ;;  %v1923_v36 = vpop.f32.mrb[149].mxu1  ;;  %3394 = vmatpush1.bf16.msra.mxu1 %v3088_v35  ;;  %v10052_v38 = vpop.f32.mrb[149].mxu0 }
 0x24d   : > { %v2871_v11 = vmul.f32 %v1923_v36, %v11521_v4  ;;  %v11527_v36 = vld [vmem:[#allocation37_spill] sm:$0xff] }
 0x24e   : > { %v2998_v47 = vmul.f32 %v2870_v39, %v9934_v41 }
 0x24f   : > { %v2999_v51 = vmul.f32 %v2871_v11, %v9937_v8  ;;  %v1927_v27 = vpop.f32.mrb[150].mxu1  ;;  %v10058_v31 = vpop.f32.mrb[150].mxu0  ;;  %3323 = vmatmul.mubr.bf16.gmra.mrb[212].mxu1 %v7931_v63 }
 0x250   : > { %v3090_v48 = vpack.c.bf16 %v2998_v47, %v2996_v21  ;;  %v2872_v12 = vmul.f32 %v1927_v27, %v11522_v6  ;;  %v1929_v14 = vpop.f32.mrb[151].mxu1  ;;  %v10061_v20 = vpop.f32.mrb[151].mxu0  ;;  %3332 = vmatprep.mubr.bf16.mxu1 %v7932_v24  ;;  %v7937_v47 = vld [vmem:[%s8438_s27 + $0x60] ss:$16 sps:$4 sm:$0xff]  }
 0x251   : > { %v3091_v29 = vpack.c.bf16 %v2999_v51, %v2997_v45  ;;  %v2873_v7 = vmul.f32 %v1929_v14, %v11523_v16  ;;  %v11526_v45 = vld [vmem:[#allocation35_spill] sm:$0xff]  ;;  %v11529_v14 = vld [vmem:[#allocation41_spill] sm:$0xff] }
 0x252   : > { %v3000_v41 = vmul.f32 %v2872_v12, %v9942_v13  ;;  %v11528_v51 = vld [vmem:[#allocation39_spill] sm:$0xff]  ;;  %v7938_v12 = vld [vmem:[%s8438_s27 + $0x84] ss:$16 sps:$4 sm:$0xff]  }
 0x253   : > { %v3001_v8 = vmul.f32 %v2873_v7, %v9945_v22  ;;  %v1933_v33 = vpop.f32.mrb[152].mxu1  ;;  %3395 = vmatprep.subr.bf16.mxu1 %v3091_v29  ;;  %v10066_v40 = vpop.f32.mrb[152].mxu0 }
 0x254   : > { %v2874_v37 = vmul.f32 %v1933_v33, %v11524_v5  ;;  %v1935_v35 = vpop.f32.mrb[153].mxu1  ;;  %3396 = vmatpush1.bf16.msra.mxu1 %v3090_v48  ;;  %v10070_v18 = vpop.f32.mrb[153].mxu0 }
 0x255   : > { %v2875_v53 = vmul.f32 %v1935_v35, %v11525_v57  ;;  %v11531_v35 = vld [vmem:[#allocation45_spill] sm:$0xff] }
 0x256   : > { %v3002_v60 = vmul.f32 %v2874_v37, %v9950_v62 }
 0x257   : > { %v3003_v13 = vmul.f32 %v2875_v53, %v9953_v43  ;;  %v1939_v22 = vpop.f32.mrb[154].mxu1  ;;  %v10076_v1 = vpop.f32.mrb[154].mxu0  ;;  %3333 = vmatmul.mubr.bf16.gmra.mrb[216].mxu1 %v7934_v54 }
 0x258   : > { %v3092_v21 = vpack.c.bf16 %v3002_v60, %v3000_v41  ;;  %v2876_v50 = vmul.f32 %v1939_v22, %v11526_v45  ;;  %v1941_v63 = vpop.f32.mrb[155].mxu1  ;;  %v10079_v2 = vpop.f32.mrb[155].mxu0  ;;  %3342 = vmatprep.mubr.bf16.mxu1 %v7935_v17  ;;  %v7940_v60 = vld [vmem:[%s8438_s27 + $0x80] ss:$16 sps:$4 sm:$0xff]  }
 0x259   : > { %v3093_v39 = vpack.c.bf16 %v3003_v13, %v3001_v8  ;;  %v2877_v24 = vmul.f32 %v1941_v63, %v11527_v36  ;;  %v11530_v8 = vld [vmem:[#allocation43_spill] sm:$0xff]  ;;  %v11533_v63 = vld [vmem:[#allocation49_spill] sm:$0xff] }
 0x25a   : > { %v3004_v62 = vmul.f32 %v2876_v50, %v9958_v19  ;;  %v11532_v13 = vld [vmem:[#allocation47_spill] sm:$0xff]  ;;  %v7941_v50 = vld [vmem:[%s8438_s27 + $0xa4] ss:$16 sps:$4 sm:$0xff]  }
 0x25b   : > { %v3005_v43 = vmul.f32 %v2877_v24, %v9961_v61  ;;  %v1945_v4 = vpop.f32.mrb[156].mxu1  ;;  %3397 = vmatprep.subr.bf16.mxu1 %v3093_v39  ;;  %v10084_v11 = vpop.f32.mrb[156].mxu0 }
 0x25c   : > { %v2878_v27 = vmul.f32 %v1945_v4, %v11528_v51  ;;  %v1947_v48 = vpop.f32.mrb[157].mxu1  ;;  %3398 = vmatpush1.bf16.msra.mxu1 %v3092_v21  ;;  %v10088_v6 = vpop.f32.mrb[157].mxu0 }
 0x25d   : > { %v2879_v29 = vmul.f32 %v1947_v48, %v11529_v14  ;;  %v11535_v48 = vld [vmem:[#allocation53_spill] sm:$0xff] }
 0x25e   : > { %v3006_v16 = vmul.f32 %v2878_v27, %v9966_v32 }
 0x25f   : > { %v3007_v19 = vmul.f32 %v2879_v29, %v9969_v0  ;;  %v1951_v61 = vpop.f32.mrb[158].mxu1  ;;  %v10094_v7 = vpop.f32.mrb[158].mxu0  ;;  %3343 = vmatmul.mubr.bf16.gmra.mrb[220].mxu1 %v7937_v47 }
 0x260   : > { %v3094_v41 = vpack.c.bf16 %v3006_v16, %v3004_v62  ;;  %v2880_v33 = vmul.f32 %v1951_v61, %v11530_v8  ;;  %v1953_v54 = vpop.f32.mrb[159].mxu1  ;;  %v10097_v5 = vpop.f32.mrb[159].mxu0  ;;  %3352 = vmatprep.mubr.bf16.mxu1 %v7938_v12  ;;  %v7943_v16 = vld [vmem:[%s8438_s27 + $0xa0] ss:$16 sps:$4 sm:$0xff]  }
 0x261   : > { %v3095_v37 = vpack.c.bf16 %v3007_v19, %v3005_v43  ;;  %v2881_v17 = vmul.f32 %v1953_v54, %v11531_v35  ;;  %v11534_v43 = vld [vmem:[#allocation51_spill] sm:$0xff]  ;;  %v11537_v54 = vld [vmem:[#allocation57_spill] sm:$0xff] }
 0x262   : > { %v3008_v32 = vmul.f32 %v2880_v33, %v9974_v56  ;;  %v11536_v19 = vld [vmem:[#allocation55_spill] sm:$0xff]  ;;  %v7944_v33 = vld [vmem:[%s8438_s27 + $0xc4] ss:$16 sps:$4 sm:$0xff]  }
 0x263   : > { %v3009_v0 = vmul.f32 %v2881_v17, %v9977_v23  ;;  %v1957_v57 = vpop.f32.mrb[160].mxu1  ;;  %3399 = vmatprep.subr.bf16.mxu1 %v3095_v37  ;;  %v10102_v53 = vpop.f32.mrb[160].mxu0 }
 0x264   : > { %v2882_v22 = vmul.f32 %v1957_v57, %v11532_v13  ;;  %v1959_v21 = vpop.f32.mrb[161].mxu1  ;;  %3400 = vmatpush1.bf16.msra.mxu1 %v3094_v41  ;;  %v10106_v45 = vpop.f32.mrb[161].mxu0 }
 0x265   : > { %v2883_v39 = vmul.f32 %v1959_v21, %v11533_v63  ;;  %v11539_v21 = vld [vmem:[#allocation61_spill] sm:$0xff] }
 0x266   : > { %v3010_v36 = vmul.f32 %v2882_v22, %v9982_v52 }
 0x267   : > { %v3011_v56 = vmul.f32 %v2883_v39, %v9985_v59  ;;  %v1963_v23 = vpop.f32.mrb[162].mxu1  ;;  %v10112_v24 = vpop.f32.mrb[162].mxu0  ;;  %3353 = vmatmul.mubr.bf16.gmra.mrb[224].mxu1 %v7940_v60 }
 0x268   : > { %v3096_v62 = vpack.c.bf16 %v3010_v36, %v3008_v32  ;;  %v2884_v4 = vmul.f32 %v1963_v23, %v11534_v43  ;;  %v1965_v47 = vpop.f32.mrb[163].mxu1  ;;  %v10115_v51 = vpop.f32.mrb[163].mxu0  ;;  %3362 = vmatprep.mubr.bf16.mxu1 %v7941_v50  ;;  %v7946_v36 = vld [vmem:[%s8438_s27 + $0xc0] ss:$16 sps:$4 sm:$0xff]  }
 0x269   : > { %v3097_v27 = vpack.c.bf16 %v3011_v56, %v3009_v0  ;;  %v2885_v12 = vmul.f32 %v1965_v47, %v11535_v48  ;;  %v11538_v0 = vld [vmem:[#allocation59_spill] sm:$0xff]  ;;  %v11541_v47 = vld [vmem:[#allocation65_spill] sm:$0xff] }
 0x26a   : > { %v3012_v52 = vmul.f32 %v2884_v4, %v9990_v15  ;;  %v11540_v56 = vld [vmem:[#allocation63_spill] sm:$0xff]  ;;  %v7947_v4 = vld [vmem:[%s8438_s27 + $0xe4] ss:$16 sps:$4 sm:$0xff]  }
 0x26b   : > { %v3013_v59 = vmul.f32 %v2885_v12, %v9993_v46  ;;  %v1969_v14 = vpop.f32.mrb[164].mxu1  ;;  %3401 = vmatprep.subr.bf16.mxu1 %v3097_v27  ;;  %v10120_v29 = vpop.f32.mrb[164].mxu0 }
 0x26c   : > { %v2886_v61 = vmul.f32 %v1969_v14, %v11536_v19  ;;  %v1971_v41 = vpop.f32.mrb[165].mxu1  ;;  %3402 = vmatpush1.bf16.msra.mxu1 %v3096_v62  ;;  %v10124_v8 = vpop.f32.mrb[165].mxu0 }
 0x26d   : > { %v2887_v37 = vmul.f32 %v1971_v41, %v11537_v54  ;;  %v11543_v41 = vld [vmem:[#allocation69_spill] sm:$0xff] }
 0x26e   : > { %v3014_v35 = vmul.f32 %v2886_v61, %v9998_v10 }
 0x26f   : > { %v3015_v15 = vmul.f32 %v2887_v37, %v10001_v25  ;;  %v1975_v46 = vpop.f32.mrb[166].mxu1  ;;  %v10130_v17 = vpop.f32.mrb[166].mxu0  ;;  %3363 = vmatmul.mubr.bf16.gmra.mrb[228].mxu1 %v7943_v16 }
 0x270   : > { %v3098_v32 = vpack.c.bf16 %v3014_v35, %v3012_v52  ;;  %v2888_v57 = vmul.f32 %v1975_v46, %v11538_v0  ;;  %v1977_v60 = vpop.f32.mrb[167].mxu1  ;;  %v10133_v13 = vpop.f32.mrb[167].mxu0  ;;  %3372 = vmatprep.mubr.bf16.mxu1 %v7944_v33  ;;  %v7949_v35 = vld [vmem:[%s8438_s27 + $0xe0] ss:$16 sps:$4 sm:$0xff]  }
 0x271   : > { %v3099_v22 = vpack.c.bf16 %v3015_v15, %v3013_v59  ;;  %v2889_v50 = vmul.f32 %v1977_v60, %v11539_v21  ;;  %v11542_v59 = vld [vmem:[#allocation67_spill] sm:$0xff]  ;;  %v11545_v60 = vld [vmem:[#allocation73_spill] sm:$0xff] }
 0x272   : > { %v3016_v10 = vmul.f32 %v2888_v57, %v10006_v49  ;;  %v11544_v15 = vld [vmem:[#allocation71_spill] sm:$0xff] }
 0x273   : > { %v3017_v25 = vmul.f32 %v2889_v50, %v10009_v44  ;;  %v1981_v63 = vpop.f32.mrb[168].mxu1  ;;  %3403 = vmatprep.subr.bf16.mxu1 %v3099_v22  ;;  %v10138_v39 = vpop.f32.mrb[168].mxu0  ;;  %v7952_v57 = vld [vmem:[%s8438_s27 + $0xc] ss:$16 sps:$4 sm:$0xff]  }
 0x274   : > { %v2890_v23 = vmul.f32 %v1981_v63, %v11540_v56  ;;  %v1983_v62 = vpop.f32.mrb[169].mxu1  ;;  %3404 = vmatpush1.bf16.msra.mxu1 %v3098_v32  ;;  %v10142_v43 = vpop.f32.mrb[169].mxu0  ;;  %v11546_v63 = vld [vmem:[#allocation75_spill] sm:$0xff] }
 0x275   : > { %v2891_v27 = vmul.f32 %v1983_v62, %v11541_v47  ;;  %v8299_v62 = vmov 0  }
 0x276   : > { %v3018_v48 = vmul.f32 %v2890_v23, %v10014_v9  ;;  %7924 = vset.pattern.permute.xlu0 %v8299_v62  ;;  %7925 = vset.pattern.permute.xlu1 %v8299_v62 }
 0x277   : > { %v3019_v49 = vmul.f32 %v2891_v27, %v10017_v3  ;;  %v1987_v44 = vpop.f32.mrb[170].mxu1  ;;  %v10148_v12 = vpop.f32.mrb[170].mxu0  ;;  %3373 = vmatmul.mubr.bf16.gmra.mrb[232].mxu1 %v7946_v36 }
 0x278   : > { %v3100_v52 = vpack.c.bf16 %v3018_v48, %v3016_v10  ;;  %v2892_v14 = vmul.f32 %v1987_v44, %v11542_v59  ;;  %v1989_v16 = vpop.f32.mrb[171].mxu1  ;;  %v10151_v19 = vpop.f32.mrb[171].mxu0  ;;  %3382 = vmatprep.mubr.bf16.mxu1 %v7947_v4  ;;  %v3522_v10 = vld [vmem:[%s11354_s5] sm:$0xff]  ;;  %v11547_v4 = vld [vmem:[#allocation77_spill] sm:$0xff]  ;;  %v3525_v59 = vld [vmem:[%s11354_s5 + $0x18] sm:$0xff] }
 0x279   : > { %v3101_v61 = vpack.c.bf16 %v3019_v49, %v3017_v25  ;;  %v2893_v33 = vmul.f32 %v1989_v16, %v11543_v41  ;;  %3716 = vperm.xlu0 %7924, %v3522_v10   ;;  %v3523_v48 = vld [vmem:[%s11354_s5 + $0x8] sm:$0xff]  ;;  %v3529_v10 = vld [vmem:[%s11354_s5 + $0x38] sm:$0xff] }
 0x27a   : > { %v3020_v9 = vmul.f32 %v2892_v14, %v10022_v42  ;;  %v11548_v14 = vld [vmem:[#allocation79_spill] sm:$0xff]  ;;  %v11549_v41 = vld [vmem:[#allocation81_spill] sm:$0xff] }
 0x27b   : > { %v3021_v3 = vmul.f32 %v2893_v33, %v10025_v28  ;;  %v1993_v54 = vpop.f32.mrb[172].mxu1  ;;  %3405 = vmatprep.subr.bf16.mxu1 %v3101_v61  ;;  %v10156_v37 = vpop.f32.mrb[172].mxu0 }
 0x27c   : > { %v2894_v46 = vmul.f32 %v1993_v54, %v11544_v15  ;;  %v1995_v32 = vpop.f32.mrb[173].mxu1  ;;  %3406 = vmatpush1.bf16.msra.mxu1 %v3100_v52  ;;  %v10160_v0 = vpop.f32.mrb[173].mxu0 }
 0x27d   : > { %v2895_v22 = vmul.f32 %v1995_v32, %v11545_v60  ;;  %3721 = vperm.xlu0 %7924, %v3523_v48   ;;  %v11554_v48 = vld [vmem:[#allocation87_spill] sm:$0xff] }
 0x27e   : > { %v3022_v21 = vmul.f32 %v2894_v46, %v10031_v30  ;;  %v3524_v30 = vld [vmem:[%s11354_s5 + $0x10] sm:$0xff]  ;;  %v11550_v46 = vld [vmem:[#allocation83_spill] sm:$0xff] }
 0x27f   : > { %v3023_v42 = vmul.f32 %v2895_v22, %v10034_v34  ;;  %v1999_v50 = vpop.f32.mrb[174].mxu1  ;;  %v10166_v28 = vpop.f32.mrb[174].mxu0  ;;  %3383 = vmatmul.mubr.bf16.gmra.mrb[236].mxu1 %v7949_v35  ;;  %3726 = vperm.xlu1 %7925, %v3524_v30   ;;  %v3527_v35 = vld [vmem:[%s11354_s5 + $0x28] sm:$0xff] }
 0x280   : > { %v3102_v25 = vpack.c.bf16 %v3022_v21, %v3020_v9  ;;  %v2896_v36 = vmul.f32 %v1999_v50, %v11546_v63  ;;  %v2001_v56 = vpop.f32.mrb[175].mxu1  ;;  %v10172_v23 = vpop.f32.mrb[175].mxu0  ;;  %3425 = vmatprep.mubr.bf16.mxu1 %v7952_v57  ;;  %v11551_v22 = vld [vmem:[#allocation84_spill] sm:$0xff] }
 0x281   : > { %v3103_v34 = vpack.c.bf16 %v3023_v42, %v3021_v3  ;;  %v2897_v47 = vmul.f32 %v2001_v56, %v11547_v4  ;;  %v3528_v42 = vld [vmem:[%s11354_s5 + $0x30] sm:$0xff] }
 0x282   : > { %v3024_v27 = vmul.f32 %v2896_v36, %v10040_v26  ;;  %v11553_v56 = vld [vmem:[#allocation86_spill] sm:$0xff] }
 0x283   : > { %v3025_v49 = vmul.f32 %v2897_v47, %v10043_v55  ;;  %v2005_v44 = vpop.f32.mrb[176].mxu1  ;;  %3407 = vmatprep.subr.bf16.mxu1 %v3103_v34  ;;  %v10185_v52 = vpop.f32.mrb[176].mxu0  ;;  %v3526_v55 = vld [vmem:[%s11354_s5 + $0x20] sm:$0xff]  ;;  %3731 = vperm.xlu1 %7925, %v3525_v59   ;;  %v3531_v47 = vld [vmem:[%s11354_s5 + $0x48] sm:$0xff] }
 0x284   : > { %v2898_v16 = vmul.f32 %v2005_v44, %v11548_v14  ;;  %v2007_v61 = vpop.f32.mrb[177].mxu1  ;;  %3408 = vmatpush1.bf16.msra.mxu1 %v3102_v25  ;;  %v10191_v26 = vpop.f32.mrb[177].mxu0  ;;  %3736 = vperm.xlu0 %7924, %v3526_v55   ;;  %v11552_v25 = vld [vmem:[#allocation85_spill] sm:$0xff]  ;;  %v3530_v34 = vld [vmem:[%s11354_s5 + $0x40] sm:$0xff] }
 0x285   : > { %v2899_v33 = vmul.f32 %v2007_v61, %v11549_v41  ;;  %v11555_v14 = vld [vmem:[#allocation88_spill] sm:$0xff]  ;;  %v3532_v61 = vld [vmem:[%s11354_s5 + $0x50] sm:$0xff] }
 0x286   : > { %v3026_v9 = vmul.f32 %v2898_v16, %v10048_v58 }
 0x287   : > { %v3027_v3 = vmul.f32 %v2899_v33, %v10052_v38  ;;  %v2011_v54 = vpop.f32.mrb[178].mxu1  ;;  %3741 = vperm.xlu1 %7925, %v3527_v35   ;;  %v3533_v33 = vld [vmem:[%s11354_s5 + $0x58] sm:$0xff] }
 0x288   : > { %v3104_v15 = vpack.c.bf16 %v3026_v9, %v3024_v27  ;;  %v2900_v32 = vmul.f32 %v2011_v54, %v11550_v46  ;;  %v2013_v57 = vpop.f32.mrb[179].mxu1  ;;  %3746 = vperm.xlu0 %7924, %v3528_v42   ;;  %v11556_v9 = vld [vmem:[#allocation89_spill] sm:$0xff]  ;;  %v11557_v54 = vld [vmem:[#allocation90_spill] sm:$0xff]  ;;  %v11559_v42 = vld [vmem:[#allocation92_spill] sm:$0xff] }
 0x289   : > { %v3105_v60 = vpack.c.bf16 %v3027_v3, %v3025_v49  ;;  %v2901_v21 = vmul.f32 %v2013_v57, %v11551_v22 }
 0x28a   : > { %v3028_v58 = vmul.f32 %v2900_v32, %v10058_v31  ;;  %v3535_v32 = vld [vmem:[%s11354_s5 + $0x68] sm:$0xff] }
 0x28b   : > { %v3029_v38 = vmul.f32 %v2901_v21, %v10061_v20  ;;  %v2017_v50 = vpop.f32.mrb[180].mxu1  ;;  %3409 = vmatprep.subr.bf16.mxu1 %v3105_v60  ;;  %3751 = vperm.xlu1 %7925, %v3529_v10   ;;  %v11558_v60 = vld [vmem:[#allocation91_spill] sm:$0xff] }
 0x28c   : > { %v2902_v63 = vmul.f32 %v2017_v50, %v11552_v25  ;;  %v2019_v36 = vpop.f32.mrb[181].mxu1  ;;  %3410 = vmatpush1.bf16.msra.mxu1 %v3104_v15  ;;  %3756 = vperm.xlu0 %7924, %v3530_v34   ;;  %v3534_v15 = vld [vmem:[%s11354_s5 + $0x60] sm:$0xff]  ;;  %v3536_v50 = vld [vmem:[%s11354_s5 + $0x70] sm:$0xff]  ;;  %v3537_v25 = vld [vmem:[%s11354_s5 + $0x78] sm:$0xff] }
 0x28d   : > { %v2903_v30 = vmul.f32 %v2019_v36, %v11553_v56  ;;  %v3538_v34 = vld [vmem:[%s11354_s5 + $0x80] sm:$0xff] }
 0x28e   : > { %v3030_v31 = vmul.f32 %v2902_v63, %v10066_v40  ;;  %v11560_v63 = vld [vmem:[#allocation93_spill] sm:$0xff] }
 0x28f   : > { %v3031_v20 = vmul.f32 %v2903_v30, %v10070_v18  ;;  %v2023_v4 = vpop.f32.mrb[182].mxu1  ;;  %3761 = vperm.xlu1 %7925, %v3531_v47   ;;  %v11561_v30 = vld [vmem:[#allocation94_spill] sm:$0xff] }
 0x290   : > { %v3106_v27 = vpack.c.bf16 %v3030_v31, %v3028_v58  ;;  %v2904_v49 = vmul.f32 %v2023_v4, %v11554_v48  ;;  %v2025_v44 = vpop.f32.mrb[183].mxu1  ;;  %3766 = vperm.xlu0 %7924, %v3532_v61   ;;  %v3539_v4 = vld [vmem:[%s11354_s5 + $0x88] sm:$0xff]  ;;  %v3541_v61 = vld [vmem:[%s11354_s5 + $0x98] sm:$0xff] }
 0x291   : > { %v3107_v59 = vpack.c.bf16 %v3031_v20, %v3029_v38  ;;  %v2905_v16 = vmul.f32 %v2025_v44, %v11555_v14 }
 0x292   : > { %v3032_v40 = vmul.f32 %v2904_v49, %v10076_v1 }
 0x293   : > { %v3033_v18 = vmul.f32 %v2905_v16, %v10079_v2  ;;  %v2029_v41 = vpop.f32.mrb[184].mxu1  ;;  %3411 = vmatprep.subr.bf16.mxu1 %v3107_v59  ;;  %3771 = vperm.xlu1 %7925, %v3533_v33   ;;  %v11563_v59 = vld [vmem:[#allocation96_spill] sm:$0xff]  ;;  %v3540_v16 = vld [vmem:[%s11354_s5 + $0x90] sm:$0xff] }
 0x294   : > { %v2906_v55 = vmul.f32 %v2029_v41, %v11556_v9  ;;  %v2031_v3 = vpop.f32.mrb[185].mxu1  ;;  %3412 = vmatpush1.bf16.msra.mxu1 %v3106_v27  ;;  %3776 = vperm.xlu0 %7924, %v3534_v15   ;;  %v11562_v27 = vld [vmem:[#allocation95_spill] sm:$0xff]  ;;  %v11565_v9 = vld [vmem:[#allocation98_spill] sm:$0xff] }
 0x295   : > { %v2907_v35 = vmul.f32 %v2031_v3, %v11557_v54  ;;  %v3542_v3 = vld [vmem:[%s11354_s5 + $0xa0] sm:$0xff] }
 0x296   : > { %v3034_v1 = vmul.f32 %v2906_v55, %v10084_v11  ;;  %v11566_v15 = vld [vmem:[#allocation99_spill] sm:$0xff] }
 0x297   : > { %v3035_v2 = vmul.f32 %v2907_v35, %v10088_v6  ;;  %v2035_v46 = vpop.f32.mrb[186].mxu1  ;;  %3781 = vperm.xlu1 %7925, %v3535_v32   ;;  %v3543_v35 = vld [vmem:[%s11354_s5 + $0xa8] sm:$0xff] }
 0x298   : > { %v3108_v57 = vpack.c.bf16 %v3034_v1, %v3032_v40  ;;  %v2908_v22 = vmul.f32 %v2035_v46, %v11558_v60  ;;  %v2037_v21 = vpop.f32.mrb[187].mxu1  ;;  %3786 = vperm.xlu0 %7924, %v3536_v50   ;;  %v11569_v50 = vld [vmem:[#allocation102_spill] sm:$0xff] }
 0x299   : > { %v3109_v58 = vpack.c.bf16 %v3035_v2, %v3033_v18  ;;  %v2909_v38 = vmul.f32 %v2037_v21, %v11559_v42  ;;  %v11564_v18 = vld [vmem:[#allocation97_spill] sm:$0xff] }
 0x29a   : > { %v3036_v11 = vmul.f32 %v2908_v22, %v10094_v7  ;;  %v3544_v22 = vld [vmem:[%s11354_s5 + $0xb0] sm:$0xff] }
 0x29b   : > { %v3037_v6 = vmul.f32 %v2909_v38, %v10097_v5  ;;  %v2041_v10 = vpop.f32.mrb[188].mxu1  ;;  %3413 = vmatprep.subr.bf16.mxu1 %v3109_v58  ;;  %3791 = vperm.xlu1 %7925, %v3537_v25   ;;  %v3545_v58 = vld [vmem:[%s11354_s5 + $0xb8] sm:$0xff]  ;;  %v11568_v42 = vld [vmem:[#allocation101_spill] sm:$0xff] }
 0x29c   : > { %v2910_v36 = vmul.f32 %v2041_v10, %v11560_v63  ;;  %v2043_v56 = vpop.f32.mrb[189].mxu1  ;;  %3414 = vmatpush1.bf16.msra.mxu1 %v3108_v57  ;;  %3796 = vperm.xlu0 %7924, %v3538_v34   ;;  %v11567_v57 = vld [vmem:[#allocation100_spill] sm:$0xff] }
 0x29d   : > { %v2911_v31 = vmul.f32 %v2043_v56, %v11561_v30  ;;  %v3546_v10 = vld [vmem:[%s11354_s5 + $0xc0] sm:$0xff]  ;;  %v3547_v63 = vld [vmem:[%s11354_s5 + $0xc8] sm:$0xff] }
 0x29e   : > { %v3038_v7 = vmul.f32 %v2910_v36, %v10102_v53  ;;  %v11570_v56 = vld [vmem:[#allocation103_spill] sm:$0xff]  ;;  %v11571_v34 = vld [vmem:[#allocation104_spill] sm:$0xff] }
 0x29f   : > { %v3039_v5 = vmul.f32 %v2911_v31, %v10106_v45  ;;  %v2047_v20 = vpop.f32.mrb[190].mxu1  ;;  %3801 = vperm.xlu1 %7925, %v3539_v4  }
 0x2a0   : > { %v3110_v47 = vpack.c.bf16 %v3038_v7, %v3036_v11  ;;  %v2912_v48 = vmul.f32 %v2047_v20, %v11562_v27  ;;  %v2049_v49 = vpop.f32.mrb[191].mxu1  ;;  %3806 = vperm.xlu0 %7924, %v3540_v16   ;;  %v3548_v20 = vld [vmem:[%s11354_s5 + $0xd0] sm:$0xff]  ;;  %v3551_v16 = vld [vmem:[%s11354_s5 + $0xe8] sm:$0xff] }
 0x2a1   : > { %v3111_v44 = vpack.c.bf16 %v3039_v5, %v3037_v6  ;;  %v2913_v14 = vmul.f32 %v2049_v49, %v11563_v59  ;;  %v11572_v27 = vld [vmem:[#allocation105_spill] sm:$0xff] }
 0x2a2   : > { %v3040_v53 = vmul.f32 %v2912_v48, %v10112_v24 }
 0x2a3   : > { %v3041_v45 = vmul.f32 %v2913_v14, %v10115_v51  ;;  %v2053_v40 = vpop.f32.mrb[192].mxu1  ;;  %3415 = vmatprep.subr.bf16.mxu1 %v3111_v44  ;;  %3811 = vperm.xlu1 %7925, %v3541_v61   ;;  %v11573_v44 = vld [vmem:[#allocation106_spill] sm:$0xff]  ;;  %v3550_v14 = vld [vmem:[%s11354_s5 + $0xe0] sm:$0xff] }
 0x2a4   : > { %v2914_v41 = vmul.f32 %v2053_v40, %v11564_v18  ;;  %v2055_v33 = vpop.f32.mrb[193].mxu1  ;;  %3416 = vmatpush1.bf16.msra.mxu1 %v3110_v47  ;;  %3816 = vperm.xlu0 %7924, %v3542_v3   ;;  %v3549_v47 = vld [vmem:[%s11354_s5 + $0xd8] sm:$0xff] }
 0x2a5   : > { %v2915_v55 = vmul.f32 %v2055_v33, %v11565_v9  ;;  %v11574_v40 = vld [vmem:[#allocation107_spill] sm:$0xff]  ;;  %v11575_v33 = vld [vmem:[#allocation108_spill] sm:$0xff] }
 0x2a6   : > { %v3042_v24 = vmul.f32 %v2914_v41, %v10120_v29  ;;  %v3553_v3 = vld [vmem:[%s11354_s5 + $0xf8] sm:$0xff] }
 0x2a7   : > { %v3043_v51 = vmul.f32 %v2915_v55, %v10124_v8  ;;  %v2059_v54 = vpop.f32.mrb[194].mxu1  ;;  %3821 = vperm.xlu1 %7925, %v3543_v35   ;;  %v3552_v55 = vld [vmem:[%s11354_s5 + $0xf0] sm:$0xff] }
 0x2a8   : > { %v3112_v1 = vpack.c.bf16 %v3042_v24, %v3040_v53  ;;  %v2916_v2 = vmul.f32 %v2059_v54, %v11566_v15  ;;  %v2061_v46 = vpop.f32.mrb[195].mxu1  ;;  %3826 = vperm.xlu0 %7924, %v3544_v22   ;;  %v3558_v22 = vld [vmem:[%s11354_s5 + $0x120] sm:$0xff] }
 0x2a9   : > { %v3113_v32 = vpack.c.bf16 %v3043_v51, %v3041_v45  ;;  %v2917_v60 = vmul.f32 %v2061_v46, %v11567_v57  ;;  %v11576_v51 = vld [vmem:[#allocation109_spill] sm:$0xff] }
 0x2aa   : > { %v3044_v29 = vmul.f32 %v2916_v2, %v10130_v17  ;;  %v3555_v46 = vld [vmem:[%s11354_s5 + $0x108] sm:$0xff] }
 0x2ab   : > { %v3045_v8 = vmul.f32 %v2917_v60, %v10133_v13  ;;  %v2065_v21 = vpop.f32.mrb[196].mxu1  ;;  %3417 = vmatprep.subr.bf16.mxu1 %v3113_v32  ;;  %3831 = vperm.xlu1 %7925, %v3545_v58   ;;  %v3556_v60 = vld [vmem:[%s11354_s5 + $0x110] sm:$0xff]  ;;  %v7955_v58 = vld [vmem:[%s8438_s27 + $0x28] ss:$16 sps:$4 sm:$0xff]  }
 0x2ac   : > { %v2918_v38 = vmul.f32 %v2065_v21, %v11568_v42  ;;  %v2067_v11 = vpop.f32.mrb[197].mxu1  ;;  %3418 = vmatpush1.bf16.msra.mxu1 %v3112_v1  ;;  %3836 = vperm.xlu0 %7924, %v3546_v10   ;;  %v11577_v1 = vld [vmem:[#allocation111_spill] sm:$0xff]  ;;  %v3560_v21 = vld [vmem:[%s11354_s5 + $0x130] sm:$0xff] }
 0x2ad   : > { %v2919_v6 = vmul.f32 %v2067_v11, %v11569_v50  ;;  %v3561_v42 = vld [vmem:[%s11354_s5 + $0x138] sm:$0xff]  ;;  %v3562_v11 = vld [vmem:[%s11354_s5 + $0x140] sm:$0xff]  ;;  %v3563_v50 = vld [vmem:[%s11354_s5 + $0x148] sm:$0xff] }
 0x2ae   : > { %v3046_v17 = vmul.f32 %v2918_v38, %v10138_v39  ;;  %v7956_v38 = vld [vmem:[%s8438_s27 + $0x4c] ss:$16 sps:$4 sm:$0xff]  }
 0x2af   : > { %v3047_v13 = vmul.f32 %v2919_v6, %v10142_v43  ;;  %v2071_v25 = vpop.f32.mrb[198].mxu1  ;;  %3841 = vperm.xlu1 %7925, %v3547_v63   ;;  %v3564_v6 = vld [vmem:[%s11354_s5 + $0x150] sm:$0xff]  ;;  %v3565_v10 = vld [vmem:[%s11354_s5 + $0x158] sm:$0xff] }
 0x2b0   : > { %v3114_v36 = vpack.c.bf16 %v3046_v17, %v3044_v29  ;;  %v2920_v30 = vmul.f32 %v2071_v25, %v11570_v56  ;;  %v2073_v31 = vpop.f32.mrb[199].mxu1  ;;  %3846 = vperm.xlu0 %7924, %v3548_v20   ;;  %v7953_v29 = vld [vmem:[%s8438_s27 + $0x2c] ss:$16 sps:$4 sm:$0xff]   ;;  %v7958_v17 = vld [vmem:[%s8438_s27 + $0x48] ss:$16 sps:$4 sm:$0xff]   ;;  %v3566_v25 = vld [vmem:[%s11354_s5 + $0x160] sm:$0xff] }
 0x2b1   : > { %v3115_v7 = vpack.c.bf16 %v3047_v13, %v3045_v8  ;;  %v2921_v5 = vmul.f32 %v2073_v31, %v11571_v34  ;;  %v3559_v8 = vld [vmem:[%s11354_s5 + $0x128] sm:$0xff]  ;;  %v3568_v63 = vld [vmem:[%s11354_s5 + $0x170] sm:$0xff] }
 0x2b2   : > { %v3048_v39 = vmul.f32 %v2920_v30, %v10148_v12  ;;  %v7959_v13 = vld [vmem:[%s8438_s27 + $0x6c] ss:$16 sps:$4 sm:$0xff]   ;;  %v3570_v30 = vld [vmem:[%s11354_s5 + $0x180] sm:$0xff]  ;;  %v3572_v31 = vld [vmem:[%s11354_s5 + $0x190] sm:$0xff] }
 0x2b3   : > { %v3049_v43 = vmul.f32 %v2921_v5, %v10151_v19  ;;  %v2077_v4 = vpop.f32.mrb[200].mxu1  ;;  %3419 = vmatprep.subr.bf16.mxu1 %v3115_v7  ;;  %3851 = vperm.xlu1 %7925, %v3549_v47   ;;  %v7962_v56 = vld [vmem:[%s8438_s27 + $0x8c] ss:$16 sps:$4 sm:$0xff]   ;;  %v7964_v7 = vld [vmem:[%s8438_s27 + $0x88] ss:$16 sps:$4 sm:$0xff]  }
 0x2b4   : > { %v2922_v48 = vmul.f32 %v2077_v4, %v11572_v27  ;;  %v2079_v49 = vpop.f32.mrb[201].mxu1  ;;  %3420 = vmatpush1.bf16.msra.mxu1 %v3114_v36  ;;  %3856 = vperm.xlu0 %7924, %v3550_v14   ;;  %v7961_v36 = vld [vmem:[%s8438_s27 + $0x68] ss:$16 sps:$4 sm:$0xff]   ;;  %v7965_v34 = vld [vmem:[%s8438_s27 + $0xac] ss:$16 sps:$4 sm:$0xff]   ;;  %v3574_v27 = vld [vmem:[%s11354_s5 + $0x1a0] sm:$0xff] }
 0x2b5   : > { %v2923_v59 = vmul.f32 %v2079_v49, %v11573_v44  ;;  %v7967_v5 = vld [vmem:[%s8438_s27 + $0xa8] ss:$16 sps:$4 sm:$0xff]   ;;  %v3576_v49 = vld [vmem:[%s11354_s5 + $0x1b0] sm:$0xff] }
 0x2b6   : > { %v3050_v12 = vmul.f32 %v2922_v48, %v10156_v37  ;;  %v7970_v20 = vld [vmem:[%s8438_s27 + $0xc8] ss:$16 sps:$4 sm:$0xff]   ;;  %v3580_v14 = vld [vmem:[%s11354_s5 + $0x1d0] sm:$0xff] }
 0x2b7   : > { %v3051_v19 = vmul.f32 %v2923_v59, %v10160_v0  ;;  %v2083_v53 = vpop.f32.mrb[202].mxu1  ;;  %3861 = vperm.xlu1 %7925, %v3551_v16   ;;  %v7973_v4 = vld [vmem:[%s8438_s27 + $0xe8] ss:$16 sps:$4 sm:$0xff]   ;;  %v3578_v59 = vld [vmem:[%s11354_s5 + $0x1c0] sm:$0xff] }
 0x2b8   : > { %v3116_v45 = vpack.c.bf16 %v3050_v12, %v3048_v39  ;;  %v2924_v61 = vmul.f32 %v2083_v53, %v11574_v40  ;;  %v2085_v18 = vpop.f32.mrb[203].mxu1  ;;  %3866 = vperm.xlu0 %7924, %v3552_v55   ;;  %v7968_v39 = vld [vmem:[%s8438_s27 + $0xcc] ss:$16 sps:$4 sm:$0xff]   ;;  %v3582_v53 = vld [vmem:[%s11354_s5 + $0x1e0] sm:$0xff]  ;;  %v3592_v55 = vld [vmem:[%s11355_s6 + $0x30] sm:$0xff] }
 0x2b9   : > { %v3117_v41 = vpack.c.bf16 %v3051_v19, %v3049_v43  ;;  %v2925_v9 = vmul.f32 %v2085_v18, %v11575_v33  ;;  %v7971_v43 = vld [vmem:[%s8438_s27 + $0xec] ss:$16 sps:$4 sm:$0xff]  }
 0x2ba   : > { %v3052_v37 = vmul.f32 %v2924_v61, %v10166_v28  ;;  %v3567_v47 = vld [vmem:[%s11354_s5 + $0x168] sm:$0xff]  ;;  %v3569_v48 = vld [vmem:[%s11354_s5 + $0x178] sm:$0xff]  ;;  %v3586_v61 = vld [vmem:[%s11355_s6] sm:$0xff] }
 0x2bb   : > { %v3053_v0 = vmul.f32 %v2925_v9, %v10172_v23  ;;  %v2089_v24 = vpop.f32.mrb[204].mxu1  ;;  %3421 = vmatprep.subr.bf16.mxu1 %v3117_v41  ;;  %v3554_v23 = vld [vmem:[%s11354_s5 + $0x100] sm:$0xff]  ;;  %3871 = vperm.xlu1 %7925, %v3553_v3   ;;  %v3571_v44 = vld [vmem:[%s11354_s5 + $0x188] sm:$0xff]  ;;  %v3573_v12 = vld [vmem:[%s11354_s5 + $0x198] sm:$0xff] }
 0x2bc   : > { %v2926_v54 = vmul.f32 %v2089_v24, %v11576_v51  ;;  %v2091_v35 = vpop.f32.mrb[205].mxu1  ;;  %3422 = vmatpush1.bf16.msra.mxu1 %v3116_v45  ;;  %3876 = vperm.xlu0 %7924, %v3554_v23   ;;  %v3575_v19 = vld [vmem:[%s11354_s5 + $0x1a8] sm:$0xff]  ;;  %v3577_v16 = vld [vmem:[%s11354_s5 + $0x1b8] sm:$0xff]  ;;  %v3584_v45 = vld [vmem:[%s11354_s5 + $0x1f0] sm:$0xff] }
 0x2bd   : > { %v2927_v28 = vmul.f32 %v2091_v35, %v11577_v1  ;;  %v3579_v40 = vld [vmem:[%s11354_s5 + $0x1c8] sm:$0xff]  ;;  %v3581_v18 = vld [vmem:[%s11354_s5 + $0x1d8] sm:$0xff]  ;;  %v3588_v41 = vld [vmem:[%s11355_s6 + $0x10] sm:$0xff] }
 0x2be   : > { %v3054_v15 = vmul.f32 %v2926_v54, %v10185_v52  ;;  %v7950_v52 = vld [vmem:[%s8438_s27 + $0x8] ss:$16 sps:$4 sm:$0xff]   ;;  %v3590_v9 = vld [vmem:[%s11355_s6 + $0x20] sm:$0xff]  ;;  %v3596_v51 = vld [vmem:[%s11355_s6 + $0x50] sm:$0xff]  ;;  %s11302_s27 = scalar_lea.hbm %s11358_s9, %s7556_s16 }
 0x2bf   : > { %v3055_v2 = vmul.f32 %v2927_v28, %v10191_v26  ;;  %3881 = vperm.xlu1 %7925, %v3555_v46   ;;  %v3557_v26 = vld [vmem:[%s11354_s5 + $0x118] sm:$0xff]  ;;  %v3583_v33 = vld [vmem:[%s11354_s5 + $0x1e8] sm:$0xff]  ;;  %v3594_v24 = vld [vmem:[%s11355_s6 + $0x40] sm:$0xff] }
 0x2c0   : > { %v3118_v32 = vpack.c.bf16 %v3054_v15, %v3052_v37  ;;  %3886 = vperm.xlu0 %7924, %v3556_v60   ;;  %v3585_v37 = vld [vmem:[%s11354_s5 + $0x1f8] sm:$0xff]  ;;  %v3591_v54 = vld [vmem:[%s11355_s6 + $0x28] sm:$0xff]  ;;  %v3598_v35 = vld [vmem:[%s11355_s6 + $0x60] sm:$0xff] }
 0x2c1   : > { %v3119_v57 = vpack.c.bf16 %v3055_v2, %v3053_v0  ;;  %v3587_v0 = vld [vmem:[%s11355_s6 + $0x8] sm:$0xff]  ;;  %v3589_v3 = vld [vmem:[%s11355_s6 + $0x18] sm:$0xff]  ;;  %v3600_v28 = vld [vmem:[%s11355_s6 + $0x70] sm:$0xff] }
 0x2c2   : > { %v3593_v1 = vld [vmem:[%s11355_s6 + $0x38] sm:$0xff]  ;;  %v3595_v15 = vld [vmem:[%s11355_s6 + $0x48] sm:$0xff]  ;;  %v3602_v23 = vld [vmem:[%s11355_s6 + $0x80] sm:$0xff] }
 0x2c3   : > { %3423 = vmatprep.subr.bf16.mxu1 %v3119_v57  ;;  %3891 = vperm.xlu1 %7925, %v3557_v26   ;;  %v3597_v2 = vld [vmem:[%s11355_s6 + $0x58] sm:$0xff]  ;;  %v3604_v46 = vld [vmem:[%s11355_s6 + $0x90] sm:$0xff]  ;;  %v3606_v57 = vld [vmem:[%s11355_s6 + $0xa0] sm:$0xff] }
 0x2c4   : > { %3424 = vmatpush1.bf16.msra.mxu1 %v3118_v32  ;;  %3896 = vperm.xlu0 %7924, %v3558_v22   ;;  %v3599_v32 = vld [vmem:[%s11355_s6 + $0x68] sm:$0xff]  ;;  %v3608_v26 = vld [vmem:[%s11355_s6 + $0xb0] sm:$0xff]  ;;  %v3610_v22 = vld [vmem:[%s11355_s6 + $0xc0] sm:$0xff] }
 0x2c7   : > { %3426 = vmatmul.mubr.bf16.vlgmr.msra.gmra.mrb[208].mxu1 %v7950_v52  ;;  %3901 = vperm.xlu1 %7925, %v3559_v8   ;;  %v3601_v52 = vld [vmem:[%s11355_s6 + $0x78] sm:$0xff] }
 0x2c8   : > { %3435 = vmatprep.mubr.bf16.mxu1 %v7953_v29  ;;  %3906 = vperm.xlu0 %7924, %v3560_v21   ;;  %v3603_v29 = vld [vmem:[%s11355_s6 + $0x88] sm:$0xff]  ;;  %v3605_v21 = vld [vmem:[%s11355_s6 + $0x98] sm:$0xff] }
 0x2cb   : > { %3911 = vperm.xlu1 %7925, %v3561_v42  }
 0x2cc   : > { %3916 = vperm.xlu0 %7924, %v3562_v11   ;;  %v3614_v11 = vld [vmem:[%s11355_s6 + $0xe0] sm:$0xff] }
 0x2cf   : > { %3436 = vmatmul.mubr.bf16.gmra.mrb[212].mxu1 %v7955_v58  ;;  %3921 = vperm.xlu1 %7925, %v3563_v50   ;;  %v3612_v58 = vld [vmem:[%s11355_s6 + $0xd0] sm:$0xff] }
 0x2d0   : > { %3445 = vmatprep.mubr.bf16.mxu1 %v7956_v38  ;;  %3926 = vperm.xlu0 %7924, %v3564_v6   ;;  %v3607_v38 = vld [vmem:[%s11355_s6 + $0xa8] sm:$0xff]  ;;  %v3609_v6 = vld [vmem:[%s11355_s6 + $0xb8] sm:$0xff] }
 0x2d3   : > { %3931 = vperm.xlu1 %7925, %v3565_v10  }
 0x2d4   : > { %3936 = vperm.xlu0 %7924, %v3566_v25   ;;  %v3618_v25 = vld [vmem:[%s11355_s6 + $0x100] sm:$0xff] }
 0x2d7   : > { %3446 = vmatmul.mubr.bf16.gmra.mrb[216].mxu1 %v7958_v17  ;;  %3941 = vperm.xlu1 %7925, %v3567_v47   ;;  %v3616_v17 = vld [vmem:[%s11355_s6 + $0xf0] sm:$0xff]  ;;  %v3619_v47 = vld [vmem:[%s11355_s6 + $0x108] sm:$0xff] }
 0x2d8   : > { %3455 = vmatprep.mubr.bf16.mxu1 %v7959_v13  ;;  %3946 = vperm.xlu0 %7924, %v3568_v63   ;;  %v3611_v13 = vld [vmem:[%s11355_s6 + $0xc8] sm:$0xff] }
 0x2db   : > { %3951 = vperm.xlu1 %7925, %v3569_v48  }
 0x2dc   : > { %3956 = vperm.xlu0 %7924, %v3570_v30   ;;  %v3620_v30 = vld [vmem:[%s11355_s6 + $0x110] sm:$0xff] }
 0x2df   : > { %3456 = vmatmul.mubr.bf16.gmra.mrb[220].mxu1 %v7961_v36  ;;  %3961 = vperm.xlu1 %7925, %v3571_v44   ;;  %v3628_v44 = vld [vmem:[%s11355_s6 + $0x150] sm:$0xff] }
 0x2e0   : > { %3465 = vmatprep.mubr.bf16.mxu1 %v7962_v56  ;;  %3966 = vperm.xlu0 %7924, %v3572_v31   ;;  %v3613_v56 = vld [vmem:[%s11355_s6 + $0xd8] sm:$0xff] }
 0x2e3   : > { %3971 = vperm.xlu1 %7925, %v3573_v12   ;;  %v3623_v12 = vld [vmem:[%s11355_s6 + $0x128] sm:$0xff] }
 0x2e4   : > { %3976 = vperm.xlu0 %7924, %v3574_v27   ;;  %v3626_v27 = vld [vmem:[%s11355_s6 + $0x140] sm:$0xff] }
 0x2e7   : > { %3466 = vmatmul.mubr.bf16.gmra.mrb[224].mxu1 %v7964_v7  ;;  %3981 = vperm.xlu1 %7925, %v3575_v19   ;;  %v3615_v7 = vld [vmem:[%s11355_s6 + $0xe8] sm:$0xff] }
 0x2e8   : > { %3475 = vmatprep.mubr.bf16.mxu1 %v7965_v34  ;;  %3986 = vperm.xlu0 %7924, %v3576_v49   ;;  %v3622_v34 = vld [vmem:[%s11355_s6 + $0x120] sm:$0xff]  ;;  %v3621_v49 = vld [vmem:[%s11355_s6 + $0x118] sm:$0xff] }
 0x2eb   : > { %3991 = vperm.xlu1 %7925, %v3577_v16   ;;  %v3625_v16 = vld [vmem:[%s11355_s6 + $0x138] sm:$0xff] }
 0x2ec   : > { %3996 = vperm.xlu0 %7924, %v3578_v59  }
 0x2ef   : > { %3476 = vmatmul.mubr.bf16.gmra.mrb[228].mxu1 %v7967_v5  ;;  %4001 = vperm.xlu1 %7925, %v3579_v40  }
 0x2f0   : > { %3485 = vmatprep.mubr.bf16.mxu1 %v7968_v39  ;;  %4006 = vperm.xlu0 %7924, %v3580_v14   ;;  %v3617_v39 = vld [vmem:[%s11355_s6 + $0xf8] sm:$0xff]  ;;  %v3630_v14 = vld [vmem:[%s11355_s6 + $0x160] sm:$0xff] }
 0x2f3   : > { %4011 = vperm.xlu1 %7925, %v3581_v18   ;;  %v3634_v18 = vld [vmem:[%s11355_s6 + $0x180] sm:$0xff] }
 0x2f4   : > { %4016 = vperm.xlu0 %7924, %v3582_v53  }
 0x2f7   : > { %3486 = vmatmul.mubr.bf16.gmra.mrb[232].mxu1 %v7970_v20  ;;  %4021 = vperm.xlu1 %7925, %v3583_v33   ;;  %v3624_v20 = vld [vmem:[%s11355_s6 + $0x130] sm:$0xff]  ;;  %v3629_v33 = vld [vmem:[%s11355_s6 + $0x158] sm:$0xff] }
 0x2f8   : > { %3495 = vmatprep.mubr.bf16.mxu1 %v7971_v43  ;;  %4026 = vperm.xlu0 %7924, %v3584_v45   ;;  %v10502_v60 = vpop.permute.xlu0 %3716  ;;  %v3632_v45 = vld [vmem:[%s11355_s6 + $0x170] sm:$0xff] }
 0x2fb   : > { %4031 = vperm.xlu1 %7925, %v3585_v37  }
 0x2fc   : > { %4901 = vperm.xlu0 %7924, %v3586_v61   ;;  %v10516_v8 = vpop.permute.xlu0 %3721  ;;  %v3627_v61 = vld [vmem:[%s11355_s6 + $0x148] sm:$0xff] }
 0x2fe   : > { %v10532_v50 = vpop.permute.xlu1 %3726 }
 0x2ff   : > { %3496 = vmatmul.mubr.bf16.gmra.mrb[236].mxu1 %v7973_v4  ;;  %4906 = vperm.xlu1 %7925, %v3587_v0   ;;  %v3631_v0 = vld [vmem:[%s11355_s6 + $0x168] sm:$0xff] }
 0x300   : > { %4258 = vmatprep.mubr.bf16.mxu1 %v8299_v62  ;;  %4911 = vperm.xlu0 %7924, %v3588_v41  }
 0x302   : > { %v10548_v63 = vpop.permute.xlu1 %3731 }
 0x303   : > { %4916 = vperm.xlu1 %7925, %v3589_v3   ;;  %v10524_v42 = vpop.permute.xlu0 %3736 }
 0x304   : > { %4921 = vperm.xlu0 %7924, %v3590_v9   ;;  %v3636_v9 = vld [vmem:[%s11355_s6 + $0x190] sm:$0xff] }
 0x306   : > { %v10558_v31 = vpop.permute.xlu1 %3741 }
 0x307   : > { %4926 = vperm.xlu1 %7925, %v3591_v54   ;;  %v10540_v10 = vpop.permute.xlu0 %3746 }
 0x308   : > { %4931 = vperm.xlu0 %7924, %v3592_v55  }
 0x30a   : > { %v10574_v43 = vpop.permute.xlu1 %3751 }
 0x30b   : > { %4936 = vperm.xlu1 %7925, %v3593_v1   ;;  %v10550_v36 = vpop.permute.xlu0 %3756  ;;  %v3633_v1 = vld [vmem:[%s11355_s6 + $0x178] sm:$0xff] }
 0x30c   : > { %4941 = vperm.xlu0 %7924, %v3594_v24   ;;  %v3638_v24 = vld [vmem:[%s11355_s6 + $0x1a0] sm:$0xff] }
 0x30e   : > { %v10584_v48 = vpop.permute.xlu1 %3761 }
 0x30f   : > { %4946 = vperm.xlu1 %7925, %v3595_v15   ;;  %v10566_v5 = vpop.permute.xlu0 %3766 }
 0x310   : > { %4951 = vperm.xlu0 %7924, %v3596_v51  }
 0x312   : > { %v10600_v19 = vpop.permute.xlu1 %3771 }
 0x313   : > { %4956 = vperm.xlu1 %7925, %v3597_v2   ;;  %v10576_v4 = vpop.permute.xlu0 %3776 }
 0x314   : > { %4961 = vperm.xlu0 %7924, %v3598_v35  }
 0x316   : > { %v10610_v40 = vpop.permute.xlu1 %3781 }
 0x317   : > { %4966 = vperm.xlu1 %7925, %v3599_v32   ;;  %v10592_v59 = vpop.permute.xlu0 %3786  ;;  %v3635_v32 = vld [vmem:[%s11355_s6 + $0x188] sm:$0xff] }
 0x318   : > { %4971 = vperm.xlu0 %7924, %v3600_v28   ;;  %v3640_v28 = vld [vmem:[%s11355_s6 + $0x1b0] sm:$0xff] }
 0x31a   : > { %v10626_v37 = vpop.permute.xlu1 %3791 }
 0x31b   : > { %4976 = vperm.xlu1 %7925, %v3601_v52   ;;  %v10602_v53 = vpop.permute.xlu0 %3796 }
 0x31c   : > { %4981 = vperm.xlu0 %7924, %v3602_v23  }
 0x31e   : > { %v10636_v54 = vpop.permute.xlu1 %3801 }
 0x31f   : > { %4986 = vperm.xlu1 %7925, %v3603_v29   ;;  %v10618_v41 = vpop.permute.xlu0 %3806 }
 0x320   : > { %4991 = vperm.xlu0 %7924, %v3604_v46  }
 0x322   : > { %v10652_v52 = vpop.permute.xlu1 %3811 }
 0x323   : > { %4996 = vperm.xlu1 %7925, %v3605_v21   ;;  %v10628_v55 = vpop.permute.xlu0 %3816 }
 0x324   : > { %5001 = vperm.xlu0 %7924, %v3606_v57   ;;  %v3642_v57 = vld [vmem:[%s11355_s6 + $0x1c0] sm:$0xff] }
 0x327   : > { %5006 = vperm.xlu1 %7925, %v3607_v38   ;;  %v10644_v2 = vpop.permute.xlu0 %3826  ;;  %v3644_v38 = vld [vmem:[%s11355_s6 + $0x1d0] sm:$0xff] }
 0x328   : > { %5011 = vperm.xlu0 %7924, %v3608_v26  }
 0x32b   : > { %5016 = vperm.xlu1 %7925, %v3609_v6  }
 0x32c   : > { %5021 = vperm.xlu0 %7924, %v3610_v22   ;;  %v10654_v22 = vpop.permute.xlu0 %3836 }
 0x32f   : > { %5026 = vperm.xlu1 %7925, %v3611_v13   ;;  %v10662_v13 = vpop.permute.xlu1 %3821 }
 0x330   : > { %5031 = vperm.xlu0 %7924, %v3612_v58   ;;  %v3637_v58 = vld [vmem:[%s11355_s6 + $0x198] sm:$0xff] }
 0x333   : > { %5036 = vperm.xlu1 %7925, %v3613_v56   ;;  %v3646_v56 = vld [vmem:[%s11355_s6 + $0x1e0] sm:$0xff] }
 0x334   : > { %5041 = vperm.xlu0 %7924, %v3614_v11  }
 0x337   : > { %5046 = vperm.xlu1 %7925, %v3615_v7  }
 0x338   : > { %5051 = vperm.xlu0 %7924, %v3616_v17  }
 0x33b   : > { %5056 = vperm.xlu1 %7925, %v3617_v39  }
 0x33c   : > { %5061 = vperm.xlu0 %7924, %v3618_v25   ;;  %v3639_v25 = vld [vmem:[%s11355_s6 + $0x1a8] sm:$0xff] }
 0x33f   : > { %5066 = vperm.xlu1 %7925, %v3619_v47   ;;  %v3648_v47 = vld [vmem:[%s11355_s6 + $0x1f0] sm:$0xff] }
 0x340   : > { %5071 = vperm.xlu0 %7924, %v3620_v30   ;;  %v10670_v30 = vpop.permute.xlu0 %3846 }
 0x343   : > { %5076 = vperm.xlu1 %7925, %v3621_v49  }
 0x344   : > { %5081 = vperm.xlu0 %7924, %v3622_v34  }
 0x347   : > { %5086 = vperm.xlu1 %7925, %v3623_v12  }
 0x348   : > { %5091 = vperm.xlu0 %7924, %v3624_v20   ;;  %v3641_v20 = vld [vmem:[%s11355_s6 + $0x1b8] sm:$0xff] }
 0x34b   : > { %5096 = vperm.xlu1 %7925, %v3625_v16   ;;  %v3643_v16 = vld [vmem:[%s11355_s6 + $0x1c8] sm:$0xff] }
 0x34c   : > { %5101 = vperm.xlu0 %7924, %v3626_v27  }
 0x34f   : > { %5106 = vperm.xlu1 %7925, %v3627_v61  }
 0x350   : > { %5111 = vperm.xlu0 %7924, %v3628_v44   ;;  %v10678_v44 = vpop.permute.xlu1 %3831 }
 0x353   : > { %5116 = vperm.xlu1 %7925, %v3629_v33  }
 0x354   : > { %5121 = vperm.xlu0 %7924, %v3630_v14   ;;  %v10680_v14 = vpop.permute.xlu0 %3856 }
 0x357   : > { %5126 = vperm.xlu1 %7925, %v3631_v0  }
 0x358   : > { %5131 = vperm.xlu0 %7924, %v3632_v45  }
 0x35b   : > { %5136 = vperm.xlu1 %7925, %v3633_v1  }
 0x35c   : > { %5141 = vperm.xlu0 %7924, %v3634_v18   ;;  %v10685_v18 = vpop.permute.xlu1 %3841 }
 0x35f   : > { %5146 = vperm.xlu1 %7925, %v3635_v32  }
 0x360   : > { %5151 = vperm.xlu0 %7924, %v3636_v9   ;;  %v3645_v9 = vld [vmem:[%s11355_s6 + $0x1d8] sm:$0xff] }
 0x363   : > { %5156 = vperm.xlu1 %7925, %v3637_v58  }
 0x364   : > { %5161 = vperm.xlu0 %7924, %v3638_v24  }
 0x367   : > { %5166 = vperm.xlu1 %7925, %v3639_v25  }
 0x368   : > { %5171 = vperm.xlu0 %7924, %v3640_v28  }
 0x36b   : > { %5176 = vperm.xlu1 %7925, %v3641_v20  }
 0x36c   : > { %5181 = vperm.xlu0 %7924, %v3642_v57  }
 0x36f   : > { %5186 = vperm.xlu1 %7925, %v3643_v16  }
 0x370   : > { %5191 = vperm.xlu0 %7924, %v3644_v38  }
 0x373   : > { %5196 = vperm.xlu1 %7925, %v3645_v9   ;;  %v7977_v9 = vld [vmem:[%s11352_s3 + $0x18] sm:$0xff]  }
 0x374   : > { %5201 = vperm.xlu0 %7924, %v3646_v56  }
 0x378   : > { %5211 = vperm.xlu0 %7924, %v3648_v47  }
 0x39a   : > { %v3427_v3 = vpop.f32.mrb[208].mxu1 }
 0x39b   : > { %v3429_v51 = vpop.f32.mrb[209].mxu1 }
 0x39c   : > { %v3431_v35 = vpop.f32.mrb[210].mxu1 }
 0x39d   : > { %v3506_v15 = vpack.c.bf16 %v3431_v35, %v3427_v3  ;;  %v3433_v23 = vpop.f32.mrb[211].mxu1  ;;  %v10693_v35 = vpop.permute.xlu1 %3851 }
 0x39e   : > { %v3507_v46 = vpack.c.bf16 %v3433_v23, %v3429_v51  ;;  %v3647_v51 = vld [vmem:[%s11355_s6 + $0x1e8] sm:$0xff]  ;;  %v3649_v23 = vld [vmem:[%s11355_s6 + $0x1f8] sm:$0xff] }
 0x39f   : > { %5206 = vperm.xlu1 %7925, %v3647_v51   ;;  %v7981_v51 = vld [vmem:[%s11352_s3 + $0x38] sm:$0xff]  }
 0x3a0   : > { %4226 = vmatprep.subr.bf16.mxu1 %v3507_v46 }
 0x3a1   : > { %4227 = vmatpush1.bf16.msra.mxu1 %v3506_v15 }
 0x3a2   : > { %v3437_v26 = vpop.f32.mrb[212].mxu1 }
 0x3a3   : > { %v3439_v29 = vpop.f32.mrb[213].mxu1 }
 0x3a4   : > { %v3441_v21 = vpop.f32.mrb[214].mxu1 }
 0x3a5   : > { %v3508_v11 = vpack.c.bf16 %v3441_v21, %v3437_v26  ;;  %v3443_v6 = vpop.f32.mrb[215].mxu1  ;;  %v10698_v26 = vpop.permute.xlu1 %3861  ;;  %5216 = vperm.xlu1 %7925, %v3649_v23   ;;  %v7985_v23 = vld [vmem:[%s11352_s3 + $0x58] sm:$0xff]  }
 0x3a6   : > { %v3509_v17 = vpack.c.bf16 %v3443_v6, %v3439_v29 }
 0x3a8   : > { %4228 = vmatprep.subr.bf16.mxu1 %v3509_v17 }
 0x3a9   : > { %4229 = vmatpush1.bf16.msra.mxu1 %v3508_v11 }
 0x3aa   : > { %v3447_v7 = vpop.f32.mrb[216].mxu1 }
 0x3ab   : > { %v3449_v34 = vpop.f32.mrb[217].mxu1 }
 0x3ac   : > { %v3451_v39 = vpop.f32.mrb[218].mxu1 }
 0x3ad   : > { %v3510_v27 = vpack.c.bf16 %v3451_v39, %v3447_v7  ;;  %v3453_v49 = vpop.f32.mrb[219].mxu1 }
 0x3ae   : > { %v3511_v12 = vpack.c.bf16 %v3453_v49, %v3449_v34 }
 0x3b0   : > { %4230 = vmatprep.subr.bf16.mxu1 %v3511_v12 }
 0x3b1   : > { %4231 = vmatpush1.bf16.msra.mxu1 %v3510_v27 }
 0x3b2   : > { %v3457_v45 = vpop.f32.mrb[220].mxu1 }
 0x3b3   : > { %v3459_v61 = vpop.f32.mrb[221].mxu1 }
 0x3b4   : > { %v3461_v33 = vpop.f32.mrb[222].mxu1 }
 0x3b5   : > { %v3512_v0 = vpack.c.bf16 %v3461_v33, %v3457_v45  ;;  %v3463_v24 = vpop.f32.mrb[223].mxu1  ;;  %v7974_v45 = vld [vmem:[%s11352_s3] sm:$0xff]   ;;  %v7976_v33 = vld [vmem:[%s11352_s3 + $0x10] sm:$0xff]  }
 0x3b6   : > { %v3513_v3 = vpack.c.bf16 %v3463_v24, %v3459_v61  ;;  %v7975_v61 = vld [vmem:[%s11352_s3 + $0x8] sm:$0xff]  }
 0x3b7   : > { %v7979_v24 = vld [vmem:[%s11352_s3 + $0x28] sm:$0xff]  }
 0x3b8   : > { %4232 = vmatprep.subr.bf16.mxu1 %v3513_v3  ;;  %v7980_v3 = vld [vmem:[%s11352_s3 + $0x30] sm:$0xff]  }
 0x3b9   : > { %4233 = vmatpush1.bf16.msra.mxu1 %v3512_v0  ;;  %v7978_v0 = vld [vmem:[%s11352_s3 + $0x20] sm:$0xff]  }
 0x3ba   : > { %v3467_v1 = vpop.f32.mrb[224].mxu1 }
 0x3bb   : > { %v3469_v28 = vpop.f32.mrb[225].mxu1 }
 0x3bc   : > { %v3471_v15 = vpop.f32.mrb[226].mxu1 }
 0x3bd   : > { %v3514_v46 = vpack.c.bf16 %v3471_v15, %v3467_v1  ;;  %v3473_v32 = vpop.f32.mrb[227].mxu1  ;;  %v7982_v1 = vld [vmem:[%s11352_s3 + $0x40] sm:$0xff]   ;;  %v7984_v15 = vld [vmem:[%s11352_s3 + $0x50] sm:$0xff]  }
 0x3be   : > { %v3515_v57 = vpack.c.bf16 %v3473_v32, %v3469_v28  ;;  %v7983_v28 = vld [vmem:[%s11352_s3 + $0x48] sm:$0xff]  }
 0x3bf   : > { %v7987_v32 = vld [vmem:[%s11352_s3 + $0x68] sm:$0xff]  }
 0x3c0   : > { %4234 = vmatprep.subr.bf16.mxu1 %v3515_v57  ;;  %v7988_v57 = vld [vmem:[%s11352_s3 + $0x70] sm:$0xff]  }
 0x3c1   : > { %4235 = vmatpush1.bf16.msra.mxu1 %v3514_v46  ;;  %v7986_v46 = vld [vmem:[%s11352_s3 + $0x60] sm:$0xff]  }
 0x3c2   : > { %v3477_v29 = vpop.f32.mrb[228].mxu1 }
 0x3c3   : > { %v3479_v21 = vpop.f32.mrb[229].mxu1 }
 0x3c4   : > { %v3481_v58 = vpop.f32.mrb[230].mxu1 }
 0x3c5   : > { %v3516_v38 = vpack.c.bf16 %v3481_v58, %v3477_v29  ;;  %v3483_v11 = vpop.f32.mrb[231].mxu1  ;;  %v7989_v29 = vld [vmem:[%s11352_s3 + $0x78] sm:$0xff]   ;;  %v7991_v58 = vld [vmem:[%s11352_s3 + $0x88] sm:$0xff]  }
 0x3c6   : > { %v3517_v6 = vpack.c.bf16 %v3483_v11, %v3479_v21  ;;  %v7990_v21 = vld [vmem:[%s11352_s3 + $0x80] sm:$0xff]   ;;  %v7993_v11 = vld [vmem:[%s11352_s3 + $0x98] sm:$0xff]  }
 0x3c8   : > { %4236 = vmatprep.subr.bf16.mxu1 %v3517_v6  ;;  %v7994_v6 = vld [vmem:[%s11352_s3 + $0xa0] sm:$0xff]  }
 0x3c9   : > { %4237 = vmatpush1.bf16.msra.mxu1 %v3516_v38  ;;  %v7992_v38 = vld [vmem:[%s11352_s3 + $0x90] sm:$0xff]  }
 0x3ca   : > { %v3487_v17 = vpop.f32.mrb[232].mxu1 }
 0x3cb   : > { %v3489_v25 = vpop.f32.mrb[233].mxu1 }
 0x3cc   : > { %v3491_v56 = vpop.f32.mrb[234].mxu1 }
 0x3cd   : > { %v3518_v7 = vpack.c.bf16 %v3491_v56, %v3487_v17  ;;  %v3493_v34 = vpop.f32.mrb[235].mxu1  ;;  %v7995_v17 = vld [vmem:[%s11352_s3 + $0xa8] sm:$0xff]   ;;  %v7997_v56 = vld [vmem:[%s11352_s3 + $0xb8] sm:$0xff]  }
 0x3ce   : > { %v3519_v39 = vpack.c.bf16 %v3493_v34, %v3489_v25  ;;  %v7996_v25 = vld [vmem:[%s11352_s3 + $0xb0] sm:$0xff]   ;;  %v7999_v34 = vld [vmem:[%s11352_s3 + $0xc8] sm:$0xff]  }
 0x3d0   : > { %4238 = vmatprep.subr.bf16.mxu1 %v3519_v39  ;;  %v8000_v39 = vld [vmem:[%s11352_s3 + $0xd0] sm:$0xff]  }
 0x3d1   : > { %4239 = vmatpush1.bf16.msra.mxu1 %v3518_v7  ;;  %v7998_v7 = vld [vmem:[%s11352_s3 + $0xc0] sm:$0xff]  }
 0x3d2   : > { %v3497_v20 = vpop.f32.mrb[236].mxu1 }
 0x3d3   : > { %v3499_v47 = vpop.f32.mrb[237].mxu1 }
 0x3d4   : > { %v3501_v27 = vpop.f32.mrb[238].mxu1 }
 0x3d5   : > { %v3520_v49 = vpack.c.bf16 %v3501_v27, %v3497_v20  ;;  %v3503_v12 = vpop.f32.mrb[239].mxu1 }
 0x3d6   : > { %v3521_v16 = vpack.c.bf16 %v3503_v12, %v3499_v47 }
 0x3d8   : > { %4240 = vmatprep.subr.bf16.mxu1 %v3521_v16 }
 0x3d9   : > { %4241 = vmatpush1.bf16.msra.mxu1 %v3520_v49  ;;  %v8001_v49 = vld [vmem:[%s11352_s3 + $0xd8] sm:$0xff]  }
 0x3dc   : > { %4259 = vmatmul.mubr.bf16.vlgmr.msra.gmra.mrb[240].mxu1 %v7974_v45 }
 0x3dd   : > { %4268 = vmatprep.mubr.bf16.mxu1 %v8299_v62 }
 0x3e4   : > { %4269 = vmatmul.mubr.bf16.gmra.mrb[244].mxu1 %v7975_v61 }
 0x3e5   : > { %4278 = vmatprep.mubr.bf16.mxu1 %v8299_v62 }
 0x3ec   : > { %4279 = vmatmul.mubr.bf16.gmra.mrb[248].mxu1 %v7976_v33 }
 0x3ed   : > { %4288 = vmatprep.mubr.bf16.mxu1 %v8299_v62 }
 0x3f4   : > { %4289 = vmatmul.mubr.bf16.gmra.mrb[252].mxu1 %v7977_v9  ;;  %v8008_v9 = vld [vmem:[%s11353_s4 + $0x4] ss:$16 sps:$4 sm:$0xff]  }
 0x3f5   : > { %4298 = vmatprep.mubr.bf16.mxu1 %v8299_v62  ;;  %5891 = vmatprep.mubr.bf16.mxu0 %v8008_v9 }
 0x3fc   : > { %4299 = vmatmul.mubr.bf16.gmra.mrb[0].mxu1 %v7978_v0 }
 0x3fd   : > { %4308 = vmatprep.mubr.bf16.mxu1 %v8299_v62 }
 0x404   : > { %4309 = vmatmul.mubr.bf16.gmra.mrb[4].mxu1 %v7979_v24 }
 0x405   : > { %4318 = vmatprep.mubr.bf16.mxu1 %v8299_v62 }
 0x40c   : > { %4319 = vmatmul.mubr.bf16.gmra.mrb[8].mxu1 %v7980_v3 }
 0x40d   : > { %4328 = vmatprep.mubr.bf16.mxu1 %v8299_v62 }
 0x414   : > { %4329 = vmatmul.mubr.bf16.gmra.mrb[12].mxu1 %v7981_v51 }
 0x415   : > { %4338 = vmatprep.mubr.bf16.mxu1 %v8299_v62 }
 0x41c   : > { %4339 = vmatmul.mubr.bf16.gmra.mrb[16].mxu1 %v7982_v1 }
 0x41d   : > { %4348 = vmatprep.mubr.bf16.mxu1 %v8299_v62 }
 0x424   : > { %4349 = vmatmul.mubr.bf16.gmra.mrb[20].mxu1 %v7983_v28 }
 0x425   : > { %4358 = vmatprep.mubr.bf16.mxu1 %v8299_v62 }
 0x42c   : > { %4359 = vmatmul.mubr.bf16.gmra.mrb[24].mxu1 %v7984_v15 }
 0x42d   : > { %4368 = vmatprep.mubr.bf16.mxu1 %v8299_v62 }
 0x434   : > { %4369 = vmatmul.mubr.bf16.gmra.mrb[28].mxu1 %v7985_v23 }
 0x435   : > { %4378 = vmatprep.mubr.bf16.mxu1 %v8299_v62 }
 0x43c   : > { %4379 = vmatmul.mubr.bf16.gmra.mrb[32].mxu1 %v7986_v46 }
 0x43d   : > { %4388 = vmatprep.mubr.bf16.mxu1 %v8299_v62 }
 0x444   : > { %4389 = vmatmul.mubr.bf16.gmra.mrb[36].mxu1 %v7987_v32 }
 0x445   : > { %4398 = vmatprep.mubr.bf16.mxu1 %v8299_v62 }
 0x44c   : > { %4399 = vmatmul.mubr.bf16.gmra.mrb[40].mxu1 %v7988_v57 }
 0x44d   : > { %4408 = vmatprep.mubr.bf16.mxu1 %v8299_v62 }
 0x454   : > { %4409 = vmatmul.mubr.bf16.gmra.mrb[44].mxu1 %v7989_v29 }
 0x455   : > { %4418 = vmatprep.mubr.bf16.mxu1 %v8299_v62 }
 0x45c   : > { %4419 = vmatmul.mubr.bf16.gmra.mrb[48].mxu1 %v7990_v21 }
 0x45d   : > { %4428 = vmatprep.mubr.bf16.mxu1 %v8299_v62 }
 0x464   : > { %4429 = vmatmul.mubr.bf16.gmra.mrb[52].mxu1 %v7991_v58 }
 0x465   : > { %4438 = vmatprep.mubr.bf16.mxu1 %v8299_v62 }
 0x46c   : > { %4439 = vmatmul.mubr.bf16.gmra.mrb[56].mxu1 %v7992_v38 }
 0x46d   : > { %4448 = vmatprep.mubr.bf16.mxu1 %v8299_v62 }
 0x474   : > { %4449 = vmatmul.mubr.bf16.gmra.mrb[60].mxu1 %v7993_v11 }
 0x475   : > { %4458 = vmatprep.mubr.bf16.mxu1 %v8299_v62 }
 0x47c   : > { %4459 = vmatmul.mubr.bf16.gmra.mrb[64].mxu1 %v7994_v6 }
 0x47d   : > { %4468 = vmatprep.mubr.bf16.mxu1 %v8299_v62 }
 0x484   : > { %4469 = vmatmul.mubr.bf16.gmra.mrb[68].mxu1 %v7995_v17 }
 0x485   : > { %4478 = vmatprep.mubr.bf16.mxu1 %v8299_v62 }
 0x48c   : > { %4479 = vmatmul.mubr.bf16.gmra.mrb[72].mxu1 %v7996_v25 }
 0x48d   : > { %4488 = vmatprep.mubr.bf16.mxu1 %v8299_v62 }
 0x494   : > { %4489 = vmatmul.mubr.bf16.gmra.mrb[76].mxu1 %v7997_v56 }
 0x495   : > { %4498 = vmatprep.mubr.bf16.mxu1 %v8299_v62 }
 0x49c   : > { %4499 = vmatmul.mubr.bf16.gmra.mrb[80].mxu1 %v7998_v7 }
 0x49d   : > { %4508 = vmatprep.mubr.bf16.mxu1 %v8299_v62 }
 0x4a4   : > { %4509 = vmatmul.mubr.bf16.gmra.mrb[84].mxu1 %v7999_v34  ;;  %v8003_v34 = vld [vmem:[%s11352_s3 + $0xe8] sm:$0xff]  }
 0x4a5   : > { %4518 = vmatprep.mubr.bf16.mxu1 %v8299_v62 }
 0x4ac   : > { %4519 = vmatmul.mubr.bf16.gmra.mrb[88].mxu1 %v8000_v39 }
 0x4ad   : > { %4528 = vmatprep.mubr.bf16.mxu1 %v8299_v62 }
 0x4af   : > { %v4260_v20 = vpop.f32.mrb[240].mxu1 }
 0x4b0   : > { %v4261_v47 = vadd.f32 %v4260_v20, %v10502_v60  ;;  %v4262_v27 = vpop.f32.mrb[241].mxu1 }
 0x4b1   : > { %v4263_v12 = vadd.f32 %v4262_v27, %v10502_v60  ;;  %v4264_v16 = vpop.f32.mrb[242].mxu1 }
 0x4b2   : > { %v4265_v45 = vadd.f32 %v4264_v16, %v10516_v8  ;;  %v4266_v61 = vpop.f32.mrb[243].mxu1  ;;  %v4579_v0 = vmax.f32 %v4261_v47, 0.0 }
 0x4b3   : > { %v4267_v33 = vadd.f32 %v4266_v61, %v10516_v8  ;;  %v4580_v3 = vmax.f32 %v4263_v12, 0.0  ;;  %v8002_v8 = vld [vmem:[%s11352_s3 + $0xe0] sm:$0xff]  }
 0x4b4   : > { %v4581_v24 = vmax.f32 %v4265_v45, 0.0  ;;  %4529 = vmatmul.mubr.bf16.gmra.mrb[92].mxu1 %v8001_v49 }
 0x4b5   : > { %v4582_v51 = vmax.f32 %v4267_v33, 0.0  ;;  %4538 = vmatprep.mubr.bf16.mxu1 %v8299_v62 }
 0x4b6   : > { %v4707_v1 = vpack.c.bf16 %v4581_v24, %v4579_v0  ;;  %v8004_v24 = vld [vmem:[%s11352_s3 + $0xf0] sm:$0xff]  }
 0x4b7   : > { %v4708_v60 = vpack.c.bf16 %v4582_v51, %v4580_v3  ;;  %v4270_v28 = vpop.f32.mrb[244].mxu1 }
 0x4b8   : > { %v4271_v15 = vadd.f32 %v4270_v28, %v10532_v50  ;;  %v4272_v23 = vpop.f32.mrb[245].mxu1 }
 0x4b9   : > { %5859 = vmatprep.subr.bf16.mxu0 %v4708_v60  ;;  %v4273_v46 = vadd.f32 %v4272_v23, %v10532_v50  ;;  %v4274_v32 = vpop.f32.mrb[246].mxu1 }
 0x4ba   : > { %5860 = vmatpush1.bf16.msra.mxu0 %v4707_v1  ;;  %v4275_v57 = vadd.f32 %v4274_v32, %v10548_v63  ;;  %v4276_v29 = vpop.f32.mrb[247].mxu1  ;;  %v4583_v58 = vmax.f32 %v4271_v15, 0.0 }
 0x4bb   : > { %v4277_v21 = vadd.f32 %v4276_v29, %v10548_v63  ;;  %v4584_v11 = vmax.f32 %v4273_v46, 0.0 }
 0x4bc   : > { %v4585_v38 = vmax.f32 %v4275_v57, 0.0  ;;  %4539 = vmatmul.mubr.bf16.gmra.mrb[96].mxu1 %v8002_v8 }
 0x4bd   : > { %v4586_v6 = vmax.f32 %v4277_v21, 0.0  ;;  %4548 = vmatprep.mubr.bf16.mxu1 %v8299_v62  ;;  %v8005_v21 = vld [vmem:[%s11352_s3 + $0xf8] sm:$0xff]  }
 0x4be   : > { %v4709_v17 = vpack.c.bf16 %v4585_v38, %v4583_v58 }
 0x4bf   : > { %v4710_v25 = vpack.c.bf16 %v4586_v6, %v4584_v11  ;;  %v4280_v56 = vpop.f32.mrb[248].mxu1 }
 0x4c0   : > { %v4281_v7 = vadd.f32 %v4280_v56, %v10524_v42  ;;  %v4282_v50 = vpop.f32.mrb[249].mxu1 }
 0x4c1   : > { %v4283_v39 = vadd.f32 %v4282_v50, %v10524_v42  ;;  %v4284_v63 = vpop.f32.mrb[250].mxu1  ;;  %5861 = vmatprep.subr.bf16.mxu0 %v4710_v25 }
 0x4c2   : > { %v4285_v20 = vadd.f32 %v4284_v63, %v10558_v31  ;;  %v4286_v47 = vpop.f32.mrb[251].mxu1  ;;  %5862 = vmatpush1.bf16.msra.mxu0 %v4709_v17  ;;  %v4587_v49 = vmax.f32 %v4281_v7, 0.0 }
 0x4c3   : > { %v4287_v27 = vadd.f32 %v4286_v47, %v10558_v31  ;;  %v4588_v16 = vmax.f32 %v4283_v39, 0.0 }
 0x4c4   : > { %v4589_v12 = vmax.f32 %v4285_v20, 0.0  ;;  %4549 = vmatmul.mubr.bf16.gmra.mrb[100].mxu1 %v8003_v34 }
 0x4c5   : > { %v4590_v45 = vmax.f32 %v4287_v27, 0.0  ;;  %4558 = vmatprep.mubr.bf16.mxu1 %v8299_v62 }
 0x4c6   : > { %v4711_v61 = vpack.c.bf16 %v4589_v12, %v4587_v49 }
 0x4c7   : > { %v4712_v33 = vpack.c.bf16 %v4590_v45, %v4588_v16  ;;  %v4290_v9 = vpop.f32.mrb[252].mxu1 }
 0x4c8   : > { %v4291_v42 = vadd.f32 %v4290_v9, %v10540_v10  ;;  %v4292_v0 = vpop.f32.mrb[253].mxu1 }
 0x4c9   : > { %v4293_v3 = vadd.f32 %v4292_v0, %v10540_v10  ;;  %v4294_v31 = vpop.f32.mrb[254].mxu1  ;;  %5863 = vmatprep.subr.bf16.mxu0 %v4712_v33 }
 0x4ca   : > { %v4295_v51 = vadd.f32 %v4294_v31, %v10574_v43  ;;  %v4296_v1 = vpop.f32.mrb[255].mxu1  ;;  %5864 = vmatpush1.bf16.msra.mxu0 %v4711_v61  ;;  %v4591_v28 = vmax.f32 %v4291_v42, 0.0 }
 0x4cb   : > { %v4297_v60 = vadd.f32 %v4296_v1, %v10574_v43  ;;  %v4592_v23 = vmax.f32 %v4293_v3, 0.0 }
 0x4cc   : > { %v4593_v15 = vmax.f32 %v4295_v51, 0.0  ;;  %4559 = vmatmul.mubr.bf16.gmra.mrb[104].mxu1 %v8004_v24 }
 0x4cd   : > { %v4594_v8 = vmax.f32 %v4297_v60, 0.0  ;;  %4568 = vmatprep.mubr.bf16.mxu1 %v8299_v62 }
 0x4ce   : > { %v4713_v46 = vpack.c.bf16 %v4593_v15, %v4591_v28 }
 0x4cf   : > { %v4714_v32 = vpack.c.bf16 %v4594_v8, %v4592_v23  ;;  %v4300_v57 = vpop.f32.mrb[0].mxu1 }
 0x4d0   : > { %v4301_v10 = vadd.f32 %v4300_v57, %v10550_v36  ;;  %v4302_v29 = vpop.f32.mrb[1].mxu1 }
 0x4d1   : > { %v4303_v58 = vadd.f32 %v4302_v29, %v10550_v36  ;;  %v4304_v43 = vpop.f32.mrb[2].mxu1  ;;  %5865 = vmatprep.subr.bf16.mxu0 %v4714_v32 }
 0x4d2   : > { %v4305_v38 = vadd.f32 %v4304_v43, %v10584_v48  ;;  %v4306_v11 = vpop.f32.mrb[3].mxu1  ;;  %5866 = vmatpush1.bf16.msra.mxu0 %v4713_v46  ;;  %v4595_v6 = vmax.f32 %v4301_v10, 0.0 }
 0x4d3   : > { %v4307_v62 = vadd.f32 %v4306_v11, %v10584_v48  ;;  %v4596_v25 = vmax.f32 %v4303_v58, 0.0 }
 0x4d4   : > { %v4597_v17 = vmax.f32 %v4305_v38, 0.0  ;;  %4569 = vmatmul.mubr.bf16.gmra.mrb[108].mxu1 %v8005_v21 }
 0x4d5   : > { %v4598_v56 = vmax.f32 %v4307_v62, 0.0 }
 0x4d6   : > { %v4715_v7 = vpack.c.bf16 %v4597_v17, %v4595_v6 }
 0x4d7   : > { %v4716_v50 = vpack.c.bf16 %v4598_v56, %v4596_v25  ;;  %v4310_v34 = vpop.f32.mrb[4].mxu1 }
 0x4d8   : > { %v4311_v39 = vadd.f32 %v4310_v34, %v10566_v5  ;;  %v4312_v63 = vpop.f32.mrb[5].mxu1 }
 0x4d9   : > { %v4313_v36 = vadd.f32 %v4312_v63, %v10566_v5  ;;  %v4314_v20 = vpop.f32.mrb[6].mxu1  ;;  %5867 = vmatprep.subr.bf16.mxu0 %v4716_v50 }
 0x4da   : > { %v4315_v47 = vadd.f32 %v4314_v20, %v10600_v19  ;;  %v4316_v27 = vpop.f32.mrb[7].mxu1  ;;  %5868 = vmatpush1.bf16.msra.mxu0 %v4715_v7  ;;  %v4599_v49 = vmax.f32 %v4311_v39, 0.0 }
 0x4db   : > { %v4317_v48 = vadd.f32 %v4316_v27, %v10600_v19  ;;  %v4600_v16 = vmax.f32 %v4313_v36, 0.0 }
 0x4dc   : > { %v4601_v12 = vmax.f32 %v4315_v47, 0.0 }
 0x4dd   : > { %v4602_v45 = vmax.f32 %v4317_v48, 0.0 }
 0x4de   : > { %v4717_v61 = vpack.c.bf16 %v4601_v12, %v4599_v49 }
 0x4df   : > { %v4718_v33 = vpack.c.bf16 %v4602_v45, %v4600_v16  ;;  %v4320_v9 = vpop.f32.mrb[8].mxu1 }
 0x4e0   : > { %v4321_v42 = vadd.f32 %v4320_v9, %v10576_v4  ;;  %v4322_v0 = vpop.f32.mrb[9].mxu1 }
 0x4e1   : > { %v4323_v5 = vadd.f32 %v4322_v0, %v10576_v4  ;;  %v4324_v24 = vpop.f32.mrb[10].mxu1  ;;  %5869 = vmatprep.subr.bf16.mxu0 %v4718_v33 }
 0x4e2   : > { %v4325_v3 = vadd.f32 %v4324_v24, %v10610_v40  ;;  %v4326_v31 = vpop.f32.mrb[11].mxu1  ;;  %5870 = vmatpush1.bf16.msra.mxu0 %v4717_v61  ;;  %v4603_v51 = vmax.f32 %v4321_v42, 0.0 }
 0x4e3   : > { %v4327_v19 = vadd.f32 %v4326_v31, %v10610_v40  ;;  %v4604_v60 = vmax.f32 %v4323_v5, 0.0 }
 0x4e4   : > { %v4605_v1 = vmax.f32 %v4325_v3, 0.0 }
 0x4e5   : > { %v4606_v28 = vmax.f32 %v4327_v19, 0.0 }
 0x4e6   : > { %v4719_v15 = vpack.c.bf16 %v4605_v1, %v4603_v51 }
 0x4e7   : > { %v4720_v23 = vpack.c.bf16 %v4606_v28, %v4604_v60  ;;  %v4330_v8 = vpop.f32.mrb[12].mxu1 }
 0x4e8   : > { %v4331_v46 = vadd.f32 %v4330_v8, %v10592_v59  ;;  %v4332_v32 = vpop.f32.mrb[13].mxu1 }
 0x4e9   : > { %v4333_v4 = vadd.f32 %v4332_v32, %v10592_v59  ;;  %v4334_v57 = vpop.f32.mrb[14].mxu1  ;;  %5871 = vmatprep.subr.bf16.mxu0 %v4720_v23 }
 0x4ea   : > { %v4335_v10 = vadd.f32 %v4334_v57, %v10626_v37  ;;  %v4336_v29 = vpop.f32.mrb[15].mxu1  ;;  %5872 = vmatpush1.bf16.msra.mxu0 %v4719_v15  ;;  %v4607_v21 = vmax.f32 %v4331_v46, 0.0 }
 0x4eb   : > { %v4337_v40 = vadd.f32 %v4336_v29, %v10626_v37  ;;  %v4608_v43 = vmax.f32 %v4333_v4, 0.0 }
 0x4ec   : > { %v4609_v58 = vmax.f32 %v4335_v10, 0.0 }
 0x4ed   : > { %v4610_v38 = vmax.f32 %v4337_v40, 0.0 }
 0x4ee   : > { %v4721_v11 = vpack.c.bf16 %v4609_v58, %v4607_v21 }
 0x4ef   : > { %v4722_v62 = vpack.c.bf16 %v4610_v38, %v4608_v43  ;;  %v4340_v6 = vpop.f32.mrb[16].mxu1 }
 0x4f0   : > { %v4341_v17 = vadd.f32 %v4340_v6, %v10602_v53  ;;  %v4342_v25 = vpop.f32.mrb[17].mxu1 }
 0x4f1   : > { %v4343_v59 = vadd.f32 %v4342_v25, %v10602_v53  ;;  %v4344_v56 = vpop.f32.mrb[18].mxu1  ;;  %5873 = vmatprep.subr.bf16.mxu0 %v4722_v62 }
 0x4f2   : > { %v4345_v7 = vadd.f32 %v4344_v56, %v10636_v54  ;;  %v4346_v50 = vpop.f32.mrb[19].mxu1  ;;  %5874 = vmatpush1.bf16.msra.mxu0 %v4721_v11  ;;  %v4611_v34 = vmax.f32 %v4341_v17, 0.0 }
 0x4f3   : > { %v4347_v37 = vadd.f32 %v4346_v50, %v10636_v54  ;;  %v4612_v63 = vmax.f32 %v4343_v59, 0.0 }
 0x4f4   : > { %v4613_v39 = vmax.f32 %v4345_v7, 0.0 }
 0x4f5   : > { %v4614_v36 = vmax.f32 %v4347_v37, 0.0 }
 0x4f6   : > { %v4723_v20 = vpack.c.bf16 %v4613_v39, %v4611_v34 }
 0x4f7   : > { %v4724_v47 = vpack.c.bf16 %v4614_v36, %v4612_v63  ;;  %v4350_v27 = vpop.f32.mrb[20].mxu1 }
 0x4f8   : > { %v4351_v48 = vadd.f32 %v4350_v27, %v10618_v41  ;;  %v4352_v49 = vpop.f32.mrb[21].mxu1 }
 0x4f9   : > { %v4353_v53 = vadd.f32 %v4352_v49, %v10618_v41  ;;  %v4354_v12 = vpop.f32.mrb[22].mxu1  ;;  %5875 = vmatprep.subr.bf16.mxu0 %v4724_v47 }
 0x4fa   : > { %v4355_v16 = vadd.f32 %v4354_v12, %v10652_v52  ;;  %v4356_v45 = vpop.f32.mrb[23].mxu1  ;;  %5876 = vmatpush1.bf16.msra.mxu0 %v4723_v20  ;;  %v4615_v61 = vmax.f32 %v4351_v48, 0.0 }
 0x4fb   : > { %v4357_v54 = vadd.f32 %v4356_v45, %v10652_v52  ;;  %v4616_v9 = vmax.f32 %v4353_v53, 0.0 }
 0x4fc   : > { %v4617_v33 = vmax.f32 %v4355_v16, 0.0 }
 0x4fd   : > { %v4618_v42 = vmax.f32 %v4357_v54, 0.0 }
 0x4fe   : > { %v4725_v0 = vpack.c.bf16 %v4617_v33, %v4615_v61 }
 0x4ff   : > { %v4726_v5 = vpack.c.bf16 %v4618_v42, %v4616_v9  ;;  %v4360_v24 = vpop.f32.mrb[24].mxu1 }
 0x500   : > { %v4361_v3 = vadd.f32 %v4360_v24, %v10628_v55  ;;  %v4362_v31 = vpop.f32.mrb[25].mxu1 }
 0x501   : > { %v4363_v41 = vadd.f32 %v4362_v31, %v10628_v55  ;;  %v4364_v19 = vpop.f32.mrb[26].mxu1  ;;  %5877 = vmatprep.subr.bf16.mxu0 %v4726_v5 }
 0x502   : > { %v4365_v51 = vadd.f32 %v4364_v19, %v10662_v13  ;;  %v4366_v1 = vpop.f32.mrb[27].mxu1  ;;  %5878 = vmatpush1.bf16.msra.mxu0 %v4725_v0  ;;  %v4619_v60 = vmax.f32 %v4361_v3, 0.0 }
 0x503   : > { %v4367_v52 = vadd.f32 %v4366_v1, %v10662_v13  ;;  %v4620_v15 = vmax.f32 %v4363_v41, 0.0 }
 0x504   : > { %v4621_v28 = vmax.f32 %v4365_v51, 0.0 }
 0x505   : > { %v4622_v23 = vmax.f32 %v4367_v52, 0.0  ;;  %v3867_v52 = vpop.permute.xlu0 %3866 }
 0x506   : > { %v4727_v8 = vpack.c.bf16 %v4621_v28, %v4619_v60 }
 0x507   : > { %v4728_v46 = vpack.c.bf16 %v4622_v23, %v4620_v15  ;;  %v4370_v32 = vpop.f32.mrb[28].mxu1 }
 0x508   : > { %v4371_v4 = vadd.f32 %v4370_v32, %v10644_v2  ;;  %v4372_v57 = vpop.f32.mrb[29].mxu1 }
 0x509   : > { %v4373_v55 = vadd.f32 %v4372_v57, %v10644_v2  ;;  %v4374_v10 = vpop.f32.mrb[30].mxu1  ;;  %5879 = vmatprep.subr.bf16.mxu0 %v4728_v46 }
 0x50a   : > { %v4375_v29 = vadd.f32 %v4374_v10, %v10678_v44  ;;  %v4376_v40 = vpop.f32.mrb[31].mxu1  ;;  %5880 = vmatpush1.bf16.msra.mxu0 %v4727_v8  ;;  %v4623_v21 = vmax.f32 %v4371_v4, 0.0  ;;  %v3872_v8 = vpop.permute.xlu1 %3871 }
 0x50b   : > { %v4377_v13 = vadd.f32 %v4376_v40, %v10678_v44  ;;  %v4624_v43 = vmax.f32 %v4373_v55, 0.0 }
 0x50c   : > { %v4625_v58 = vmax.f32 %v4375_v29, 0.0 }
 0x50d   : > { %v4626_v38 = vmax.f32 %v4377_v13, 0.0  ;;  %v3877_v13 = vpop.permute.xlu0 %3876 }
 0x50e   : > { %v4729_v11 = vpack.c.bf16 %v4625_v58, %v4623_v21 }
 0x50f   : > { %v4730_v62 = vpack.c.bf16 %v4626_v38, %v4624_v43  ;;  %v4380_v6 = vpop.f32.mrb[32].mxu1 }
 0x510   : > { %v4381_v17 = vadd.f32 %v4380_v6, %v10654_v22  ;;  %v4382_v25 = vpop.f32.mrb[33].mxu1 }
 0x511   : > { %v4383_v2 = vadd.f32 %v4382_v25, %v10654_v22  ;;  %v4384_v59 = vpop.f32.mrb[34].mxu1  ;;  %5881 = vmatprep.subr.bf16.mxu0 %v4730_v62 }
 0x512   : > { %v4385_v56 = vadd.f32 %v4384_v59, %v10685_v18  ;;  %v4386_v7 = vpop.f32.mrb[35].mxu1  ;;  %5882 = vmatpush1.bf16.msra.mxu0 %v4729_v11  ;;  %v4627_v50 = vmax.f32 %v4381_v17, 0.0  ;;  %v3882_v11 = vpop.permute.xlu1 %3881  ;;  %v8006_v17 = vld [vmem:[%s11353_s4] ss:$16 sps:$4 sm:$0xff]   ;;  %v8009_v59 = vld [vmem:[%s11353_s4 + $0x24] ss:$16 sps:$4 sm:$0xff]  }
 0x513   : > { %v4387_v44 = vadd.f32 %v4386_v7, %v10685_v18  ;;  %v4628_v34 = vmax.f32 %v4383_v2, 0.0 }
 0x514   : > { %v4629_v37 = vmax.f32 %v4385_v56, 0.0 }
 0x515   : > { %v4630_v39 = vmax.f32 %v4387_v44, 0.0 }
 0x516   : > { %v4731_v63 = vpack.c.bf16 %v4629_v37, %v4627_v50 }
 0x517   : > { %v4732_v36 = vpack.c.bf16 %v4630_v39, %v4628_v34  ;;  %v4390_v20 = vpop.f32.mrb[36].mxu1  ;;  %v3887_v39 = vpop.permute.xlu0 %3886 }
 0x518   : > { %v4391_v47 = vadd.f32 %v4390_v20, %v10670_v30  ;;  %v4392_v27 = vpop.f32.mrb[37].mxu1 }
 0x519   : > { %v4393_v22 = vadd.f32 %v4392_v27, %v10670_v30  ;;  %v4394_v48 = vpop.f32.mrb[38].mxu1  ;;  %5883 = vmatprep.subr.bf16.mxu0 %v4732_v36  ;;  %v3892_v27 = vpop.permute.xlu1 %3891 }
 0x51a   : > { %v4395_v49 = vadd.f32 %v4394_v48, %v10693_v35  ;;  %v4396_v53 = vpop.f32.mrb[39].mxu1  ;;  %5884 = vmatpush1.bf16.msra.mxu0 %v4731_v63  ;;  %v4631_v12 = vmax.f32 %v4391_v47, 0.0 }
 0x51b   : > { %v4397_v18 = vadd.f32 %v4396_v53, %v10693_v35  ;;  %v4632_v45 = vmax.f32 %v4393_v22, 0.0 }
 0x51c   : > { %v4633_v16 = vmax.f32 %v4395_v49, 0.0  ;;  %v8011_v49 = vld [vmem:[%s11353_s4 + $0x20] ss:$16 sps:$4 sm:$0xff]  }
 0x51d   : > { %v4634_v54 = vmax.f32 %v4397_v18, 0.0 }
 0x51e   : > { %v4733_v61 = vpack.c.bf16 %v4633_v16, %v4631_v12  ;;  %v8012_v12 = vld [vmem:[%s11353_s4 + $0x44] ss:$16 sps:$4 sm:$0xff]  }
 0x51f   : > { %v4734_v33 = vpack.c.bf16 %v4634_v54, %v4632_v45  ;;  %v4400_v9 = vpop.f32.mrb[40].mxu1 }
 0x520   : > { %v4401_v42 = vadd.f32 %v4400_v9, %v10680_v14  ;;  %v4402_v0 = vpop.f32.mrb[41].mxu1 }
 0x521   : > { %v4403_v30 = vadd.f32 %v4402_v0, %v10680_v14  ;;  %v4404_v5 = vpop.f32.mrb[42].mxu1  ;;  %5885 = vmatprep.subr.bf16.mxu0 %v4734_v33 }
 0x522   : > { %v4405_v24 = vadd.f32 %v4404_v5, %v10698_v26  ;;  %v4406_v3 = vpop.f32.mrb[43].mxu1  ;;  %5886 = vmatpush1.bf16.msra.mxu0 %v4733_v61  ;;  %v4635_v31 = vmax.f32 %v4401_v42, 0.0  ;;  %v3897_v42 = vpop.permute.xlu0 %3896 }
 0x523   : > { %v4407_v35 = vadd.f32 %v4406_v3, %v10698_v26  ;;  %v4636_v19 = vmax.f32 %v4403_v30, 0.0  ;;  %v3902_v3 = vpop.permute.xlu1 %3901 }
 0x524   : > { %v4637_v41 = vmax.f32 %v4405_v24, 0.0 }
 0x525   : > { %v4638_v51 = vmax.f32 %v4407_v35, 0.0 }
 0x526   : > { %v4735_v1 = vpack.c.bf16 %v4637_v41, %v4635_v31  ;;  %v8014_v41 = vld [vmem:[%s11353_s4 + $0x40] ss:$16 sps:$4 sm:$0xff]  }
 0x527   : > { %v4736_v60 = vpack.c.bf16 %v4638_v51, %v4636_v19  ;;  %v4410_v28 = vpop.f32.mrb[44].mxu1 }
 0x528   : > { %v4411_v15 = vadd.f32 %v4410_v28, %v3867_v52  ;;  %v4412_v23 = vpop.f32.mrb[45].mxu1 }
 0x529   : > { %v4413_v14 = vadd.f32 %v4412_v23, %v3867_v52  ;;  %v4414_v46 = vpop.f32.mrb[46].mxu1  ;;  %5887 = vmatprep.subr.bf16.mxu0 %v4736_v60 }
 0x52a   : > { %v4415_v32 = vadd.f32 %v4414_v46, %v3872_v8  ;;  %v4416_v4 = vpop.f32.mrb[47].mxu1  ;;  %5888 = vmatpush1.bf16.msra.mxu0 %v4735_v1  ;;  %v4639_v55 = vmax.f32 %v4411_v15, 0.0  ;;  %v8015_v1 = vld [vmem:[%s11353_s4 + $0x64] ss:$16 sps:$4 sm:$0xff]  }
 0x52b   : > { %v4417_v57 = vadd.f32 %v4416_v4, %v3872_v8  ;;  %v4640_v10 = vmax.f32 %v4413_v14, 0.0  ;;  %v3907_v14 = vpop.permute.xlu0 %3906 }
 0x52c   : > { %v4641_v26 = vmax.f32 %v4415_v32, 0.0 }
 0x52d   : > { %v4642_v29 = vmax.f32 %v4417_v57, 0.0 }
 0x52e   : > { %v4737_v40 = vpack.c.bf16 %v4641_v26, %v4639_v55  ;;  %v3912_v55 = vpop.permute.xlu1 %3911 }
 0x52f   : > { %v4738_v21 = vpack.c.bf16 %v4642_v29, %v4640_v10  ;;  %v4420_v58 = vpop.f32.mrb[48].mxu1  ;;  %v8017_v29 = vld [vmem:[%s11353_s4 + $0x60] ss:$16 sps:$4 sm:$0xff]  }
 0x530   : > { %v4421_v43 = vadd.f32 %v4420_v58, %v3877_v13  ;;  %v4422_v38 = vpop.f32.mrb[49].mxu1 }
 0x531   : > { %v4423_v62 = vadd.f32 %v4422_v38, %v3877_v13  ;;  %v4424_v6 = vpop.f32.mrb[50].mxu1  ;;  %5889 = vmatprep.subr.bf16.mxu0 %v4738_v21  ;;  %v8018_v21 = vld [vmem:[%s11353_s4 + $0x84] ss:$16 sps:$4 sm:$0xff]  }
 0x532   : > { %v4425_v25 = vadd.f32 %v4424_v6, %v3882_v11  ;;  %v4426_v2 = vpop.f32.mrb[51].mxu1  ;;  %5890 = vmatpush1.bf16.msra.mxu0 %v4737_v40  ;;  %v4643_v7 = vmax.f32 %v4421_v43, 0.0 }
 0x533   : > { %v4427_v56 = vadd.f32 %v4426_v2, %v3882_v11  ;;  %v4644_v50 = vmax.f32 %v4423_v62, 0.0 }
 0x534   : > { %v4645_v44 = vmax.f32 %v4425_v25, 0.0 }
 0x535   : > { %v4646_v37 = vmax.f32 %v4427_v56, 0.0  ;;  %5892 = vmatmul.mubr.bf16.vlgmr.msra.gmra.mrb[180].mxu0 %v8006_v17  ;;  %v3917_v17 = vpop.permute.xlu0 %3916 }
 0x536   : > { %v4739_v34 = vpack.c.bf16 %v4645_v44, %v4643_v7  ;;  %5901 = vmatprep.mubr.bf16.mxu0 %v8009_v59  ;;  %v3922_v7 = vpop.permute.xlu1 %3921 }
 0x537   : > { %v4740_v63 = vpack.c.bf16 %v4646_v37, %v4644_v50  ;;  %v4430_v36 = vpop.f32.mrb[52].mxu1  ;;  %v8020_v37 = vld [vmem:[%s11353_s4 + $0x80] ss:$16 sps:$4 sm:$0xff]  }
 0x538   : > { %v4431_v20 = vadd.f32 %v4430_v36, %v3887_v39  ;;  %v4432_v47 = vpop.f32.mrb[53].mxu1 }
 0x539   : > { %v4433_v22 = vadd.f32 %v4432_v47, %v3887_v39  ;;  %v4434_v48 = vpop.f32.mrb[54].mxu1  ;;  %6212 = vmatprep.subr.bf16.mxu0 %v4740_v63  ;;  %v8021_v63 = vld [vmem:[%s11353_s4 + $0xa4] ss:$16 sps:$4 sm:$0xff]  }
 0x53a   : > { %v4435_v53 = vadd.f32 %v4434_v48, %v3892_v27  ;;  %v4436_v18 = vpop.f32.mrb[55].mxu1  ;;  %6213 = vmatpush1.bf16.msra.mxu0 %v4739_v34  ;;  %v4647_v45 = vmax.f32 %v4431_v20, 0.0 }
 0x53b   : > { %v4437_v16 = vadd.f32 %v4436_v18, %v3892_v27  ;;  %v4648_v61 = vmax.f32 %v4433_v22, 0.0 }
 0x53c   : > { %v4649_v54 = vmax.f32 %v4435_v53, 0.0 }
 0x53d   : > { %v4650_v33 = vmax.f32 %v4437_v16, 0.0  ;;  %5902 = vmatmul.mubr.bf16.gmra.mrb[184].mxu0 %v8011_v49  ;;  %v3927_v49 = vpop.permute.xlu0 %3926 }
 0x53e   : > { %v4741_v9 = vpack.c.bf16 %v4649_v54, %v4647_v45  ;;  %5911 = vmatprep.mubr.bf16.mxu0 %v8012_v12  ;;  %v3932_v45 = vpop.permute.xlu1 %3931 }
 0x53f   : > { %v4742_v0 = vpack.c.bf16 %v4650_v33, %v4648_v61  ;;  %v4440_v30 = vpop.f32.mrb[56].mxu1  ;;  %v8023_v33 = vld [vmem:[%s11353_s4 + $0xa0] ss:$16 sps:$4 sm:$0xff]  }
 0x540   : > { %v4441_v5 = vadd.f32 %v4440_v30, %v3897_v42  ;;  %v4442_v24 = vpop.f32.mrb[57].mxu1 }
 0x541   : > { %v4443_v35 = vadd.f32 %v4442_v24, %v3897_v42  ;;  %v4444_v31 = vpop.f32.mrb[58].mxu1  ;;  %6214 = vmatprep.subr.bf16.mxu0 %v4742_v0  ;;  %v8024_v0 = vld [vmem:[%s11353_s4 + $0xc4] ss:$16 sps:$4 sm:$0xff]  }
 0x542   : > { %v4445_v19 = vadd.f32 %v4444_v31, %v3902_v3  ;;  %v4446_v51 = vpop.f32.mrb[59].mxu1  ;;  %6215 = vmatpush1.bf16.msra.mxu0 %v4741_v9  ;;  %v4651_v60 = vmax.f32 %v4441_v5, 0.0 }
 0x543   : > { %v4447_v52 = vadd.f32 %v4446_v51, %v3902_v3  ;;  %v4652_v15 = vmax.f32 %v4443_v35, 0.0 }
 0x544   : > { %v4653_v28 = vmax.f32 %v4445_v19, 0.0 }
 0x545   : > { %v4654_v23 = vmax.f32 %v4447_v52, 0.0  ;;  %5912 = vmatmul.mubr.bf16.gmra.mrb[188].mxu0 %v8014_v41  ;;  %v3937_v41 = vpop.permute.xlu0 %3936 }
 0x546   : > { %v4743_v8 = vpack.c.bf16 %v4653_v28, %v4651_v60  ;;  %5921 = vmatprep.mubr.bf16.mxu0 %v8015_v1  ;;  %v3942_v60 = vpop.permute.xlu1 %3941 }
 0x547   : > { %v4744_v46 = vpack.c.bf16 %v4654_v23, %v4652_v15  ;;  %v4450_v32 = vpop.f32.mrb[60].mxu1  ;;  %v8026_v23 = vld [vmem:[%s11353_s4 + $0xc0] ss:$16 sps:$4 sm:$0xff]  }
 0x548   : > { %v4451_v4 = vadd.f32 %v4450_v32, %v3907_v14  ;;  %v4452_v57 = vpop.f32.mrb[61].mxu1 }
 0x549   : > { %v4453_v26 = vadd.f32 %v4452_v57, %v3907_v14  ;;  %v4454_v10 = vpop.f32.mrb[62].mxu1  ;;  %6216 = vmatprep.subr.bf16.mxu0 %v4744_v46  ;;  %v8027_v46 = vld [vmem:[%s11353_s4 + $0xe4] ss:$16 sps:$4 sm:$0xff]  }
 0x54a   : > { %v4455_v40 = vadd.f32 %v4454_v10, %v3912_v55  ;;  %v4456_v13 = vpop.f32.mrb[63].mxu1  ;;  %6217 = vmatpush1.bf16.msra.mxu0 %v4743_v8  ;;  %v4655_v43 = vmax.f32 %v4451_v4, 0.0 }
 0x54b   : > { %v4457_v58 = vadd.f32 %v4456_v13, %v3912_v55  ;;  %v4656_v11 = vmax.f32 %v4453_v26, 0.0 }
 0x54c   : > { %v4657_v38 = vmax.f32 %v4455_v40, 0.0 }
 0x54d   : > { %v4658_v62 = vmax.f32 %v4457_v58, 0.0  ;;  %5922 = vmatmul.mubr.bf16.gmra.mrb[192].mxu0 %v8017_v29  ;;  %v3947_v29 = vpop.permute.xlu0 %3946 }
 0x54e   : > { %v4745_v6 = vpack.c.bf16 %v4657_v38, %v4655_v43  ;;  %5931 = vmatprep.mubr.bf16.mxu0 %v8018_v21  ;;  %v3952_v43 = vpop.permute.xlu1 %3951 }
 0x54f   : > { %v4746_v25 = vpack.c.bf16 %v4658_v62, %v4656_v11  ;;  %v4460_v2 = vpop.f32.mrb[64].mxu1  ;;  %v8029_v62 = vld [vmem:[%s11353_s4 + $0xe0] ss:$16 sps:$4 sm:$0xff]  }
 0x550   : > { %v4461_v59 = vadd.f32 %v4460_v2, %v3917_v17  ;;  %v4462_v56 = vpop.f32.mrb[65].mxu1 }
 0x551   : > { %v4463_v44 = vadd.f32 %v4462_v56, %v3917_v17  ;;  %v4464_v50 = vpop.f32.mrb[66].mxu1  ;;  %6218 = vmatprep.subr.bf16.mxu0 %v4746_v25  ;;  %v8030_v25 = vld [vmem:[%s11353_s4 + $0x104] ss:$16 sps:$4 sm:$0xff]  }
 0x552   : > { %v4465_v34 = vadd.f32 %v4464_v50, %v3922_v7  ;;  %v4466_v39 = vpop.f32.mrb[67].mxu1  ;;  %6219 = vmatpush1.bf16.msra.mxu0 %v4745_v6  ;;  %v4659_v20 = vmax.f32 %v4461_v59, 0.0 }
 0x553   : > { %v4467_v36 = vadd.f32 %v4466_v39, %v3922_v7  ;;  %v4660_v27 = vmax.f32 %v4463_v44, 0.0 }
 0x554   : > { %v4661_v47 = vmax.f32 %v4465_v34, 0.0 }
 0x555   : > { %v4662_v22 = vmax.f32 %v4467_v36, 0.0  ;;  %5932 = vmatmul.mubr.bf16.gmra.mrb[196].mxu0 %v8020_v37  ;;  %v3957_v37 = vpop.permute.xlu0 %3956 }
 0x556   : > { %v4747_v48 = vpack.c.bf16 %v4661_v47, %v4659_v20  ;;  %5941 = vmatprep.mubr.bf16.mxu0 %v8021_v63  ;;  %v3962_v20 = vpop.permute.xlu1 %3961 }
 0x557   : > { %v4748_v53 = vpack.c.bf16 %v4662_v22, %v4660_v27  ;;  %v4470_v18 = vpop.f32.mrb[68].mxu1  ;;  %v8032_v22 = vld [vmem:[%s11353_s4 + $0x100] ss:$16 sps:$4 sm:$0xff]  }
 0x558   : > { %v4471_v12 = vadd.f32 %v4470_v18, %v3927_v49  ;;  %v4472_v16 = vpop.f32.mrb[69].mxu1 }
 0x559   : > { %v4473_v54 = vadd.f32 %v4472_v16, %v3927_v49  ;;  %v4474_v61 = vpop.f32.mrb[70].mxu1  ;;  %6220 = vmatprep.subr.bf16.mxu0 %v4748_v53  ;;  %v8033_v53 = vld [vmem:[%s11353_s4 + $0x124] ss:$16 sps:$4 sm:$0xff]  }
 0x55a   : > { %v4475_v9 = vadd.f32 %v4474_v61, %v3932_v45  ;;  %v4476_v42 = vpop.f32.mrb[71].mxu1  ;;  %6221 = vmatpush1.bf16.msra.mxu0 %v4747_v48  ;;  %v4663_v5 = vmax.f32 %v4471_v12, 0.0 }
 0x55b   : > { %v4477_v30 = vadd.f32 %v4476_v42, %v3932_v45  ;;  %v4664_v3 = vmax.f32 %v4473_v54, 0.0 }
 0x55c   : > { %v4665_v24 = vmax.f32 %v4475_v9, 0.0 }
 0x55d   : > { %v4666_v35 = vmax.f32 %v4477_v30, 0.0  ;;  %5942 = vmatmul.mubr.bf16.gmra.mrb[200].mxu0 %v8023_v33  ;;  %v3967_v33 = vpop.permute.xlu0 %3966 }
 0x55e   : > { %v4749_v31 = vpack.c.bf16 %v4665_v24, %v4663_v5  ;;  %5951 = vmatprep.mubr.bf16.mxu0 %v8024_v0  ;;  %v3972_v5 = vpop.permute.xlu1 %3971 }
 0x55f   : > { %v4750_v19 = vpack.c.bf16 %v4666_v35, %v4664_v3  ;;  %v4480_v51 = vpop.f32.mrb[72].mxu1  ;;  %v8035_v35 = vld [vmem:[%s11353_s4 + $0x120] ss:$16 sps:$4 sm:$0xff]  }
 0x560   : > { %v4481_v1 = vadd.f32 %v4480_v51, %v3937_v41  ;;  %v4482_v52 = vpop.f32.mrb[73].mxu1 }
 0x561   : > { %v4483_v28 = vadd.f32 %v4482_v52, %v3937_v41  ;;  %v4484_v15 = vpop.f32.mrb[74].mxu1  ;;  %6222 = vmatprep.subr.bf16.mxu0 %v4750_v19  ;;  %v8036_v19 = vld [vmem:[%s11353_s4 + $0x144] ss:$16 sps:$4 sm:$0xff]  }
 0x562   : > { %v4485_v8 = vadd.f32 %v4484_v15, %v3942_v60  ;;  %v4486_v14 = vpop.f32.mrb[75].mxu1  ;;  %6223 = vmatpush1.bf16.msra.mxu0 %v4749_v31  ;;  %v4667_v4 = vmax.f32 %v4481_v1, 0.0 }
 0x563   : > { %v4487_v32 = vadd.f32 %v4486_v14, %v3942_v60  ;;  %v4668_v55 = vmax.f32 %v4483_v28, 0.0 }
 0x564   : > { %v4669_v57 = vmax.f32 %v4485_v8, 0.0 }
 0x565   : > { %v4670_v26 = vmax.f32 %v4487_v32, 0.0  ;;  %5952 = vmatmul.mubr.bf16.gmra.mrb[204].mxu0 %v8026_v23  ;;  %v3977_v23 = vpop.permute.xlu0 %3976 }
 0x566   : > { %v4751_v10 = vpack.c.bf16 %v4669_v57, %v4667_v4  ;;  %5961 = vmatprep.mubr.bf16.mxu0 %v8027_v46  ;;  %v3982_v4 = vpop.permute.xlu1 %3981 }
 0x567   : > { %v4752_v40 = vpack.c.bf16 %v4670_v26, %v4668_v55  ;;  %v4490_v13 = vpop.f32.mrb[76].mxu1  ;;  %v8038_v26 = vld [vmem:[%s11353_s4 + $0x140] ss:$16 sps:$4 sm:$0xff]  }
 0x568   : > { %v4491_v21 = vadd.f32 %v4490_v13, %v3947_v29  ;;  %v4492_v58 = vpop.f32.mrb[77].mxu1 }
 0x569   : > { %v4493_v38 = vadd.f32 %v4492_v58, %v3947_v29  ;;  %v4494_v11 = vpop.f32.mrb[78].mxu1  ;;  %6224 = vmatprep.subr.bf16.mxu0 %v4752_v40  ;;  %v8039_v40 = vld [vmem:[%s11353_s4 + $0x164] ss:$16 sps:$4 sm:$0xff]  }
 0x56a   : > { %v4495_v6 = vadd.f32 %v4494_v11, %v3952_v43  ;;  %v4496_v17 = vpop.f32.mrb[79].mxu1  ;;  %6225 = vmatpush1.bf16.msra.mxu0 %v4751_v10  ;;  %v4671_v59 = vmax.f32 %v4491_v21, 0.0 }
 0x56b   : > { %v4497_v2 = vadd.f32 %v4496_v17, %v3952_v43  ;;  %v4672_v7 = vmax.f32 %v4493_v38, 0.0 }
 0x56c   : > { %v4673_v56 = vmax.f32 %v4495_v6, 0.0 }
 0x56d   : > { %v4674_v44 = vmax.f32 %v4497_v2, 0.0  ;;  %5962 = vmatmul.mubr.bf16.gmra.mrb[208].mxu0 %v8029_v62  ;;  %v3987_v62 = vpop.permute.xlu0 %3986 }
 0x56e   : > { %v4753_v50 = vpack.c.bf16 %v4673_v56, %v4671_v59  ;;  %5971 = vmatprep.mubr.bf16.mxu0 %v8030_v25  ;;  %v3992_v59 = vpop.permute.xlu1 %3991 }
 0x56f   : > { %v4754_v34 = vpack.c.bf16 %v4674_v44, %v4672_v7  ;;  %v4500_v39 = vpop.f32.mrb[80].mxu1  ;;  %v8041_v44 = vld [vmem:[%s11353_s4 + $0x160] ss:$16 sps:$4 sm:$0xff]  }
 0x570   : > { %v4501_v63 = vadd.f32 %v4500_v39, %v3957_v37  ;;  %v4502_v36 = vpop.f32.mrb[81].mxu1 }
 0x571   : > { %v4503_v47 = vadd.f32 %v4502_v36, %v3957_v37  ;;  %v4504_v27 = vpop.f32.mrb[82].mxu1  ;;  %6226 = vmatprep.subr.bf16.mxu0 %v4754_v34  ;;  %v8042_v34 = vld [vmem:[%s11353_s4 + $0x184] ss:$16 sps:$4 sm:$0xff]  }
 0x572   : > { %v4505_v48 = vadd.f32 %v4504_v27, %v3962_v20  ;;  %v4506_v49 = vpop.f32.mrb[83].mxu1  ;;  %6227 = vmatpush1.bf16.msra.mxu0 %v4753_v50  ;;  %v4675_v12 = vmax.f32 %v4501_v63, 0.0 }
 0x573   : > { %v4507_v18 = vadd.f32 %v4506_v49, %v3962_v20  ;;  %v4676_v45 = vmax.f32 %v4503_v47, 0.0 }
 0x574   : > { %v4677_v16 = vmax.f32 %v4505_v48, 0.0 }
 0x575   : > { %v4678_v54 = vmax.f32 %v4507_v18, 0.0  ;;  %5972 = vmatmul.mubr.bf16.gmra.mrb[212].mxu0 %v8032_v22  ;;  %v3997_v22 = vpop.permute.xlu0 %3996 }
 0x576   : > { %v4755_v61 = vpack.c.bf16 %v4677_v16, %v4675_v12  ;;  %5981 = vmatprep.mubr.bf16.mxu0 %v8033_v53  ;;  %v4002_v12 = vpop.permute.xlu1 %4001 }
 0x577   : > { %v4756_v9 = vpack.c.bf16 %v4678_v54, %v4676_v45  ;;  %v4510_v42 = vpop.f32.mrb[84].mxu1  ;;  %v8044_v54 = vld [vmem:[%s11353_s4 + $0x180] ss:$16 sps:$4 sm:$0xff]  }
 0x578   : > { %v4511_v0 = vadd.f32 %v4510_v42, %v3967_v33  ;;  %v4512_v30 = vpop.f32.mrb[85].mxu1 }
 0x579   : > { %v4513_v24 = vadd.f32 %v4512_v30, %v3967_v33  ;;  %v4514_v3 = vpop.f32.mrb[86].mxu1  ;;  %6228 = vmatprep.subr.bf16.mxu0 %v4756_v9  ;;  %v8045_v9 = vld [vmem:[%s11353_s4 + $0x1a4] ss:$16 sps:$4 sm:$0xff]  }
 0x57a   : > { %v4515_v31 = vadd.f32 %v4514_v3, %v3972_v5  ;;  %v4516_v41 = vpop.f32.mrb[87].mxu1  ;;  %6229 = vmatpush1.bf16.msra.mxu0 %v4755_v61  ;;  %v4679_v1 = vmax.f32 %v4511_v0, 0.0 }
 0x57b   : > { %v4517_v51 = vadd.f32 %v4516_v41, %v3972_v5  ;;  %v4680_v60 = vmax.f32 %v4513_v24, 0.0 }
 0x57c   : > { %v4681_v52 = vmax.f32 %v4515_v31, 0.0 }
 0x57d   : > { %v4682_v28 = vmax.f32 %v4517_v51, 0.0  ;;  %5982 = vmatmul.mubr.bf16.gmra.mrb[216].mxu0 %v8035_v35  ;;  %v4007_v35 = vpop.permute.xlu0 %4006 }
 0x57e   : > { %v4757_v15 = vpack.c.bf16 %v4681_v52, %v4679_v1  ;;  %5991 = vmatprep.mubr.bf16.mxu0 %v8036_v19  ;;  %v4012_v1 = vpop.permute.xlu1 %4011 }
 0x57f   : > { %v4758_v8 = vpack.c.bf16 %v4682_v28, %v4680_v60  ;;  %v4520_v14 = vpop.f32.mrb[88].mxu1  ;;  %v8047_v28 = vld [vmem:[%s11353_s4 + $0x1a0] ss:$16 sps:$4 sm:$0xff]  }
 0x580   : > { %v4521_v46 = vadd.f32 %v4520_v14, %v3977_v23  ;;  %v4522_v32 = vpop.f32.mrb[89].mxu1 }
 0x581   : > { %v4523_v57 = vadd.f32 %v4522_v32, %v3977_v23  ;;  %v4524_v55 = vpop.f32.mrb[90].mxu1  ;;  %6230 = vmatprep.subr.bf16.mxu0 %v4758_v8  ;;  %v8048_v8 = vld [vmem:[%s11353_s4 + $0x1c4] ss:$16 sps:$4 sm:$0xff]  }
 0x582   : > { %v4525_v10 = vadd.f32 %v4524_v55, %v3982_v4  ;;  %v4526_v29 = vpop.f32.mrb[91].mxu1  ;;  %6231 = vmatpush1.bf16.msra.mxu0 %v4757_v15  ;;  %v4683_v21 = vmax.f32 %v4521_v46, 0.0 }
 0x583   : > { %v4527_v13 = vadd.f32 %v4526_v29, %v3982_v4  ;;  %v4684_v43 = vmax.f32 %v4523_v57, 0.0 }
 0x584   : > { %v4685_v58 = vmax.f32 %v4525_v10, 0.0 }
 0x585   : > { %v4686_v38 = vmax.f32 %v4527_v13, 0.0  ;;  %5992 = vmatmul.mubr.bf16.gmra.mrb[220].mxu0 %v8038_v26  ;;  %v4017_v26 = vpop.permute.xlu0 %4016 }
 0x586   : > { %v4759_v11 = vpack.c.bf16 %v4685_v58, %v4683_v21  ;;  %6001 = vmatprep.mubr.bf16.mxu0 %v8039_v40  ;;  %v4022_v21 = vpop.permute.xlu1 %4021 }
 0x587   : > { %v4760_v6 = vpack.c.bf16 %v4686_v38, %v4684_v43  ;;  %v4530_v17 = vpop.f32.mrb[92].mxu1  ;;  %v8050_v38 = vld [vmem:[%s11353_s4 + $0x1c0] ss:$16 sps:$4 sm:$0xff]  }
 0x588   : > { %v4531_v25 = vadd.f32 %v4530_v17, %v3987_v62  ;;  %v4532_v2 = vpop.f32.mrb[93].mxu1 }
 0x589   : > { %v4533_v56 = vadd.f32 %v4532_v2, %v3987_v62  ;;  %v4534_v7 = vpop.f32.mrb[94].mxu1  ;;  %6232 = vmatprep.subr.bf16.mxu0 %v4760_v6  ;;  %v8051_v6 = vld [vmem:[%s11353_s4 + $0x1e4] ss:$16 sps:$4 sm:$0xff]  }
 0x58a   : > { %v4535_v50 = vadd.f32 %v4534_v7, %v3992_v59  ;;  %v4536_v37 = vpop.f32.mrb[95].mxu1  ;;  %6233 = vmatpush1.bf16.msra.mxu0 %v4759_v11  ;;  %v4687_v63 = vmax.f32 %v4531_v25, 0.0 }
 0x58b   : > { %v4537_v39 = vadd.f32 %v4536_v37, %v3992_v59  ;;  %v4688_v20 = vmax.f32 %v4533_v56, 0.0 }
 0x58c   : > { %v4689_v36 = vmax.f32 %v4535_v50, 0.0 }
 0x58d   : > { %v4690_v47 = vmax.f32 %v4537_v39, 0.0  ;;  %6002 = vmatmul.mubr.bf16.gmra.mrb[224].mxu0 %v8041_v44  ;;  %v4027_v44 = vpop.permute.xlu0 %4026 }
 0x58e   : > { %v4761_v27 = vpack.c.bf16 %v4689_v36, %v4687_v63  ;;  %6011 = vmatprep.mubr.bf16.mxu0 %v8042_v34  ;;  %v4032_v63 = vpop.permute.xlu1 %4031 }
 0x58f   : > { %v4762_v48 = vpack.c.bf16 %v4690_v47, %v4688_v20  ;;  %v4540_v49 = vpop.f32.mrb[96].mxu1  ;;  %v8053_v47 = vld [vmem:[%s11353_s4 + $0x1e0] ss:$16 sps:$4 sm:$0xff]  }
 0x590   : > { %v4541_v53 = vadd.f32 %v4540_v49, %v3997_v22  ;;  %v4542_v18 = vpop.f32.mrb[97].mxu1 }
 0x591   : > { %v4543_v16 = vadd.f32 %v4542_v18, %v3997_v22  ;;  %v4544_v45 = vpop.f32.mrb[98].mxu1  ;;  %6234 = vmatprep.subr.bf16.mxu0 %v4762_v48  ;;  %v8054_v48 = vld [vmem:[%s11353_s4 + $0x204] ss:$16 sps:$4 sm:$0xff]  }
 0x592   : > { %v4545_v61 = vadd.f32 %v4544_v45, %v4002_v12  ;;  %v4546_v33 = vpop.f32.mrb[99].mxu1  ;;  %6235 = vmatpush1.bf16.msra.mxu0 %v4761_v27  ;;  %v4691_v0 = vmax.f32 %v4541_v53, 0.0 }
 0x593   : > { %v4547_v42 = vadd.f32 %v4546_v33, %v4002_v12  ;;  %v4692_v5 = vmax.f32 %v4543_v16, 0.0  ;;  %v8057_v33 = vld [vmem:[%s11353_s4 + $0x224] ss:$16 sps:$4 sm:$0xff]  }
 0x594   : > { %v4693_v30 = vmax.f32 %v4545_v61, 0.0  ;;  %v8056_v61 = vld [vmem:[%s11353_s4 + $0x200] ss:$16 sps:$4 sm:$0xff]  }
 0x595   : > { %v4694_v24 = vmax.f32 %v4547_v42, 0.0  ;;  %6012 = vmatmul.mubr.bf16.gmra.mrb[228].mxu0 %v8044_v54  ;;  %v8060_v42 = vld [vmem:[%s11353_s4 + $0x244] ss:$16 sps:$4 sm:$0xff]  }
 0x596   : > { %v4763_v3 = vpack.c.bf16 %v4693_v30, %v4691_v0  ;;  %6021 = vmatprep.mubr.bf16.mxu0 %v8045_v9  ;;  %v8059_v9 = vld [vmem:[%s11353_s4 + $0x220] ss:$16 sps:$4 sm:$0xff]   ;;  %v8065_v30 = vld [vmem:[%s11353_s4 + $0x264] ss:$16 sps:$4 sm:$0xff]  }
 0x597   : > { %v4764_v31 = vpack.c.bf16 %v4694_v24, %v4692_v5  ;;  %v4550_v41 = vpop.f32.mrb[100].mxu1  ;;  %v8062_v0 = vld [vmem:[%s11353_s4 + $0x240] ss:$16 sps:$4 sm:$0xff]   ;;  %v8068_v24 = vld [vmem:[%s11353_s4 + $0x284] ss:$16 sps:$4 sm:$0xff]  }
 0x598   : > { %v4551_v19 = vadd.f32 %v4550_v41, %v4007_v35  ;;  %v4552_v51 = vpop.f32.mrb[101].mxu1  ;;  %v8063_v5 = vld [vmem:[%s11353_s4 + $0x260] ss:$16 sps:$4 sm:$0xff]   ;;  %v8074_v41 = vld [vmem:[%s11353_s4 + $0x2c4] ss:$16 sps:$4 sm:$0xff]  }
 0x599   : > { %v4553_v52 = vadd.f32 %v4552_v51, %v4007_v35  ;;  %v4554_v60 = vpop.f32.mrb[102].mxu1  ;;  %6236 = vmatprep.subr.bf16.mxu0 %v4764_v31  ;;  %v8071_v35 = vld [vmem:[%s11353_s4 + $0x2a4] ss:$16 sps:$4 sm:$0xff]   ;;  %v8069_v31 = vld [vmem:[%s11353_s4 + $0x2a0] ss:$16 sps:$4 sm:$0xff]  }
 0x59a   : > { %v4555_v15 = vadd.f32 %v4554_v60, %v4012_v1  ;;  %v4556_v23 = vpop.f32.mrb[103].mxu1  ;;  %6237 = vmatpush1.bf16.msra.mxu0 %v4763_v3  ;;  %v4695_v46 = vmax.f32 %v4551_v19, 0.0  ;;  %v8066_v3 = vld [vmem:[%s11353_s4 + $0x280] ss:$16 sps:$4 sm:$0xff]   ;;  %v8077_v51 = vld [vmem:[%s11353_s4 + $0x2e4] ss:$16 sps:$4 sm:$0xff]  }
 0x59b   : > { %v4557_v14 = vadd.f32 %v4556_v23, %v4012_v1  ;;  %v4696_v4 = vmax.f32 %v4553_v52, 0.0  ;;  %v8072_v19 = vld [vmem:[%s11353_s4 + $0x2c0] ss:$16 sps:$4 sm:$0xff]   ;;  %v8080_v52 = vld [vmem:[%s11353_s4 + $0x304] ss:$16 sps:$4 sm:$0xff]  }
 0x59c   : > { %v4697_v32 = vmax.f32 %v4555_v15, 0.0  ;;  %v8075_v1 = vld [vmem:[%s11353_s4 + $0x2e0] ss:$16 sps:$4 sm:$0xff]   ;;  %v8086_v23 = vld [vmem:[%s11353_s4 + $0x344] ss:$16 sps:$4 sm:$0xff]  }
 0x59d   : > { %v4698_v57 = vmax.f32 %v4557_v14, 0.0  ;;  %6022 = vmatmul.mubr.bf16.gmra.mrb[232].mxu0 %v8047_v28  ;;  %v8078_v60 = vld [vmem:[%s11353_s4 + $0x300] ss:$16 sps:$4 sm:$0xff]   ;;  %v8083_v28 = vld [vmem:[%s11353_s4 + $0x324] ss:$16 sps:$4 sm:$0xff]  }
 0x59e   : > { %v4765_v55 = vpack.c.bf16 %v4697_v32, %v4695_v46  ;;  %6031 = vmatprep.mubr.bf16.mxu0 %v8048_v8  ;;  %v8081_v15 = vld [vmem:[%s11353_s4 + $0x320] ss:$16 sps:$4 sm:$0xff]   ;;  %v8089_v14 = vld [vmem:[%s11353_s4 + $0x364] ss:$16 sps:$4 sm:$0xff]  }
 0x59f   : > { %v4766_v10 = vpack.c.bf16 %v4698_v57, %v4696_v4  ;;  %v4560_v29 = vpop.f32.mrb[104].mxu1  ;;  %v8084_v8 = vld [vmem:[%s11353_s4 + $0x340] ss:$16 sps:$4 sm:$0xff]   ;;  %v8092_v32 = vld [vmem:[%s11353_s4 + $0x384] ss:$16 sps:$4 sm:$0xff]  }
 0x5a0   : > { %v4561_v40 = vadd.f32 %v4560_v29, %v4017_v26  ;;  %v4562_v13 = vpop.f32.mrb[105].mxu1  ;;  %v8087_v46 = vld [vmem:[%s11353_s4 + $0x360] ss:$16 sps:$4 sm:$0xff]   ;;  %v8095_v57 = vld [vmem:[%s11353_s4 + $0x3a4] ss:$16 sps:$4 sm:$0xff]  }
 0x5a1   : > { %v4563_v58 = vadd.f32 %v4562_v13, %v4017_v26  ;;  %v4564_v43 = vpop.f32.mrb[106].mxu1  ;;  %6238 = vmatprep.subr.bf16.mxu0 %v4766_v10  ;;  %v8090_v4 = vld [vmem:[%s11353_s4 + $0x380] ss:$16 sps:$4 sm:$0xff]   ;;  %v8098_v26 = vld [vmem:[%s11353_s4 + $0x3c4] ss:$16 sps:$4 sm:$0xff]  }
 0x5a2   : > { %v4565_v11 = vadd.f32 %v4564_v43, %v4022_v21  ;;  %v4566_v62 = vpop.f32.mrb[107].mxu1  ;;  %6239 = vmatpush1.bf16.msra.mxu0 %v4765_v55  ;;  %v4699_v25 = vmax.f32 %v4561_v40, 0.0  ;;  %v8093_v55 = vld [vmem:[%s11353_s4 + $0x3a0] ss:$16 sps:$4 sm:$0xff]   ;;  %v8101_v29 = vld [vmem:[%s11353_s4 + $0x3e4] ss:$16 sps:$4 sm:$0xff]  }
 0x5a3   : > { %v4567_v17 = vadd.f32 %v4566_v62, %v4022_v21  ;;  %v4700_v59 = vmax.f32 %v4563_v58, 0.0  ;;  %v8096_v10 = vld [vmem:[%s11353_s4 + $0x3c0] ss:$16 sps:$4 sm:$0xff]   ;;  %v8104_v13 = vld [vmem:[%s11353_s4 + $0xc] ss:$16 sps:$4 sm:$0xff]  }
 0x5a4   : > { %v4701_v2 = vmax.f32 %v4565_v11, 0.0  ;;  %v8099_v40 = vld [vmem:[%s11353_s4 + $0x3e0] ss:$16 sps:$4 sm:$0xff]   ;;  %v8102_v21 = vld [vmem:[%s11353_s4 + $0x8] ss:$16 sps:$4 sm:$0xff]  }
 0x5a5   : > { %v4702_v56 = vmax.f32 %v4567_v17, 0.0  ;;  %6032 = vmatmul.mubr.bf16.gmra.mrb[236].mxu0 %v8050_v38  ;;  %v8105_v58 = vld [vmem:[%s11353_s4 + $0x2c] ss:$16 sps:$4 sm:$0xff]   ;;  %v8107_v43 = vld [vmem:[%s11353_s4 + $0x28] ss:$16 sps:$4 sm:$0xff]  }
 0x5a6   : > { %v4767_v7 = vpack.c.bf16 %v4701_v2, %v4699_v25  ;;  %6041 = vmatprep.mubr.bf16.mxu0 %v8051_v6  ;;  %v8108_v38 = vld [vmem:[%s11353_s4 + $0x4c] ss:$16 sps:$4 sm:$0xff]   ;;  %v8110_v11 = vld [vmem:[%s11353_s4 + $0x48] ss:$16 sps:$4 sm:$0xff]  }
 0x5a7   : > { %v4768_v50 = vpack.c.bf16 %v4702_v56, %v4700_v59  ;;  %v4570_v37 = vpop.f32.mrb[108].mxu1  ;;  %v8111_v62 = vld [vmem:[%s11353_s4 + $0x6c] ss:$16 sps:$4 sm:$0xff]   ;;  %v8113_v6 = vld [vmem:[%s11353_s4 + $0x68] ss:$16 sps:$4 sm:$0xff]  }
 0x5a8   : > { %v4571_v34 = vadd.f32 %v4570_v37, %v4027_v44  ;;  %v4572_v39 = vpop.f32.mrb[109].mxu1  ;;  %v8114_v17 = vld [vmem:[%s11353_s4 + $0x8c] ss:$16 sps:$4 sm:$0xff]   ;;  %v8116_v25 = vld [vmem:[%s11353_s4 + $0x88] ss:$16 sps:$4 sm:$0xff]  }
 0x5a9   : > { %v4573_v36 = vadd.f32 %v4572_v39, %v4027_v44  ;;  %v4574_v20 = vpop.f32.mrb[110].mxu1  ;;  %6240 = vmatprep.subr.bf16.mxu0 %v4768_v50  ;;  %v8117_v2 = vld [vmem:[%s11353_s4 + $0xac] ss:$16 sps:$4 sm:$0xff]   ;;  %v8119_v59 = vld [vmem:[%s11353_s4 + $0xa8] ss:$16 sps:$4 sm:$0xff]  }
 0x5aa   : > { %v4575_v27 = vadd.f32 %v4574_v20, %v4032_v63  ;;  %v4576_v22 = vpop.f32.mrb[111].mxu1  ;;  %6241 = vmatpush1.bf16.msra.mxu0 %v4767_v7  ;;  %v4703_v53 = vmax.f32 %v4571_v34, 0.0  ;;  %v8120_v56 = vld [vmem:[%s11353_s4 + $0xcc] ss:$16 sps:$4 sm:$0xff]   ;;  %v8122_v7 = vld [vmem:[%s11353_s4 + $0xc8] ss:$16 sps:$4 sm:$0xff]  }
 0x5ab   : > { %v4577_v49 = vadd.f32 %v4576_v22, %v4032_v63  ;;  %v4704_v12 = vmax.f32 %v4573_v36, 0.0  ;;  %v8123_v44 = vld [vmem:[%s11353_s4 + $0xec] ss:$16 sps:$4 sm:$0xff]   ;;  %v8125_v50 = vld [vmem:[%s11353_s4 + $0xe8] ss:$16 sps:$4 sm:$0xff]  }
 0x5ac   : > { %v4705_v18 = vmax.f32 %v4575_v27, 0.0  ;;  %v8126_v37 = vld [vmem:[%s11353_s4 + $0x10c] ss:$16 sps:$4 sm:$0xff]   ;;  %v8128_v34 = vld [vmem:[%s11353_s4 + $0x108] ss:$16 sps:$4 sm:$0xff]  }
 0x5ad   : > { %v4706_v16 = vmax.f32 %v4577_v49, 0.0  ;;  %6042 = vmatmul.mubr.bf16.gmra.mrb[240].mxu0 %v8053_v47  ;;  %v8129_v39 = vld [vmem:[%s11353_s4 + $0x12c] ss:$16 sps:$4 sm:$0xff]   ;;  %v8131_v63 = vld [vmem:[%s11353_s4 + $0x128] ss:$16 sps:$4 sm:$0xff]  }
 0x5ae   : > { %v4769_v45 = vpack.c.bf16 %v4705_v18, %v4703_v53  ;;  %6051 = vmatprep.mubr.bf16.mxu0 %v8054_v48  ;;  %v8132_v36 = vld [vmem:[%s11353_s4 + $0x14c] ss:$16 sps:$4 sm:$0xff]   ;;  %v8134_v20 = vld [vmem:[%s11353_s4 + $0x148] ss:$16 sps:$4 sm:$0xff]  }
 0x5af   : > { %v4770_v54 = vpack.c.bf16 %v4706_v16, %v4704_v12  ;;  %v8135_v47 = vld [vmem:[%s11353_s4 + $0x16c] ss:$16 sps:$4 sm:$0xff]   ;;  %v8137_v27 = vld [vmem:[%s11353_s4 + $0x168] ss:$16 sps:$4 sm:$0xff]  }
 0x5b0   : > { %v8138_v22 = vld [vmem:[%s11353_s4 + $0x18c] ss:$16 sps:$4 sm:$0xff]   ;;  %v8140_v48 = vld [vmem:[%s11353_s4 + $0x188] ss:$16 sps:$4 sm:$0xff]  }
 0x5b1   : > { %6242 = vmatprep.subr.bf16.mxu0 %v4770_v54  ;;  %v8141_v49 = vld [vmem:[%s11353_s4 + $0x1ac] ss:$16 sps:$4 sm:$0xff]   ;;  %v8143_v53 = vld [vmem:[%s11353_s4 + $0x1a8] ss:$16 sps:$4 sm:$0xff]  }
 0x5b2   : > { %6243 = vmatpush1.bf16.msra.mxu0 %v4769_v45  ;;  %v8144_v18 = vld [vmem:[%s11353_s4 + $0x1cc] ss:$16 sps:$4 sm:$0xff]   ;;  %v8146_v12 = vld [vmem:[%s11353_s4 + $0x1c8] ss:$16 sps:$4 sm:$0xff]  }
 0x5b3   : > { %v8147_v16 = vld [vmem:[%s11353_s4 + $0x1ec] ss:$16 sps:$4 sm:$0xff]   ;;  %v8149_v45 = vld [vmem:[%s11353_s4 + $0x1e8] ss:$16 sps:$4 sm:$0xff]  }
 0x5b4   : > { %v8150_v54 = vld [vmem:[%s11353_s4 + $0x20c] ss:$16 sps:$4 sm:$0xff]  }
 0x5b5   : > { %6052 = vmatmul.mubr.bf16.gmra.mrb[244].mxu0 %v8056_v61  ;;  %v8152_v61 = vld [vmem:[%s11353_s4 + $0x208] ss:$16 sps:$4 sm:$0xff]  }
 0x5b6   : > { %6061 = vmatprep.mubr.bf16.mxu0 %v8057_v33  ;;  %v8153_v33 = vld [vmem:[%s11353_s4 + $0x22c] ss:$16 sps:$4 sm:$0xff]  }
 0x5bd   : > { %6062 = vmatmul.mubr.bf16.gmra.mrb[248].mxu0 %v8059_v9  ;;  %v8155_v9 = vld [vmem:[%s11353_s4 + $0x228] ss:$16 sps:$4 sm:$0xff]  }
 0x5be   : > { %6071 = vmatprep.mubr.bf16.mxu0 %v8060_v42  ;;  %v8156_v42 = vld [vmem:[%s11353_s4 + $0x24c] ss:$16 sps:$4 sm:$0xff]  }
 0x5c5   : > { %6072 = vmatmul.mubr.bf16.gmra.mrb[252].mxu0 %v8062_v0  ;;  %v8158_v0 = vld [vmem:[%s11353_s4 + $0x248] ss:$16 sps:$4 sm:$0xff]  }
 0x5c6   : > { %6081 = vmatprep.mubr.bf16.mxu0 %v8065_v30  ;;  %v8161_v30 = vld [vmem:[%s11353_s4 + $0x26c] ss:$16 sps:$4 sm:$0xff]  }
 0x5cd   : > { %6082 = vmatmul.mubr.bf16.gmra.mrb[0].mxu0 %v8063_v5  ;;  %v8159_v5 = vld [vmem:[%s11353_s4 + $0x268] ss:$16 sps:$4 sm:$0xff]  }
 0x5ce   : > { %6091 = vmatprep.mubr.bf16.mxu0 %v8068_v24  ;;  %v8164_v24 = vld [vmem:[%s11353_s4 + $0x28c] ss:$16 sps:$4 sm:$0xff]  }
 0x5d5   : > { %6092 = vmatmul.mubr.bf16.gmra.mrb[4].mxu0 %v8066_v3  ;;  %v8162_v3 = vld [vmem:[%s11353_s4 + $0x288] ss:$16 sps:$4 sm:$0xff]  }
 0x5d6   : > { %6101 = vmatprep.mubr.bf16.mxu0 %v8071_v35  ;;  %v8167_v35 = vld [vmem:[%s11353_s4 + $0x2ac] ss:$16 sps:$4 sm:$0xff]  }
 0x5dd   : > { %6102 = vmatmul.mubr.bf16.gmra.mrb[8].mxu0 %v8069_v31  ;;  %v8165_v31 = vld [vmem:[%s11353_s4 + $0x2a8] ss:$16 sps:$4 sm:$0xff]  }
 0x5de   : > { %6111 = vmatprep.mubr.bf16.mxu0 %v8074_v41  ;;  %v8170_v41 = vld [vmem:[%s11353_s4 + $0x2cc] ss:$16 sps:$4 sm:$0xff]  }
 0x5e5   : > { %6112 = vmatmul.mubr.bf16.gmra.mrb[12].mxu0 %v8072_v19  ;;  %v8168_v19 = vld [vmem:[%s11353_s4 + $0x2c8] ss:$16 sps:$4 sm:$0xff]  }
 0x5e6   : > { %6121 = vmatprep.mubr.bf16.mxu0 %v8077_v51  ;;  %v8173_v51 = vld [vmem:[%s11353_s4 + $0x2ec] ss:$16 sps:$4 sm:$0xff]  }
 0x5ed   : > { %6122 = vmatmul.mubr.bf16.gmra.mrb[16].mxu0 %v8075_v1  ;;  %v8171_v1 = vld [vmem:[%s11353_s4 + $0x2e8] ss:$16 sps:$4 sm:$0xff]  }
 0x5ee   : > { %6131 = vmatprep.mubr.bf16.mxu0 %v8080_v52  ;;  %v8176_v52 = vld [vmem:[%s11353_s4 + $0x30c] ss:$16 sps:$4 sm:$0xff]  }
 0x5f5   : > { %6132 = vmatmul.mubr.bf16.gmra.mrb[20].mxu0 %v8078_v60  ;;  %v8174_v60 = vld [vmem:[%s11353_s4 + $0x308] ss:$16 sps:$4 sm:$0xff]  }
 0x5f6   : > { %6141 = vmatprep.mubr.bf16.mxu0 %v8083_v28  ;;  %v8179_v28 = vld [vmem:[%s11353_s4 + $0x32c] ss:$16 sps:$4 sm:$0xff]  }
 0x5fd   : > { %6142 = vmatmul.mubr.bf16.gmra.mrb[24].mxu0 %v8081_v15  ;;  %v8177_v15 = vld [vmem:[%s11353_s4 + $0x328] ss:$16 sps:$4 sm:$0xff]  }
 0x5fe   : > { %6151 = vmatprep.mubr.bf16.mxu0 %v8086_v23  ;;  %v8182_v23 = vld [vmem:[%s11353_s4 + $0x34c] ss:$16 sps:$4 sm:$0xff]  }
 0x605   : > { %6152 = vmatmul.mubr.bf16.gmra.mrb[28].mxu0 %v8084_v8  ;;  %v8180_v8 = vld [vmem:[%s11353_s4 + $0x348] ss:$16 sps:$4 sm:$0xff]  }
 0x606   : > { %6161 = vmatprep.mubr.bf16.mxu0 %v8089_v14  ;;  %v8185_v14 = vld [vmem:[%s11353_s4 + $0x36c] ss:$16 sps:$4 sm:$0xff]  }
 0x60d   : > { %6162 = vmatmul.mubr.bf16.gmra.mrb[32].mxu0 %v8087_v46  ;;  %v4902_v46 = vpop.permute.xlu0 %4901 }
 0x60e   : > { %6171 = vmatprep.mubr.bf16.mxu0 %v8092_v32 }
 0x615   : > { %6172 = vmatmul.mubr.bf16.gmra.mrb[36].mxu0 %v8090_v4 }
 0x616   : > { %6181 = vmatprep.mubr.bf16.mxu0 %v8095_v57 }
 0x61d   : > { %6182 = vmatmul.mubr.bf16.gmra.mrb[40].mxu0 %v8093_v55  ;;  %v8183_v55 = vld [vmem:[%s11353_s4 + $0x368] ss:$16 sps:$4 sm:$0xff]  }
 0x61e   : > { %6191 = vmatprep.mubr.bf16.mxu0 %v8098_v26  ;;  %v4907_v26 = vpop.permute.xlu1 %4906 }
 0x625   : > { %6192 = vmatmul.mubr.bf16.gmra.mrb[44].mxu0 %v8096_v10 }
 0x626   : > { %6201 = vmatprep.mubr.bf16.mxu0 %v8101_v29 }
 0x62d   : > { %6202 = vmatmul.mubr.bf16.gmra.mrb[48].mxu0 %v8099_v40  ;;  %v8188_v40 = vld [vmem:[%s11353_s4 + $0x38c] ss:$16 sps:$4 sm:$0xff]  }
 0x62e   : > { %6244 = vmatprep.mubr.bf16.mxu0 %v8104_v13 }
 0x635   : > { %6245 = vmatmul.mubr.bf16.vlgmr.msra.gmra.mrb[180].mxu0 %v8102_v21 }
 0x636   : > { %6254 = vmatprep.mubr.bf16.mxu0 %v8105_v58  ;;  %v8300_v58 = vmov 1966171168  }
 0x63d   : > { %6255 = vmatmul.mubr.bf16.gmra.mrb[184].mxu0 %v8107_v43  ;;  %v6772_v43 = vunpack.c.l.s4 %v8300_v58 }
 0x63e   : > { %6264 = vmatprep.mubr.bf16.mxu0 %v8108_v38 }
 0x645   : > { %6265 = vmatmul.mubr.bf16.gmra.mrb[188].mxu0 %v8110_v11 }
 0x646   : > { %6274 = vmatprep.mubr.bf16.mxu0 %v8111_v62 }
 0x64d   : > { %6275 = vmatmul.mubr.bf16.gmra.mrb[192].mxu0 %v8113_v6  ;;  %v6773_v6 = vunpack.c.0.s8 %v6772_v43 }
 0x64e   : > { %6284 = vmatprep.mubr.bf16.mxu0 %v8114_v17 }
 0x655   : > { %6285 = vmatmul.mubr.bf16.gmra.mrb[196].mxu0 %v8116_v25 }
 0x656   : > { %6294 = vmatprep.mubr.bf16.mxu0 %v8117_v2  ;;  %v11253_v2 = vld.sshfl [vmem:[%s11356_s7] sm:$0x33 pattern:$0x75316420] }
 0x65d   : > { %6295 = vmatmul.mubr.bf16.gmra.mrb[200].mxu0 %v8119_v59 }
 0x65e   : > { %6304 = vmatprep.mubr.bf16.mxu0 %v8120_v56  ;;  %v6770_v56 = vcombine.high %v11253_v2, %v11253_v2 }
 0x665   : > { %6305 = vmatmul.mubr.bf16.gmra.mrb[204].mxu0 %v8122_v7  ;;  %v11578_v7 = vld [vmem:[#allocation8_spill] sm:$0xff] }
 0x666   : > { %6314 = vmatprep.mubr.bf16.mxu0 %v8123_v44  ;;  %v11258_v44 = vsub.s32 %v6773_v6, %v11578_v7 }
 0x66d   : > { %6315 = vmatmul.mubr.bf16.gmra.mrb[208].mxu0 %v8125_v50  ;;  %v4912_v50 = vpop.permute.xlu0 %4911 }
 0x66e   : > { %6324 = vmatprep.mubr.bf16.mxu0 %v8126_v37 }
 0x675   : > { %6325 = vmatmul.mubr.bf16.gmra.mrb[212].mxu0 %v8128_v34 }
 0x676   : > { %6334 = vmatprep.mubr.bf16.mxu0 %v8129_v39 }
 0x67d   : > { %6335 = vmatmul.mubr.bf16.gmra.mrb[216].mxu0 %v8131_v63 }
 0x67e   : > { %6344 = vmatprep.mubr.bf16.mxu0 %v8132_v36  ;;  %v8186_v36 = vld [vmem:[%s11353_s4 + $0x388] ss:$16 sps:$4 sm:$0xff]  }
 0x685   : > { %6345 = vmatmul.mubr.bf16.gmra.mrb[220].mxu0 %v8134_v20  ;;  %v11264_v20 = vrot.slane %v6770_v56, %v11258_v44  ;;  %v8195_v56 = vld [vmem:[%s11353_s4 + $0x3e8] ss:$16 sps:$4 sm:$0xff]  }
 0x686   : > { %6354 = vmatprep.mubr.bf16.mxu0 %v8135_v47  ;;  %v4917_v47 = vpop.permute.xlu1 %4916 }
 0x687   : > { %6823 = vmatprep.mubr.bf16.mxu1 %v11264_v20 }
 0x68d   : > { %6355 = vmatmul.mubr.bf16.gmra.mrb[224].mxu0 %v8137_v27 }
 0x68e   : > { %6364 = vmatprep.mubr.bf16.mxu0 %v8138_v22 }
 0x695   : > { %6365 = vmatmul.mubr.bf16.gmra.mrb[228].mxu0 %v8140_v48  ;;  %v8191_v48 = vld [vmem:[%s11353_s4 + $0x3ac] ss:$16 sps:$4 sm:$0xff]  }
 0x696   : > { %6374 = vmatprep.mubr.bf16.mxu0 %v8141_v49 }
 0x69d   : > { %6375 = vmatmul.mubr.bf16.gmra.mrb[232].mxu0 %v8143_v53 }
 0x69e   : > { %6384 = vmatprep.mubr.bf16.mxu0 %v8144_v18 }
 0x6a5   : > { %6385 = vmatmul.mubr.bf16.gmra.mrb[236].mxu0 %v8146_v12 }
 0x6a6   : > { %6394 = vmatprep.mubr.bf16.mxu0 %v8147_v16 }
 0x6ad   : > { %6395 = vmatmul.mubr.bf16.gmra.mrb[240].mxu0 %v8149_v45 }
 0x6ae   : > { %6404 = vmatprep.mubr.bf16.mxu0 %v8150_v54 }
 0x6b5   : > { %6405 = vmatmul.mubr.bf16.gmra.mrb[244].mxu0 %v8152_v61 }
 0x6b6   : > { %6414 = vmatprep.mubr.bf16.mxu0 %v8153_v33  ;;  %v4922_v33 = vpop.permute.xlu0 %4921 }
 0x6bd   : > { %6415 = vmatmul.mubr.bf16.gmra.mrb[248].mxu0 %v8155_v9 }
 0x6be   : > { %6424 = vmatprep.mubr.bf16.mxu0 %v8156_v42 }
 0x6c5   : > { %6425 = vmatmul.mubr.bf16.gmra.mrb[252].mxu0 %v8158_v0 }
 0x6c6   : > { %6434 = vmatprep.mubr.bf16.mxu0 %v8161_v30 }
 0x6cd   : > { %6435 = vmatmul.mubr.bf16.gmra.mrb[0].mxu0 %v8159_v5  ;;  %v8189_v5 = vld [vmem:[%s11353_s4 + $0x3a8] ss:$16 sps:$4 sm:$0xff]  }
 0x6ce   : > { %6444 = vmatprep.mubr.bf16.mxu0 %v8164_v24  ;;  %v4927_v24 = vpop.permute.xlu1 %4926 }
 0x6d5   : > { %6445 = vmatmul.mubr.bf16.gmra.mrb[4].mxu0 %v8162_v3 }
 0x6d6   : > { %6454 = vmatprep.mubr.bf16.mxu0 %v8167_v35 }
 0x6dd   : > { %6455 = vmatmul.mubr.bf16.gmra.mrb[8].mxu0 %v8165_v31  ;;  %v8194_v31 = vld [vmem:[%s11353_s4 + $0x3cc] ss:$16 sps:$4 sm:$0xff]  }
 0x6de   : > { %6464 = vmatprep.mubr.bf16.mxu0 %v8170_v41 }
 0x6e5   : > { %6465 = vmatmul.mubr.bf16.gmra.mrb[12].mxu0 %v8168_v19 }
 0x6e6   : > { %6474 = vmatprep.mubr.bf16.mxu0 %v8173_v51 }
 0x6ed   : > { %6475 = vmatmul.mubr.bf16.gmra.mrb[16].mxu0 %v8171_v1 }
 0x6ee   : > { %6484 = vmatprep.mubr.bf16.mxu0 %v8176_v52 }
 0x6f5   : > { %6485 = vmatmul.mubr.bf16.gmra.mrb[20].mxu0 %v8174_v60 }
 0x6f6   : > { %6494 = vmatprep.mubr.bf16.mxu0 %v8179_v28 }
 0x6fd   : > { %6495 = vmatmul.mubr.bf16.gmra.mrb[24].mxu0 %v8177_v15 }
 0x6fe   : > { %6504 = vmatprep.mubr.bf16.mxu0 %v8182_v23  ;;  %v4932_v23 = vpop.permute.xlu0 %4931 }
 0x705   : > { %6505 = vmatmul.mubr.bf16.gmra.mrb[28].mxu0 %v8180_v8 }
 0x706   : > { %6514 = vmatprep.mubr.bf16.mxu0 %v8185_v14 }
 0x708   : > { %v6246_v32 = vpop.f32.mrb[180].mxu0 }
 0x709   : > { %v7559_v4 = vadd.f32 %v6246_v32, %v4902_v46  ;;  %v6248_v57 = vpop.f32.mrb[181].mxu0 }
 0x70a   : > { %v7560_v10 = vadd.f32 %v6248_v57, %v4902_v46  ;;  %v6250_v29 = vpop.f32.mrb[182].mxu0  ;;  %v4937_v57 = vpop.permute.xlu1 %4936 }
 0x70b   : > { %v7561_v13 = vadd.f32 %v6250_v29, %v4907_v26  ;;  %v6252_v21 = vpop.f32.mrb[183].mxu0  ;;  %v6565_v11 = vmax.f32 %v7559_v4, 0.0  ;;  %v8192_v4 = vld [vmem:[%s11353_s4 + $0x3c8] ss:$16 sps:$4 sm:$0xff]  }
 0x70c   : > { %v7562_v38 = vadd.f32 %v6252_v21, %v4907_v26  ;;  %v6566_v17 = vmax.f32 %v7560_v10, 0.0  ;;  %v8197_v10 = vld [vmem:[%s11353_s4 + $0x3ec] ss:$16 sps:$4 sm:$0xff]  }
 0x70d   : > { %v6567_v62 = vmax.f32 %v7561_v13, 0.0  ;;  %6515 = vmatmul.mubr.bf16.gmra.mrb[32].mxu0 %v8183_v55 }
 0x70e   : > { %v6568_v25 = vmax.f32 %v7562_v38, 0.0  ;;  %6524 = vmatprep.mubr.bf16.mxu0 %v8188_v40  ;;  %v4947_v7 = vpop.permute.xlu1 %4946 }
 0x70f   : > { %v6693_v59 = vpack.c.bf16 %v6567_v62, %v6565_v11  ;;  %v4942_v62 = vpop.permute.xlu0 %4941 }
 0x710   : > { %v6694_v37 = vpack.c.bf16 %v6568_v25, %v6566_v17  ;;  %v6256_v34 = vpop.f32.mrb[184].mxu0 }
 0x711   : > { %v7563_v39 = vadd.f32 %v6256_v34, %v4912_v50  ;;  %v6258_v63 = vpop.f32.mrb[185].mxu0 }
 0x712   : > { %v7564_v27 = vadd.f32 %v6258_v63, %v4912_v50  ;;  %v6260_v22 = vpop.f32.mrb[186].mxu0  ;;  %6791 = vmatprep.subr.bf16.mxu1 %v6694_v37 }
 0x713   : > { %v7565_v49 = vadd.f32 %v6260_v22, %v4917_v47  ;;  %v6262_v53 = vpop.f32.mrb[187].mxu0  ;;  %6792 = vmatpush1.bf16.msra.mxu1 %v6693_v59  ;;  %v6569_v12 = vmax.f32 %v7563_v39, 0.0 }
 0x714   : > { %v7566_v18 = vadd.f32 %v6262_v53, %v4917_v47  ;;  %v6570_v45 = vmax.f32 %v7564_v27, 0.0 }
 0x715   : > { %v6571_v16 = vmax.f32 %v7565_v49, 0.0  ;;  %6525 = vmatmul.mubr.bf16.gmra.mrb[36].mxu0 %v8186_v36  ;;  %v4952_v49 = vpop.permute.xlu0 %4951 }
 0x716   : > { %v6572_v54 = vmax.f32 %v7566_v18, 0.0  ;;  %6534 = vmatprep.mubr.bf16.mxu0 %v8191_v48 }
 0x717   : > { %v6695_v61 = vpack.c.bf16 %v6571_v16, %v6569_v12 }
 0x718   : > { %v6696_v9 = vpack.c.bf16 %v6572_v54, %v6570_v45  ;;  %v6266_v42 = vpop.f32.mrb[188].mxu0  ;;  %v4957_v45 = vpop.permute.xlu1 %4956 }
 0x719   : > { %v7567_v0 = vadd.f32 %v6266_v42, %v4922_v33  ;;  %v6268_v30 = vpop.f32.mrb[189].mxu0 }
 0x71a   : > { %v7568_v3 = vadd.f32 %v6268_v30, %v4922_v33  ;;  %v6270_v35 = vpop.f32.mrb[190].mxu0  ;;  %6793 = vmatprep.subr.bf16.mxu1 %v6696_v9 }
 0x71b   : > { %v7569_v41 = vadd.f32 %v6270_v35, %v4927_v24  ;;  %v6272_v19 = vpop.f32.mrb[191].mxu0  ;;  %6794 = vmatpush1.bf16.msra.mxu1 %v6695_v61  ;;  %v6573_v1 = vmax.f32 %v7567_v0, 0.0  ;;  %v4962_v35 = vpop.permute.xlu0 %4961 }
 0x71c   : > { %v7570_v51 = vadd.f32 %v6272_v19, %v4927_v24  ;;  %v6574_v60 = vmax.f32 %v7568_v3, 0.0 }
 0x71d   : > { %v6575_v52 = vmax.f32 %v7569_v41, 0.0  ;;  %6535 = vmatmul.mubr.bf16.gmra.mrb[40].mxu0 %v8189_v5 }
 0x71e   : > { %v6576_v28 = vmax.f32 %v7570_v51, 0.0  ;;  %6544 = vmatprep.mubr.bf16.mxu0 %v8194_v31 }
 0x71f   : > { %v6697_v15 = vpack.c.bf16 %v6575_v52, %v6573_v1  ;;  %v4967_v1 = vpop.permute.xlu1 %4966 }
 0x720   : > { %v6698_v8 = vpack.c.bf16 %v6576_v28, %v6574_v60  ;;  %v6276_v14 = vpop.f32.mrb[192].mxu0 }
 0x721   : > { %v7571_v46 = vadd.f32 %v6276_v14, %v4932_v23  ;;  %v6278_v32 = vpop.f32.mrb[193].mxu0 }
 0x722   : > { %v7572_v55 = vadd.f32 %v6278_v32, %v4932_v23  ;;  %v6280_v26 = vpop.f32.mrb[194].mxu0  ;;  %6795 = vmatprep.subr.bf16.mxu1 %v6698_v8 }
 0x723   : > { %v7573_v29 = vadd.f32 %v6280_v26, %v4937_v57  ;;  %v6282_v40 = vpop.f32.mrb[195].mxu0  ;;  %6796 = vmatpush1.bf16.msra.mxu1 %v6697_v15  ;;  %v6577_v21 = vmax.f32 %v7571_v46, 0.0 }
 0x724   : > { %v7574_v13 = vadd.f32 %v6282_v40, %v4937_v57  ;;  %v6578_v43 = vmax.f32 %v7572_v55, 0.0  ;;  %v4972_v57 = vpop.permute.xlu0 %4971  ;;  %v4977_v40 = vpop.permute.xlu1 %4976 }
 0x725   : > { %v6579_v58 = vmax.f32 %v7573_v29, 0.0  ;;  %6545 = vmatmul.mubr.bf16.gmra.mrb[44].mxu0 %v8192_v4 }
 0x726   : > { %v6580_v38 = vmax.f32 %v7574_v13, 0.0  ;;  %6554 = vmatprep.mubr.bf16.mxu0 %v8197_v10 }
 0x727   : > { %v6699_v11 = vpack.c.bf16 %v6579_v58, %v6577_v21 }
 0x728   : > { %v6700_v6 = vpack.c.bf16 %v6580_v38, %v6578_v43  ;;  %v6286_v17 = vpop.f32.mrb[196].mxu0 }
 0x729   : > { %v7575_v25 = vadd.f32 %v6286_v17, %v4942_v62  ;;  %v6288_v59 = vpop.f32.mrb[197].mxu0 }
 0x72a   : > { %v7576_v50 = vadd.f32 %v6288_v59, %v4942_v62  ;;  %v6290_v37 = vpop.f32.mrb[198].mxu0  ;;  %6797 = vmatprep.subr.bf16.mxu1 %v6700_v6  ;;  %v4982_v59 = vpop.permute.xlu0 %4981 }
 0x72b   : > { %v7577_v34 = vadd.f32 %v6290_v37, %v4947_v7  ;;  %v6292_v39 = vpop.f32.mrb[199].mxu0  ;;  %6798 = vmatpush1.bf16.msra.mxu1 %v6699_v11  ;;  %v6581_v36 = vmax.f32 %v7575_v25, 0.0 }
 0x72c   : > { %v7578_v63 = vadd.f32 %v6292_v39, %v4947_v7  ;;  %v6582_v27 = vmax.f32 %v7576_v50, 0.0 }
 0x72d   : > { %v6583_v47 = vmax.f32 %v7577_v34, 0.0  ;;  %6555 = vmatmul.mubr.bf16.gmra.mrb[48].mxu0 %v8195_v56  ;;  %v4987_v34 = vpop.permute.xlu1 %4986 }
 0x72e   : > { %v6584_v22 = vmax.f32 %v7578_v63, 0.0 }
 0x72f   : > { %v6701_v48 = vpack.c.bf16 %v6583_v47, %v6581_v36 }
 0x730   : > { %v6702_v53 = vpack.c.bf16 %v6584_v22, %v6582_v27  ;;  %v6296_v18 = vpop.f32.mrb[200].mxu0 }
 0x731   : > { %v7579_v12 = vadd.f32 %v6296_v18, %v4952_v49  ;;  %v6298_v16 = vpop.f32.mrb[201].mxu0 }
 0x732   : > { %v7580_v54 = vadd.f32 %v6298_v16, %v4952_v49  ;;  %v6300_v61 = vpop.f32.mrb[202].mxu0  ;;  %6799 = vmatprep.subr.bf16.mxu1 %v6702_v53 }
 0x733   : > { %v7581_v33 = vadd.f32 %v6300_v61, %v4957_v45  ;;  %v6302_v9 = vpop.f32.mrb[203].mxu0  ;;  %6800 = vmatpush1.bf16.msra.mxu1 %v6701_v48  ;;  %v6585_v0 = vmax.f32 %v7579_v12, 0.0  ;;  %v4992_v12 = vpop.permute.xlu0 %4991 }
 0x734   : > { %v7582_v42 = vadd.f32 %v6302_v9, %v4957_v45  ;;  %v6586_v5 = vmax.f32 %v7580_v54, 0.0 }
 0x735   : > { %v6587_v30 = vmax.f32 %v7581_v33, 0.0  ;;  %v4997_v33 = vpop.permute.xlu1 %4996 }
 0x736   : > { %v6588_v24 = vmax.f32 %v7582_v42, 0.0 }
 0x737   : > { %v6703_v3 = vpack.c.bf16 %v6587_v30, %v6585_v0 }
 0x738   : > { %v6704_v31 = vpack.c.bf16 %v6588_v24, %v6586_v5  ;;  %v6306_v41 = vpop.f32.mrb[204].mxu0 }
 0x739   : > { %v7583_v19 = vadd.f32 %v6306_v41, %v4962_v35  ;;  %v6308_v51 = vpop.f32.mrb[205].mxu0 }
 0x73a   : > { %v7584_v52 = vadd.f32 %v6308_v51, %v4962_v35  ;;  %v6310_v60 = vpop.f32.mrb[206].mxu0  ;;  %6801 = vmatprep.subr.bf16.mxu1 %v6704_v31 }
 0x73b   : > { %v7585_v28 = vadd.f32 %v6310_v60, %v4967_v1  ;;  %v6312_v15 = vpop.f32.mrb[207].mxu0  ;;  %6802 = vmatpush1.bf16.msra.mxu1 %v6703_v3  ;;  %v6589_v8 = vmax.f32 %v7583_v19, 0.0  ;;  %v5002_v19 = vpop.permute.xlu0 %5001 }
 0x73c   : > { %v7586_v23 = vadd.f32 %v6312_v15, %v4967_v1  ;;  %v6590_v46 = vmax.f32 %v7584_v52, 0.0 }
 0x73d   : > { %v6591_v14 = vmax.f32 %v7585_v28, 0.0  ;;  %v5007_v28 = vpop.permute.xlu1 %5006 }
 0x73e   : > { %v6592_v32 = vmax.f32 %v7586_v23, 0.0 }
 0x73f   : > { %v6705_v4 = vpack.c.bf16 %v6591_v14, %v6589_v8 }
 0x740   : > { %v6706_v55 = vpack.c.bf16 %v6592_v32, %v6590_v46  ;;  %v6316_v26 = vpop.f32.mrb[208].mxu0 }
 0x741   : > { %v7587_v10 = vadd.f32 %v6316_v26, %v4972_v57  ;;  %v6318_v29 = vpop.f32.mrb[209].mxu0 }
 0x742   : > { %v7588_v13 = vadd.f32 %v6318_v29, %v4972_v57  ;;  %v6320_v21 = vpop.f32.mrb[210].mxu0  ;;  %6803 = vmatprep.subr.bf16.mxu1 %v6706_v55 }
 0x743   : > { %v7589_v58 = vadd.f32 %v6320_v21, %v4977_v40  ;;  %v6322_v43 = vpop.f32.mrb[211].mxu0  ;;  %6804 = vmatpush1.bf16.msra.mxu1 %v6705_v4  ;;  %v6593_v11 = vmax.f32 %v7587_v10, 0.0  ;;  %v5012_v10 = vpop.permute.xlu0 %5011 }
 0x744   : > { %v7590_v38 = vadd.f32 %v6322_v43, %v4977_v40  ;;  %v6594_v6 = vmax.f32 %v7588_v13, 0.0 }
 0x745   : > { %v6595_v62 = vmax.f32 %v7589_v58, 0.0  ;;  %v5017_v58 = vpop.permute.xlu1 %5016 }
 0x746   : > { %v6596_v17 = vmax.f32 %v7590_v38, 0.0 }
 0x747   : > { %v6707_v25 = vpack.c.bf16 %v6595_v62, %v6593_v11 }
 0x748   : > { %v6708_v56 = vpack.c.bf16 %v6596_v17, %v6594_v6  ;;  %v6326_v7 = vpop.f32.mrb[212].mxu0 }
 0x749   : > { %v7591_v50 = vadd.f32 %v6326_v7, %v4982_v59  ;;  %v6328_v37 = vpop.f32.mrb[213].mxu0 }
 0x74a   : > { %v7592_v39 = vadd.f32 %v6328_v37, %v4982_v59  ;;  %v6330_v63 = vpop.f32.mrb[214].mxu0  ;;  %6805 = vmatprep.subr.bf16.mxu1 %v6708_v56 }
 0x74b   : > { %v7593_v36 = vadd.f32 %v6330_v63, %v4987_v34  ;;  %v6332_v47 = vpop.f32.mrb[215].mxu0  ;;  %6806 = vmatpush1.bf16.msra.mxu1 %v6707_v25  ;;  %v6597_v22 = vmax.f32 %v7591_v50, 0.0  ;;  %v5022_v50 = vpop.permute.xlu0 %5021 }
 0x74c   : > { %v7594_v27 = vadd.f32 %v6332_v47, %v4987_v34  ;;  %v6598_v49 = vmax.f32 %v7592_v39, 0.0 }
 0x74d   : > { %v6599_v48 = vmax.f32 %v7593_v36, 0.0  ;;  %v5027_v36 = vpop.permute.xlu1 %5026 }
 0x74e   : > { %v6600_v53 = vmax.f32 %v7594_v27, 0.0 }
 0x74f   : > { %v6709_v18 = vpack.c.bf16 %v6599_v48, %v6597_v22 }
 0x750   : > { %v6710_v16 = vpack.c.bf16 %v6600_v53, %v6598_v49  ;;  %v6336_v45 = vpop.f32.mrb[216].mxu0 }
 0x751   : > { %v7595_v54 = vadd.f32 %v6336_v45, %v4992_v12  ;;  %v6338_v61 = vpop.f32.mrb[217].mxu0 }
 0x752   : > { %v7596_v9 = vadd.f32 %v6338_v61, %v4992_v12  ;;  %v6340_v42 = vpop.f32.mrb[218].mxu0  ;;  %6807 = vmatprep.subr.bf16.mxu1 %v6710_v16 }
 0x753   : > { %v7597_v0 = vadd.f32 %v6340_v42, %v4997_v33  ;;  %v6342_v30 = vpop.f32.mrb[219].mxu0  ;;  %6808 = vmatpush1.bf16.msra.mxu1 %v6709_v18  ;;  %v6601_v24 = vmax.f32 %v7595_v54, 0.0  ;;  %v5032_v54 = vpop.permute.xlu0 %5031 }
 0x754   : > { %v7598_v5 = vadd.f32 %v6342_v30, %v4997_v33  ;;  %v6602_v35 = vmax.f32 %v7596_v9, 0.0 }
 0x755   : > { %v6603_v3 = vmax.f32 %v7597_v0, 0.0  ;;  %v5037_v0 = vpop.permute.xlu1 %5036 }
 0x756   : > { %v6604_v31 = vmax.f32 %v7598_v5, 0.0 }
 0x757   : > { %v6711_v41 = vpack.c.bf16 %v6603_v3, %v6601_v24 }
 0x758   : > { %v6712_v51 = vpack.c.bf16 %v6604_v31, %v6602_v35  ;;  %v6346_v1 = vpop.f32.mrb[220].mxu0 }
 0x759   : > { %v7599_v52 = vadd.f32 %v6346_v1, %v5002_v19  ;;  %v6348_v60 = vpop.f32.mrb[221].mxu0 }
 0x75a   : > { %v7600_v15 = vadd.f32 %v6348_v60, %v5002_v19  ;;  %v6350_v23 = vpop.f32.mrb[222].mxu0  ;;  %6809 = vmatprep.subr.bf16.mxu1 %v6712_v51 }
 0x75b   : > { %v7601_v8 = vadd.f32 %v6350_v23, %v5007_v28  ;;  %v6352_v14 = vpop.f32.mrb[223].mxu0  ;;  %6810 = vmatpush1.bf16.msra.mxu1 %v6711_v41  ;;  %v6605_v32 = vmax.f32 %v7599_v52, 0.0  ;;  %v5042_v52 = vpop.permute.xlu0 %5041 }
 0x75c   : > { %v7602_v46 = vadd.f32 %v6352_v14, %v5007_v28  ;;  %v6606_v57 = vmax.f32 %v7600_v15, 0.0 }
 0x75d   : > { %v6607_v4 = vmax.f32 %v7601_v8, 0.0  ;;  %v5047_v8 = vpop.permute.xlu1 %5046 }
 0x75e   : > { %v6608_v55 = vmax.f32 %v7602_v46, 0.0 }
 0x75f   : > { %v6713_v26 = vpack.c.bf16 %v6607_v4, %v6605_v32 }
 0x760   : > { %v6714_v29 = vpack.c.bf16 %v6608_v55, %v6606_v57  ;;  %v6356_v40 = vpop.f32.mrb[224].mxu0 }
 0x761   : > { %v7603_v13 = vadd.f32 %v6356_v40, %v5012_v10  ;;  %v6358_v21 = vpop.f32.mrb[225].mxu0 }
 0x762   : > { %v7604_v43 = vadd.f32 %v6358_v21, %v5012_v10  ;;  %v6360_v38 = vpop.f32.mrb[226].mxu0  ;;  %6811 = vmatprep.subr.bf16.mxu1 %v6714_v29 }
 0x763   : > { %v7605_v11 = vadd.f32 %v6360_v38, %v5017_v58  ;;  %v6362_v62 = vpop.f32.mrb[227].mxu0  ;;  %6812 = vmatpush1.bf16.msra.mxu1 %v6713_v26  ;;  %v6609_v17 = vmax.f32 %v7603_v13, 0.0  ;;  %v5052_v13 = vpop.permute.xlu0 %5051 }
 0x764   : > { %v7606_v6 = vadd.f32 %v6362_v62, %v5017_v58  ;;  %v6610_v59 = vmax.f32 %v7604_v43, 0.0 }
 0x765   : > { %v6611_v25 = vmax.f32 %v7605_v11, 0.0  ;;  %v5057_v11 = vpop.permute.xlu1 %5056 }
 0x766   : > { %v6612_v56 = vmax.f32 %v7606_v6, 0.0 }
 0x767   : > { %v6715_v7 = vpack.c.bf16 %v6611_v25, %v6609_v17 }
 0x768   : > { %v6716_v37 = vpack.c.bf16 %v6612_v56, %v6610_v59  ;;  %v6366_v34 = vpop.f32.mrb[228].mxu0 }
 0x769   : > { %v7607_v39 = vadd.f32 %v6366_v34, %v5022_v50  ;;  %v6368_v63 = vpop.f32.mrb[229].mxu0 }
 0x76a   : > { %v7608_v47 = vadd.f32 %v6368_v63, %v5022_v50  ;;  %v6370_v27 = vpop.f32.mrb[230].mxu0  ;;  %6813 = vmatprep.subr.bf16.mxu1 %v6716_v37 }
 0x76b   : > { %v7609_v22 = vadd.f32 %v6370_v27, %v5027_v36  ;;  %v6372_v48 = vpop.f32.mrb[231].mxu0  ;;  %6814 = vmatpush1.bf16.msra.mxu1 %v6715_v7  ;;  %v6613_v53 = vmax.f32 %v7607_v39, 0.0  ;;  %v5062_v39 = vpop.permute.xlu0 %5061 }
 0x76c   : > { %v7610_v49 = vadd.f32 %v6372_v48, %v5027_v36  ;;  %v6614_v12 = vmax.f32 %v7608_v47, 0.0 }
 0x76d   : > { %v6615_v18 = vmax.f32 %v7609_v22, 0.0  ;;  %v5067_v22 = vpop.permute.xlu1 %5066 }
 0x76e   : > { %v6616_v16 = vmax.f32 %v7610_v49, 0.0 }
 0x76f   : > { %v6717_v45 = vpack.c.bf16 %v6615_v18, %v6613_v53  ;;  %v11287_v53 = vrot.slane %v11253_v2, %v11258_v44 }
 0x770   : > { %v6718_v61 = vpack.c.bf16 %v6616_v16, %v6614_v12  ;;  %v6376_v33 = vpop.f32.mrb[232].mxu0  ;;  %v6786_v16 = vcombine.high %v11264_v20, %v11264_v20 }
 0x771   : > { %v7611_v9 = vadd.f32 %v6376_v33, %v5032_v54  ;;  %v6378_v42 = vpop.f32.mrb[233].mxu0 }
 0x772   : > { %v7612_v30 = vadd.f32 %v6378_v42, %v5032_v54  ;;  %v6380_v5 = vpop.f32.mrb[234].mxu0  ;;  %6815 = vmatprep.subr.bf16.mxu1 %v6718_v61 }
 0x773   : > { %v7613_v24 = vadd.f32 %v6380_v5, %v5037_v0  ;;  %v6382_v3 = vpop.f32.mrb[235].mxu0  ;;  %6816 = vmatpush1.bf16.msra.mxu1 %v6717_v45  ;;  %v6617_v31 = vmax.f32 %v7611_v9, 0.0 }
 0x774   : > { %v7614_v35 = vadd.f32 %v6382_v3, %v5037_v0  ;;  %v6618_v19 = vmax.f32 %v7612_v30, 0.0  ;;  %v5072_v0 = vpop.permute.xlu0 %5071  ;;  %v5077_v3 = vpop.permute.xlu1 %5076 }
 0x775   : > { %v6619_v41 = vmax.f32 %v7613_v24, 0.0 }
 0x776   : > { %v6620_v51 = vmax.f32 %v7614_v35, 0.0 }
 0x777   : > { %v6719_v1 = vpack.c.bf16 %v6619_v41, %v6617_v31 }
 0x778   : > { %v6720_v60 = vpack.c.bf16 %v6620_v51, %v6618_v19  ;;  %v6386_v28 = vpop.f32.mrb[236].mxu0 }
 0x779   : > { %v7615_v15 = vadd.f32 %v6386_v28, %v5042_v52  ;;  %v6388_v23 = vpop.f32.mrb[237].mxu0 }
 0x77a   : > { %v7616_v14 = vadd.f32 %v6388_v23, %v5042_v52  ;;  %v6390_v46 = vpop.f32.mrb[238].mxu0  ;;  %6817 = vmatprep.subr.bf16.mxu1 %v6720_v60 }
 0x77b   : > { %v7617_v32 = vadd.f32 %v6390_v46, %v5047_v8  ;;  %v6392_v4 = vpop.f32.mrb[239].mxu0  ;;  %6818 = vmatpush1.bf16.msra.mxu1 %v6719_v1  ;;  %v6621_v55 = vmax.f32 %v7615_v15, 0.0  ;;  %v5082_v15 = vpop.permute.xlu0 %5081 }
 0x77c   : > { %v7618_v57 = vadd.f32 %v6392_v4, %v5047_v8  ;;  %v6622_v10 = vmax.f32 %v7616_v14, 0.0 }
 0x77d   : > { %v6623_v26 = vmax.f32 %v7617_v32, 0.0  ;;  %v5087_v32 = vpop.permute.xlu1 %5086 }
 0x77e   : > { %v6624_v29 = vmax.f32 %v7618_v57, 0.0 }
 0x77f   : > { %v6721_v40 = vpack.c.bf16 %v6623_v26, %v6621_v55 }
 0x780   : > { %v6722_v21 = vpack.c.bf16 %v6624_v29, %v6622_v10  ;;  %v6396_v58 = vpop.f32.mrb[240].mxu0 }
 0x781   : > { %v7619_v43 = vadd.f32 %v6396_v58, %v5052_v13  ;;  %v6398_v38 = vpop.f32.mrb[241].mxu0 }
 0x782   : > { %v7620_v62 = vadd.f32 %v6398_v38, %v5052_v13  ;;  %v6400_v6 = vpop.f32.mrb[242].mxu0  ;;  %6819 = vmatprep.subr.bf16.mxu1 %v6722_v21 }
 0x783   : > { %v7621_v17 = vadd.f32 %v6400_v6, %v5057_v11  ;;  %v6402_v25 = vpop.f32.mrb[243].mxu0  ;;  %6820 = vmatpush1.bf16.msra.mxu1 %v6721_v40  ;;  %v6625_v56 = vmax.f32 %v7619_v43, 0.0  ;;  %v5092_v43 = vpop.permute.xlu0 %5091 }
 0x784   : > { %v7622_v59 = vadd.f32 %v6402_v25, %v5057_v11  ;;  %v6626_v50 = vmax.f32 %v7620_v62, 0.0 }
 0x785   : > { %v6627_v7 = vmax.f32 %v7621_v17, 0.0  ;;  %v5097_v17 = vpop.permute.xlu1 %5096 }
 0x786   : > { %v6628_v37 = vmax.f32 %v7622_v59, 0.0 }
 0x787   : > { %v6723_v34 = vpack.c.bf16 %v6627_v7, %v6625_v56 }
 0x788   : > { %v6724_v63 = vpack.c.bf16 %v6628_v37, %v6626_v50  ;;  %v6406_v36 = vpop.f32.mrb[244].mxu0 }
 0x789   : > { %v7623_v47 = vadd.f32 %v6406_v36, %v5062_v39  ;;  %v6408_v27 = vpop.f32.mrb[245].mxu0 }
 0x78a   : > { %v7624_v48 = vadd.f32 %v6408_v27, %v5062_v39  ;;  %v6410_v49 = vpop.f32.mrb[246].mxu0  ;;  %6821 = vmatprep.subr.bf16.mxu1 %v6724_v63 }
 0x78b   : > { %v7625_v18 = vadd.f32 %v6410_v49, %v5067_v22  ;;  %v6412_v12 = vpop.f32.mrb[247].mxu0  ;;  %6822 = vmatpush1.bf16.msra.mxu1 %v6723_v34  ;;  %v6629_v54 = vmax.f32 %v7623_v47, 0.0  ;;  %v5102_v47 = vpop.permute.xlu0 %5101 }
 0x78c   : > { %v7626_v45 = vadd.f32 %v6412_v12, %v5067_v22  ;;  %v6630_v33 = vmax.f32 %v7624_v48, 0.0 }
 0x78d   : > { %v6631_v61 = vmax.f32 %v7625_v18, 0.0  ;;  %v5107_v18 = vpop.permute.xlu1 %5106 }
 0x78e   : > { %v6632_v9 = vmax.f32 %v7626_v45, 0.0  ;;  %6824 = vmatmul.mubr.bf16.vlgmr.msra.gmra.mrb[112].mxu1 %v11287_v53 }
 0x78f   : > { %v6725_v42 = vpack.c.bf16 %v6631_v61, %v6629_v54  ;;  %6864 = vmatprep.mubr.bf16.mxu1 %v6786_v16 }
 0x790   : > { %v6726_v30 = vpack.c.bf16 %v6632_v9, %v6630_v33  ;;  %v6416_v5 = vpop.f32.mrb[248].mxu0 }
 0x791   : > { %v7627_v2 = vadd.f32 %v6416_v5, %v5072_v0  ;;  %v6418_v24 = vpop.f32.mrb[249].mxu0  ;;  %v5112_v5 = vpop.permute.xlu0 %5111 }
 0x792   : > { %v7628_v35 = vadd.f32 %v6418_v24, %v5072_v0  ;;  %v6420_v31 = vpop.f32.mrb[250].mxu0  ;;  %6832 = vmatprep.subr.bf16.mxu1 %v6726_v30 }
 0x793   : > { %v7629_v41 = vadd.f32 %v6420_v31, %v5077_v3  ;;  %v6422_v20 = vpop.f32.mrb[251].mxu0  ;;  %6833 = vmatpush1.bf16.msra.mxu1 %v6725_v42  ;;  %v6633_v51 = vmax.f32 %v7627_v2, 0.0  ;;  %v5117_v31 = vpop.permute.xlu1 %5116 }
 0x794   : > { %v7630_v19 = vadd.f32 %v6422_v20, %v5077_v3  ;;  %v6634_v52 = vmax.f32 %v7628_v35, 0.0 }
 0x795   : > { %v6635_v1 = vmax.f32 %v7629_v41, 0.0 }
 0x796   : > { %v6636_v60 = vmax.f32 %v7630_v19, 0.0 }
 0x797   : > { %v6727_v28 = vpack.c.bf16 %v6635_v1, %v6633_v51 }
 0x798   : > { %v6728_v23 = vpack.c.bf16 %v6636_v60, %v6634_v52  ;;  %v6426_v8 = vpop.f32.mrb[252].mxu0 }
 0x799   : > { %v7631_v14 = vadd.f32 %v6426_v8, %v5082_v15  ;;  %v6428_v46 = vpop.f32.mrb[253].mxu0  ;;  %v5122_v8 = vpop.permute.xlu0 %5121 }
 0x79a   : > { %v7632_v4 = vadd.f32 %v6428_v46, %v5082_v15  ;;  %v6430_v57 = vpop.f32.mrb[254].mxu0  ;;  %6834 = vmatprep.subr.bf16.mxu1 %v6728_v23 }
 0x79b   : > { %v7633_v55 = vadd.f32 %v6430_v57, %v5087_v32  ;;  %v6432_v26 = vpop.f32.mrb[255].mxu0  ;;  %6835 = vmatpush1.bf16.msra.mxu1 %v6727_v28  ;;  %v6637_v29 = vmax.f32 %v7631_v14, 0.0  ;;  %v5127_v57 = vpop.permute.xlu1 %5126 }
 0x79c   : > { %v7634_v10 = vadd.f32 %v6432_v26, %v5087_v32  ;;  %v6638_v13 = vmax.f32 %v7632_v4, 0.0 }
 0x79d   : > { %v6639_v40 = vmax.f32 %v7633_v55, 0.0 }
 0x79e   : > { %v6640_v21 = vmax.f32 %v7634_v10, 0.0 }
 0x79f   : > { %v6729_v58 = vpack.c.bf16 %v6639_v40, %v6637_v29 }
 0x7a0   : > { %v6730_v38 = vpack.c.bf16 %v6640_v21, %v6638_v13  ;;  %v6436_v11 = vpop.f32.mrb[0].mxu0 }
 0x7a1   : > { %v7635_v62 = vadd.f32 %v6436_v11, %v5092_v43  ;;  %v6438_v6 = vpop.f32.mrb[1].mxu0  ;;  %v5132_v11 = vpop.permute.xlu0 %5131 }
 0x7a2   : > { %v7636_v25 = vadd.f32 %v6438_v6, %v5092_v43  ;;  %v6440_v59 = vpop.f32.mrb[2].mxu0  ;;  %6836 = vmatprep.subr.bf16.mxu1 %v6730_v38 }
 0x7a3   : > { %v7637_v56 = vadd.f32 %v6440_v59, %v5097_v17  ;;  %v6442_v7 = vpop.f32.mrb[3].mxu0  ;;  %6837 = vmatpush1.bf16.msra.mxu1 %v6729_v58  ;;  %v6641_v37 = vmax.f32 %v7635_v62, 0.0  ;;  %v5137_v59 = vpop.permute.xlu1 %5136 }
 0x7a4   : > { %v7638_v50 = vadd.f32 %v6442_v7, %v5097_v17  ;;  %v6642_v39 = vmax.f32 %v7636_v25, 0.0 }
 0x7a5   : > { %v6643_v34 = vmax.f32 %v7637_v56, 0.0 }
 0x7a6   : > { %v6644_v63 = vmax.f32 %v7638_v50, 0.0 }
 0x7a7   : > { %v6731_v36 = vpack.c.bf16 %v6643_v34, %v6641_v37 }
 0x7a8   : > { %v6732_v27 = vpack.c.bf16 %v6644_v63, %v6642_v39  ;;  %v6446_v22 = vpop.f32.mrb[4].mxu0 }
 0x7a9   : > { %v7639_v48 = vadd.f32 %v6446_v22, %v5102_v47  ;;  %v6448_v49 = vpop.f32.mrb[5].mxu0  ;;  %v5142_v22 = vpop.permute.xlu0 %5141 }
 0x7aa   : > { %v7640_v12 = vadd.f32 %v6448_v49, %v5102_v47  ;;  %v6450_v16 = vpop.f32.mrb[6].mxu0  ;;  %6838 = vmatprep.subr.bf16.mxu1 %v6732_v27 }
 0x7ab   : > { %v7641_v45 = vadd.f32 %v6450_v16, %v5107_v18  ;;  %v6452_v54 = vpop.f32.mrb[7].mxu0  ;;  %6839 = vmatpush1.bf16.msra.mxu1 %v6731_v36  ;;  %v6645_v33 = vmax.f32 %v7639_v48, 0.0  ;;  %v5147_v16 = vpop.permute.xlu1 %5146 }
 0x7ac   : > { %v7642_v61 = vadd.f32 %v6452_v54, %v5107_v18  ;;  %v6646_v42 = vmax.f32 %v7640_v12, 0.0 }
 0x7ad   : > { %v6647_v9 = vmax.f32 %v7641_v45, 0.0 }
 0x7ae   : > { %v6648_v0 = vmax.f32 %v7642_v61, 0.0 }
 0x7af   : > { %v6733_v30 = vpack.c.bf16 %v6647_v9, %v6645_v33 }
 0x7b0   : > { %v6734_v2 = vpack.c.bf16 %v6648_v0, %v6646_v42  ;;  %v6456_v24 = vpop.f32.mrb[8].mxu0 }
 0x7b1   : > { %v7643_v3 = vadd.f32 %v6456_v24, %v5112_v5  ;;  %v6458_v35 = vpop.f32.mrb[9].mxu0  ;;  %v5152_v24 = vpop.permute.xlu0 %5151 }
 0x7b2   : > { %v7644_v41 = vadd.f32 %v6458_v35, %v5112_v5  ;;  %v6460_v20 = vpop.f32.mrb[10].mxu0  ;;  %6840 = vmatprep.subr.bf16.mxu1 %v6734_v2 }
 0x7b3   : > { %v7645_v19 = vadd.f32 %v6460_v20, %v5117_v31  ;;  %v6462_v51 = vpop.f32.mrb[11].mxu0  ;;  %6841 = vmatpush1.bf16.msra.mxu1 %v6733_v30  ;;  %v6649_v52 = vmax.f32 %v7643_v3, 0.0  ;;  %v5157_v20 = vpop.permute.xlu1 %5156 }
 0x7b4   : > { %v7646_v1 = vadd.f32 %v6462_v51, %v5117_v31  ;;  %v6650_v28 = vmax.f32 %v7644_v41, 0.0 }
 0x7b5   : > { %v6651_v60 = vmax.f32 %v7645_v19, 0.0 }
 0x7b6   : > { %v6652_v15 = vmax.f32 %v7646_v1, 0.0 }
 0x7b7   : > { %v6735_v23 = vpack.c.bf16 %v6651_v60, %v6649_v52 }
 0x7b8   : > { %v6736_v14 = vpack.c.bf16 %v6652_v15, %v6650_v28  ;;  %v6466_v46 = vpop.f32.mrb[12].mxu0 }
 0x7b9   : > { %v7647_v32 = vadd.f32 %v6466_v46, %v5122_v8  ;;  %v6468_v4 = vpop.f32.mrb[13].mxu0  ;;  %v5162_v46 = vpop.permute.xlu0 %5161 }
 0x7ba   : > { %v7648_v55 = vadd.f32 %v6468_v4, %v5122_v8  ;;  %v6470_v26 = vpop.f32.mrb[14].mxu0  ;;  %6842 = vmatprep.subr.bf16.mxu1 %v6736_v14 }
 0x7bb   : > { %v7649_v10 = vadd.f32 %v6470_v26, %v5127_v57  ;;  %v6472_v29 = vpop.f32.mrb[15].mxu0  ;;  %6843 = vmatpush1.bf16.msra.mxu1 %v6735_v23  ;;  %v6653_v13 = vmax.f32 %v7647_v32, 0.0  ;;  %v5167_v26 = vpop.permute.xlu1 %5166 }
 0x7bc   : > { %v7650_v40 = vadd.f32 %v6472_v29, %v5127_v57  ;;  %v6654_v58 = vmax.f32 %v7648_v55, 0.0 }
 0x7bd   : > { %v6655_v21 = vmax.f32 %v7649_v10, 0.0 }
 0x7be   : > { %v6656_v43 = vmax.f32 %v7650_v40, 0.0 }
 0x7bf   : > { %v6737_v38 = vpack.c.bf16 %v6655_v21, %v6653_v13 }
 0x7c0   : > { %v6738_v62 = vpack.c.bf16 %v6656_v43, %v6654_v58  ;;  %v6476_v6 = vpop.f32.mrb[16].mxu0 }
 0x7c1   : > { %v7651_v17 = vadd.f32 %v6476_v6, %v5132_v11  ;;  %v6478_v25 = vpop.f32.mrb[17].mxu0  ;;  %v5172_v6 = vpop.permute.xlu0 %5171 }
 0x7c2   : > { %v7652_v56 = vadd.f32 %v6478_v25, %v5132_v11  ;;  %v6480_v7 = vpop.f32.mrb[18].mxu0  ;;  %6844 = vmatprep.subr.bf16.mxu1 %v6738_v62 }
 0x7c3   : > { %v7653_v50 = vadd.f32 %v6480_v7, %v5137_v59  ;;  %v6482_v37 = vpop.f32.mrb[19].mxu0  ;;  %6845 = vmatpush1.bf16.msra.mxu1 %v6737_v38  ;;  %v6657_v39 = vmax.f32 %v7651_v17, 0.0  ;;  %v5177_v7 = vpop.permute.xlu1 %5176 }
 0x7c4   : > { %v7654_v34 = vadd.f32 %v6482_v37, %v5137_v59  ;;  %v6658_v36 = vmax.f32 %v7652_v56, 0.0 }
 0x7c5   : > { %v6659_v63 = vmax.f32 %v7653_v50, 0.0 }
 0x7c6   : > { %v6660_v47 = vmax.f32 %v7654_v34, 0.0 }
 0x7c7   : > { %v6739_v27 = vpack.c.bf16 %v6659_v63, %v6657_v39 }
 0x7c8   : > { %v6740_v48 = vpack.c.bf16 %v6660_v47, %v6658_v36  ;;  %v6486_v49 = vpop.f32.mrb[20].mxu0 }
 0x7c9   : > { %v7655_v18 = vadd.f32 %v6486_v49, %v5142_v22  ;;  %v6488_v12 = vpop.f32.mrb[21].mxu0  ;;  %v5182_v49 = vpop.permute.xlu0 %5181 }
 0x7ca   : > { %v7656_v45 = vadd.f32 %v6488_v12, %v5142_v22  ;;  %v6490_v54 = vpop.f32.mrb[22].mxu0  ;;  %6846 = vmatprep.subr.bf16.mxu1 %v6740_v48 }
 0x7cb   : > { %v7657_v61 = vadd.f32 %v6490_v54, %v5147_v16  ;;  %v6492_v33 = vpop.f32.mrb[23].mxu0  ;;  %6847 = vmatpush1.bf16.msra.mxu1 %v6739_v27  ;;  %v6661_v42 = vmax.f32 %v7655_v18, 0.0  ;;  %v5187_v54 = vpop.permute.xlu1 %5186 }
 0x7cc   : > { %v7658_v9 = vadd.f32 %v6492_v33, %v5147_v16  ;;  %v6662_v30 = vmax.f32 %v7656_v45, 0.0 }
 0x7cd   : > { %v6663_v0 = vmax.f32 %v7657_v61, 0.0 }
 0x7ce   : > { %v6664_v5 = vmax.f32 %v7658_v9, 0.0 }
 0x7cf   : > { %v6741_v2 = vpack.c.bf16 %v6663_v0, %v6661_v42 }
 0x7d0   : > { %v6742_v3 = vpack.c.bf16 %v6664_v5, %v6662_v30  ;;  %v6496_v35 = vpop.f32.mrb[24].mxu0 }
 0x7d1   : > { %v7659_v31 = vadd.f32 %v6496_v35, %v5152_v24  ;;  %v6498_v41 = vpop.f32.mrb[25].mxu0  ;;  %v5192_v35 = vpop.permute.xlu0 %5191 }
 0x7d2   : > { %v7660_v19 = vadd.f32 %v6498_v41, %v5152_v24  ;;  %v6500_v51 = vpop.f32.mrb[26].mxu0  ;;  %6848 = vmatprep.subr.bf16.mxu1 %v6742_v3 }
 0x7d3   : > { %v7661_v1 = vadd.f32 %v6500_v51, %v5157_v20  ;;  %v6502_v52 = vpop.f32.mrb[27].mxu0  ;;  %6849 = vmatpush1.bf16.msra.mxu1 %v6741_v2  ;;  %v6665_v28 = vmax.f32 %v7659_v31, 0.0  ;;  %v5197_v51 = vpop.permute.xlu1 %5196 }
 0x7d4   : > { %v7662_v60 = vadd.f32 %v6502_v52, %v5157_v20  ;;  %v6666_v23 = vmax.f32 %v7660_v19, 0.0 }
 0x7d5   : > { %v6667_v15 = vmax.f32 %v7661_v1, 0.0 }
 0x7d6   : > { %v6668_v8 = vmax.f32 %v7662_v60, 0.0 }
 0x7d7   : > { %v6743_v14 = vpack.c.bf16 %v6667_v15, %v6665_v28 }
 0x7d8   : > { %v6744_v32 = vpack.c.bf16 %v6668_v8, %v6666_v23  ;;  %v6506_v4 = vpop.f32.mrb[28].mxu0 }
 0x7d9   : > { %v7663_v57 = vadd.f32 %v6506_v4, %v5162_v46  ;;  %v6508_v55 = vpop.f32.mrb[29].mxu0  ;;  %v5202_v4 = vpop.permute.xlu0 %5201 }
 0x7da   : > { %v7664_v10 = vadd.f32 %v6508_v55, %v5162_v46  ;;  %v6510_v29 = vpop.f32.mrb[30].mxu0  ;;  %6850 = vmatprep.subr.bf16.mxu1 %v6744_v32 }
 0x7db   : > { %v7665_v40 = vadd.f32 %v6510_v29, %v5167_v26  ;;  %v6512_v13 = vpop.f32.mrb[31].mxu0  ;;  %6851 = vmatpush1.bf16.msra.mxu1 %v6743_v14  ;;  %v6669_v58 = vmax.f32 %v7663_v57, 0.0  ;;  %v5207_v29 = vpop.permute.xlu1 %5206 }
 0x7dc   : > { %v7666_v21 = vadd.f32 %v6512_v13, %v5167_v26  ;;  %v6670_v38 = vmax.f32 %v7664_v10, 0.0 }
 0x7dd   : > { %v6671_v43 = vmax.f32 %v7665_v40, 0.0 }
 0x7de   : > { %v6672_v11 = vmax.f32 %v7666_v21, 0.0 }
 0x7df   : > { %v6745_v62 = vpack.c.bf16 %v6671_v43, %v6669_v58 }
 0x7e0   : > { %v6746_v17 = vpack.c.bf16 %v6672_v11, %v6670_v38  ;;  %v6516_v25 = vpop.f32.mrb[32].mxu0 }
 0x7e1   : > { %v7667_v59 = vadd.f32 %v6516_v25, %v5172_v6  ;;  %v6518_v56 = vpop.f32.mrb[33].mxu0  ;;  %v5212_v25 = vpop.permute.xlu0 %5211 }
 0x7e2   : > { %v7668_v50 = vadd.f32 %v6518_v56, %v5172_v6  ;;  %v6520_v37 = vpop.f32.mrb[34].mxu0  ;;  %6852 = vmatprep.subr.bf16.mxu1 %v6746_v17 }
 0x7e3   : > { %v7669_v34 = vadd.f32 %v6520_v37, %v5177_v7  ;;  %v6522_v39 = vpop.f32.mrb[35].mxu0  ;;  %6853 = vmatpush1.bf16.msra.mxu1 %v6745_v62  ;;  %v6673_v36 = vmax.f32 %v7667_v59, 0.0  ;;  %v5217_v37 = vpop.permute.xlu1 %5216 }
 0x7e4   : > { %v7670_v63 = vadd.f32 %v6522_v39, %v5177_v7  ;;  %v6674_v27 = vmax.f32 %v7668_v50, 0.0 }
 0x7e5   : > { %v6675_v47 = vmax.f32 %v7669_v34, 0.0 }
 0x7e6   : > { %v6676_v22 = vmax.f32 %v7670_v63, 0.0 }
 0x7e7   : > { %v6747_v48 = vpack.c.bf16 %v6675_v47, %v6673_v36 }
 0x7e8   : > { %v6748_v18 = vpack.c.bf16 %v6676_v22, %v6674_v27  ;;  %v6526_v12 = vpop.f32.mrb[36].mxu0 }
 0x7e9   : > { %v7671_v16 = vadd.f32 %v6526_v12, %v5182_v49  ;;  %v6528_v45 = vpop.f32.mrb[37].mxu0 }
 0x7ea   : > { %v7672_v61 = vadd.f32 %v6528_v45, %v5182_v49  ;;  %v6530_v33 = vpop.f32.mrb[38].mxu0  ;;  %6854 = vmatprep.subr.bf16.mxu1 %v6748_v18  ;;  %v6761_v45 = vstv %s6757_s24  ;;  %s8213_s24 = scalar_lea.vmem %s11304_s20, 32 }
 0x7eb   : > { %v7673_v9 = vadd.f32 %v6530_v33, %v5187_v54  ;;  %v6532_v42 = vpop.f32.mrb[39].mxu0  ;;  %6855 = vmatpush1.bf16.msra.mxu1 %v6747_v48  ;;  %v6677_v30 = vmax.f32 %v7671_v16, 0.0  ;;  %v6785_v16 = vcombine.high %v11287_v53, %v11287_v53  ;;  %p8214_p10 = scmp.ne.s32.totalorder %s11304_s20, %s8213_s24 }
 0x7ec   : > { %v7674_v0 = vadd.f32 %v6532_v42, %v5187_v54  ;;  %v6678_v2 = vmax.f32 %v7672_v61, 0.0 }
 0x7ed   : > { %v6679_v5 = vmax.f32 %v7673_v9, 0.0  ;;  %v6875_v9 = vstv %s7546_s26  ;;  %p8215_p11 = pnand %p8214_p10, %p8392_p4  ;;  %s8301_s26 = smov [#allocation5]  }
 0x7ee   : > { %v6680_v24 = vmax.f32 %v7674_v0, 0.0 }
 0x7ef   : > { %v6749_v3 = vpack.c.bf16 %v6679_v5, %v6677_v30  ;;  %p8216_p13 = pneg %p8215_p11 }
 0x7f0   : > { %v6750_v31 = vpack.c.bf16 %v6680_v24, %v6678_v2  ;;  %v6536_v41 = vpop.f32.mrb[40].mxu0  ;;  %v6878_v2 = vstv %s7547_s28  ;;  %s8217_s28 = sshll.u32 %s8301_s26, 4  ;;  %s8218_s28 = int_to_ptr.vmem [resolvable:$false] %s8217_s28 }
 0x7f1   : > { %v7675_v20 = vadd.f32 %v6536_v41, %v5192_v35  ;;  %v6538_v19 = vpop.f32.mrb[41].mxu0  ;;  %s8219_s15 = scalar_lea.vmem %s8218_s28, 64  ;;  %p8220_p0 = scmp.lt.s32.totalorder %s11304_s20, %s8218_s28 }
 0x7f2   : > { %v7676_v1 = vadd.f32 %v6538_v19, %v5192_v35  ;;  %v6540_v52 = vpop.f32.mrb[42].mxu0  ;;  %6856 = vmatprep.subr.bf16.mxu1 %v6750_v31  ;;  %v11579_v19 = vlaneseq  ;;  %p8221_p1 = scmp.lt.s32.totalorder %s8219_s15, %s8213_s24 }
 0x7f3   : > { %v7677_v60 = vadd.f32 %v6540_v52, %v5197_v51  ;;  %v6542_v28 = vpop.f32.mrb[43].mxu0  ;;  %6857 = vmatpush1.bf16.msra.mxu1 %v6749_v3  ;;  %v6681_v23 = vmax.f32 %v7675_v20, 0.0 }
 0x7f4   : > { %v7678_v15 = vadd.f32 %v6542_v28, %v5197_v51  ;;  %v6682_v14 = vmax.f32 %v7676_v1, 0.0  ;;  %vm6901_vm14 = vcmp.lt.s32.totalorder %v11579_v19, 256  ;;  %p8222_p2 = por %p8221_p1, %p8220_p0 }
 0x7f5   : > { %v6683_v8 = vmax.f32 %v7677_v60, 0.0 }
 0x7f6   : > { %v6684_v46 = vmax.f32 %v7678_v15, 0.0  ;;  %p8223_p3 = pnand %p8222_p2, %p8216_p13 }
 0x7f7   : > { %v6751_v32 = vpack.c.bf16 %v6683_v8, %v6681_v23 }
 0x7f8   : > { %v6752_v57 = vpack.c.bf16 %v6684_v46, %v6682_v14  ;;  %v6546_v55 = vpop.f32.mrb[44].mxu0 }
 0x7f9   : > { %v7679_v26 = vadd.f32 %v6546_v55, %v5202_v4  ;;  %v6548_v10 = vpop.f32.mrb[45].mxu0 }
 0x7fa   : > { %v7680_v40 = vadd.f32 %v6548_v10, %v5202_v4  ;;  %v6550_v13 = vpop.f32.mrb[46].mxu0  ;;  %6858 = vmatprep.subr.bf16.mxu1 %v6752_v57 }
 0x7fb   : > { %v7681_v21 = vadd.f32 %v6550_v13, %v5207_v29  ;;  %v6552_v58 = vpop.f32.mrb[47].mxu0  ;;  %6859 = vmatpush1.bf16.msra.mxu1 %v6751_v32  ;;  %v6685_v38 = vmax.f32 %v7679_v26, 0.0 }
 0x7fc   : > { %v7682_v43 = vadd.f32 %v6552_v58, %v5207_v29  ;;  %v6686_v62 = vmax.f32 %v7680_v40, 0.0 }
 0x7fd   : > { %v6687_v11 = vmax.f32 %v7681_v21, 0.0 }
 0x7fe   : > { %v6688_v6 = vmax.f32 %v7682_v43, 0.0 }
 0x7ff   : > { %v6753_v17 = vpack.c.bf16 %v6687_v11, %v6685_v38 }
 0x800   : > { %v6754_v59 = vpack.c.bf16 %v6688_v6, %v6686_v62  ;;  %v6556_v56 = vpop.f32.mrb[48].mxu0 }
 0x801   : > { %v7683_v7 = vadd.f32 %v6556_v56, %v5212_v25  ;;  %v6558_v50 = vpop.f32.mrb[49].mxu0 }
 0x802   : > { %v7684_v34 = vadd.f32 %v6558_v50, %v5212_v25  ;;  %v6560_v39 = vpop.f32.mrb[50].mxu0  ;;  %6860 = vmatprep.subr.bf16.mxu1 %v6754_v59 }
 0x803   : > { %v7685_v63 = vadd.f32 %v6560_v39, %v5217_v37  ;;  %v6562_v36 = vpop.f32.mrb[51].mxu0  ;;  %6861 = vmatpush1.bf16.msra.mxu1 %v6753_v17  ;;  %v6689_v27 = vmax.f32 %v7683_v7, 0.0 }
 0x804   : > { %v7686_v47 = vadd.f32 %v6562_v36, %v5217_v37  ;;  %v6690_v48 = vmax.f32 %v7684_v34, 0.0 }
 0x805   : > { %v6691_v22 = vmax.f32 %v7685_v63, 0.0 }
 0x806   : > { %v6692_v49 = vmax.f32 %v7686_v47, 0.0 }
 0x807   : > { %v6755_v18 = vpack.c.bf16 %v6691_v22, %v6689_v27 }
 0x808   : > { %v6756_v12 = vpack.c.bf16 %v6692_v49, %v6690_v48 }
 0x80a   : > { %6862 = vmatprep.subr.bf16.mxu1 %v6756_v12 }
 0x80b   : > { %6863 = vmatpush1.bf16.msra.mxu1 %v6755_v18 }
 0x80e   : > { %6865 = vmatmul.mubr.bf16.vlgmr.msra.gmra.mrb[112].mxu1 %v6785_v16 }
 0x8e1   : > { %v6866_v54 = vpop.f32.mrb[112].mxu1 }
 0x8e2   : > { %v7687_v61 = vadd.f32 %v6866_v54, %v6761_v45  ;;  %v6868_v33 = vpop.f32.mrb[113].mxu1 }
 0x8e3   : > { %v7688_v42 = vadd.f32 %v6868_v33, %v6761_v45  ;;  %v6870_v0 = vpop.f32.mrb[114].mxu1 }
 0x8e4   : > { %v6873_v30 = vmax.f32 %v7687_v61, 0.0  ;;  %v6871_v5 = vpop.f32.mrb[115].mxu1 }
 0x8e5   : > { %v6874_v24 = vmax.f32 %v7688_v42, 0.0 }
 0x8e6   : > { %v6876_v53 = vmul.f32 %v6875_v9, %v6873_v30 }
 0x8e7   : > { %v6877_v3 = vmul.f32 %v6875_v9, %v6874_v24 }
 0x8e8   : > { %v6879_v35 = vadd.f32 %v6878_v2, %v6876_v53 }
 0x8e9   : > { %v6880_v31 = vadd.f32 %v6878_v2, %v6877_v3 }
 0x8eb   : > { %v6883_v41 = vcombine.low %v6879_v35, %v6880_v31 }
 0x8ed   : > { %v6890_v20 = vrot.slane %v6883_v41, %v11258_v44 }
 0x8ef   : > { %v6897_v51 = vrot.slane %v6890_v20, %v11258_v44 }
 0x8f1   : > { %6903 = vst.msk [vmem:[%s379_s18] sm:$0x3] %vm6901_vm14, %v6897_v51 }
 0x8f2   : > { %8226 = shalt.err (!%p8223_p3)
}
 0x8f3   : > { %s8227_s29 = scalar_lea.hbm %s11302_s27, 32  ;;  %s8231_s23 = scalar_lea.hbm %s11358_s9, 64 }
 0x8f4   : > { %p8228_p5 = scmp.ne.s32.totalorder %s11302_s27, %s8227_s29  ;;  %p8232_p9 = scmp.lt.u32.totalorder %s11302_s27, %s11358_s9 }
 0x8f5   : > { %p8233_p12 = scmp.lt.u32.totalorder %s8231_s23, %s8227_s29  ;;  %p8235_p11 = scmp.lt.u32.totalorder %s8227_s29, %s11302_s27 }
 0x8f6   : > { %p8229_p6 = pnand %p8228_p5, %p8392_p4 }
 0x8f7   : > { %p8234_p10 = por %p8233_p12, %p8232_p9 }
 0x8f8   : > { %p8230_p7 = pneg %p8229_p6 }
 0x8f9   : > { %p8236_p13 = por %p8235_p11, %p8234_p10 }
 0x8fb   : > { %p8237_p0 = pnand %p8236_p13, %p8230_p7 }
 0x8fd   : > { %8240 = shalt.err (!%p8237_p0)
}
 0x8fe   : > { %7859 = dma.vmem_to_hbm [thread:$0]  (%p8392_p4), %s11304_s20, 32, %s11302_s27, %s6905_s12  }
 0x8ff PF: > { %p7871_p1 = scmp.ge.s32.totalorder %s8295_s14, 2  ;;  %s6933_s24 = sand.u32 1, %s8275_s30  }
 0x900   : > { %s6934_s28 = scalar_lea.sflag [#allocation3], %s6933_s24 }
 0x901   : > { %p7866_p2 = pnand %p7871_p1, %p8399_p8 }
 0x903   : > { %8270 = dma.done.wait (!%p7866_p2), %s6934_s28, 32  }
 0x904   : > { %8272 = vsyncadd (!%p7866_p2), %s6934_s28, 4294967264  ;;  %s23_s14 = sadd.s32 1, %s8295_s14   ;;  %s11580_s30 = smov %s8279_s10 }
 0x905   : > { %p20_p3 = scmp.ge.s32.totalorder %s23_s14, 4   ;;  %s11581_s10 = smov %s8283_s11 }
 0x906   : > { %s11582_s11 = smov %s8405_s22  ;;  %s11583_s12 = smov %s8291_s13 }
 0x907   : > { %s11584_s13 = smov %s11586_s17  ;;  %22 = sbr.rel (!%p20_p3) target bundleno = 5 (0x5), region = 101 }
 0x90e   :  { %6939 = vsyncpa [#allocation3], 1 }
 0x90f   :  { %6941 = vsyncpa [#allocation3 + $0x1], 1 }
 0x910   :  { %6942 = vsyncpa [#allocation4], 1 }
 0x911   :  { %6944 = vsyncpa [#allocation4 + $0x1], 1 }

</bundles_post_ra>
